<compile_context>
chip_gen: v6e
topology: v6e:2x2x1
jax: 0.10.0
libtpu: 0.0.40
codegen_flags: <defaults>
</compile_context>

<pallas_src>
import functools

import numpy as np

import jax
import jax.numpy as jnp
from jax.experimental import pallas as pl
from jax.experimental.pallas import tpu as pltpu


# ------------------------------ fused kernel --------------------------------

def _lenet5_kernel(x_ref,
                   t1_ref, b1_ref, pr1_ref, pc1_ref,
                   t2_ref, b2_ref, pr2_ref, pc2_ref,
                   t3_ref, b3_ref, s3_ref,
                   wf1_ref, bf1_ref, wf2_ref, bf2_ref,
                   logits_ref, probs_ref, *, bt, n_classes):
    f32, bf16 = jnp.float32, jnp.bfloat16
    KH = 5

    def mm(a, b):                       # bf16 MXU matmul, f32 accumulation
        return jnp.dot(a.astype(bf16), b.astype(bf16),
                       preferred_element_type=f32)

    def tap_cat(a, m):                  # concat 5 row-shifted tap slices along K
        return jnp.concatenate([a[dy:dy + m, :] for dy in range(KH)], axis=-1)

    # ---- conv1 + tanh: folded rows (bt*32, 32) -> (bt*32-4, 28*8) ----
    # Rows crossing an image boundary are garbage; the pooling row-matrix never
    # selects them, so they are harmless.
    x = x_ref[...].astype(bf16)                                   # (bt*32, 32)
    m1 = bt * 32 - 4
    a1 = jnp.tanh(mm(tap_cat(x, m1), t1_ref[...]) + b1_ref[...]).astype(bf16)
    # avg-pool 2x2: block-diag row mix @ A @ col mix -> (bt*14, 14*8)
    p1 = mm(mm(pr1_ref[...], a1), pc1_ref[...]).astype(bf16)

    # ---- conv2 + tanh: (bt*14, 112) -> (bt*14-4, 10*16); pool -> (bt*5, 5*16) ----
    m2 = bt * 14 - 4
    a2 = jnp.tanh(mm(tap_cat(p1, m2), t2_ref[...]) + b2_ref[...]).astype(bf16)
    p2 = mm(mm(pr2_ref[...], a2), pc2_ref[...]).astype(bf16)

    # ---- conv3 + tanh: (bt*5, 80) -> (bt*5-4, 128); keep 1 valid row / image ----
    m3 = bt * 5 - 4
    a3_all = jnp.tanh(mm(tap_cat(p2, m3), t3_ref[...]) + b3_ref[...]).astype(bf16)
    a3 = mm(s3_ref[...], a3_all)                  # exact 0/1 row selection, (bt, 128)

    # ---- classifier: fc1 + tanh, fc2 ----
    h1 = jnp.tanh(mm(a3, wf1_ref[...]) + bf1_ref[...])            # (bt, 128)
    logits = mm(h1, wf2_ref[...]) + bf2_ref[...]                  # (bt, 128) f32

    # ---- softmax over the first n_classes lanes (padding masked out) ----
    col = jax.lax.broadcasted_iota(jnp.int32, logits.shape, 1)
    valid = col < n_classes
    lm = jnp.where(valid, logits, -jnp.inf)
    mrow = jnp.max(lm, axis=1, keepdims=True)
    e = jnp.where(valid, jnp.exp(lm - mrow), 0.0)
    probs = e * pl.reciprocal(jnp.sum(e, axis=1, keepdims=True), approx=True)

    logits_ref[...] = logits
    probs_ref[...] = probs


# --------------------- one-time host-side constant prep ----------------------

def _pad_vec(v, n):
    out = np.zeros((n,), np.float32)
    v = np.asarray(v, np.float32)
    out[: v.shape[0]] = v
    return out


def _pad_mat(m, rows, cols):
    out = np.zeros((rows, cols), np.float32)
    m = np.asarray(m, np.float32)
    out[: m.shape[0], : m.shape[1]] = m
    return out


def _conv_toeplitz_cat(w, width, cin_pad, cout_pad):
    """Tap-concatenated Toeplitz matrix for a VALID stride-1 5x5 conv.

    w: (Cout, Cin, KH, KW) PyTorch OIHW.  Returns (KH*width*cin_pad, wo*cout_pad)
    with T[dy*width*cin_pad + wi*cin_pad + ci, wo*cout_pad + co] = w[co, ci, dy, wi-wo]
    (zero outside 0 <= wi-wo < KW), so that conv rows = X_tapcat @ T where
    X_tapcat[m, dy*width*cin_pad + wi*cin_pad + ci] = input[m+dy row, wi, ci].
    """
    w = np.asarray(w, np.float32)
    cout, cin, kh, kw = w.shape
    wo = width - kw + 1
    t = np.zeros((kh, width, cin_pad, wo, cout_pad), np.float32)
    for dy in range(kh):
        for dx in range(kw):
            wt = w[:, :, dy, dx].T                          # (cin, cout)
            for o in range(wo):
                t[dy, o + dx, :cin, o, :cout] = wt
    return t.reshape(kh * width * cin_pad, wo * cout_pad)


def _pool_row_block(bt, row_stride, h_valid, n_cols):
    """Block-diagonal 2x-row-average selector over the folded-batch row axis."""
    hp = h_valid // 2
    m = np.zeros((bt * hp, n_cols), np.float32)
    for b in range(bt):
        for j in range(hp):
            m[b * hp + j, b * row_stride + 2 * j] = 0.5
            m[b * hp + j, b * row_stride + 2 * j + 1] = 0.5
    return m


def _pool_col(w_valid, c):
    """2x-column-average over channel-minor lanes (w_valid*c -> (w_valid//2)*c)."""
    wp = w_valid // 2
    m = np.zeros((w_valid * c, wp * c), np.float32)
    eye = 0.5 * np.eye(c, dtype=np.float32)
    for j in range(wp):
        m[(2 * j) * c:(2 * j + 1) * c, j * c:(j + 1) * c] = eye
        m[(2 * j + 1) * c:(2 * j + 2) * c, j * c:(j + 1) * c] = eye
    return m


def _row_select(bt, stride, n_cols):
    m = np.zeros((bt, n_cols), np.float32)
    for b in range(bt):
        m[b, b * stride] = 1.0
    return m


def prepare_lenet5_operands(params, bt):
    """Build all kernel constants ONCE on the host.  Call OUTSIDE jax.jit."""
    bf16, f32 = jnp.bfloat16, jnp.float32
    C1P, C2P, C3P, F1P, NCP = 8, 16, 128, 128, 128          # padded dims

    t1 = _conv_toeplitz_cat(params["conv1_w"], width=32, cin_pad=1, cout_pad=C1P)    # (160, 224)
    t2 = _conv_toeplitz_cat(params["conv2_w"], width=14, cin_pad=C1P, cout_pad=C2P)  # (560, 160)
    t3 = _conv_toeplitz_cat(params["conv3_w"], width=5, cin_pad=C2P, cout_pad=C3P)   # (400, 128)

    b1 = np.tile(_pad_vec(params["conv1_b"], C1P), 28)[None, :]      # (1, 224)
    b2 = np.tile(_pad_vec(params["conv2_b"], C2P), 10)[None, :]      # (1, 160)
    b3 = _pad_vec(params["conv3_b"], C3P)[None, :]                   # (1, 128)

    pr1 = _pool_row_block(bt, 32, 28, bt * 32 - 4)                   # (bt*14, bt*32-4)
    pc1 = _pool_col(28, C1P)                                         # (224, 112)
    pr2 = _pool_row_block(bt, 14, 10, bt * 14 - 4)                   # (bt*5, bt*14-4)
    pc2 = _pool_col(10, C2P)                                         # (160, 80)
    s3 = _row_select(bt, 5, bt * 5 - 4)                              # (bt, bt*5-4)

    wf1 = _pad_mat(np.asarray(params["fc1_w"], np.float32).T, C3P, F1P)   # (128, 128)
    bf1 = _pad_vec(params["fc1_b"], F1P)[None, :]
    wf2 = _pad_mat(np.asarray(params["fc2_w"], np.float32).T, F1P, NCP)   # (128, 128)
    bf2 = _pad_vec(params["fc2_b"], NCP)[None, :]

    def dev(a, dt):
        return jnp.asarray(a, dtype=dt)

    return (dev(t1, bf16), dev(b1, f32), dev(pr1, bf16), dev(pc1, bf16),
            dev(t2, bf16), dev(b2, f32), dev(pr2, bf16), dev(pc2, bf16),
            dev(t3, bf16), dev(b3, f32), dev(s3, bf16),
            dev(wf1, bf16), dev(bf1, f32), dev(wf2, bf16), dev(bf2, f32))


def _const_spec(arr):
    nd = arr.ndim
    return pl.BlockSpec(arr.shape, lambda b, _nd=nd: (0,) * _nd)


# ------------------------------- forward pass --------------------------------

@functools.partial(jax.jit, static_argnames=("n_classes", "bt"))
def lenet5_forward(consts, x, *, n_classes, bt=8):
    """consts: prepare_lenet5_operands(...); x: (B, 1, 32, 32) NCHW float32.

    Returns (logits, probs), each (B, n_classes).
    """
    B = x.shape[0]
    assert x.shape[1:] == (1, 32, 32), "LeNet5 expects 1x32x32 inputs"
    n_tiles = -(-B // bt)                       # cdiv
    b_pad = n_tiles * bt

    x = x.astype(jnp.float32).reshape(B, 32, 32)
    if b_pad != B:
        x = jnp.pad(x, ((0, b_pad - B), (0, 0), (0, 0)))
    x_rows = x.reshape(b_pad * 32, 32)          # folded row layout (free reshape)

    kernel = functools.partial(_lenet5_kernel, bt=bt, n_classes=n_classes)

    in_specs = [pl.BlockSpec((bt * 32, 32), lambda b: (b, 0))]
    in_specs += [_const_spec(c) for c in consts]
    out_specs = (pl.BlockSpec((bt, 128), lambda b: (b, 0)),
                 pl.BlockSpec((bt, 128), lambda b: (b, 0)))
    out_shape = (jax.ShapeDtypeStruct((b_pad, 128), jnp.float32),
                 jax.ShapeDtypeStruct((b_pad, 128), jnp.float32))

    logits_pad, probs_pad = pl.pallas_call(
        kernel,
        grid=(n_tiles,),
        in_specs=in_specs,
        out_specs=out_specs,
        out_shape=out_shape,
        compiler_params=pltpu.CompilerParams(
            dimension_semantics=("parallel",)),
    )(x_rows, *consts)

    return logits_pad[:B, :n_classes], probs_pad[:B, :n_classes]


# ------------------------- params / pure-JAX reference -----------------------

def init_lenet5_params(key, n_classes):
    def uniform(k, shape, fan_in):
        bound = 1.0 / jnp.sqrt(jnp.float32(fan_in))
        return jax.random.uniform(k, shape, jnp.float32, -bound, bound)

    ks = jax.random.split(key, 10)
    p = {}
    p["conv1_w"] = uniform(ks[0], (6, 1, 5, 5), 1 * 25)
    p["conv1_b"] = uniform(ks[1], (6,), 1 * 25)
    p["conv2_w"] = uniform(ks[2], (16, 6, 5, 5), 6 * 25)
    p["conv2_b"] = uniform(ks[3], (16,), 6 * 25)
    p["conv3_w"] = uniform(ks[4], (120, 16, 5, 5), 16 * 25)
    p["conv3_b"] = uniform(ks[5], (120,), 16 * 25)
    p["fc1_w"] = uniform(ks[6], (84, 120), 120)            # PyTorch (out, in)
    p["fc1_b"] = uniform(ks[7], (84,), 120)
    p["fc2_w"] = uniform(ks[8], (n_classes, 84), 84)
    p["fc2_b"] = uniform(ks[9], (n_classes,), 84)
    return p


def lenet5_reference(params, x):
    def conv(h, w, b):
        y = jax.lax.conv_general_dilated(
            h, w, window_strides=(1, 1), padding="VALID",
            dimension_numbers=("NCHW", "OIHW", "NCHW"))
        return y + b.reshape(1, -1, 1, 1)

    def pool(h):
        b, c, hh, ww = h.shape
        return h.reshape(b, c, hh // 2, 2, ww // 2, 2).mean(axis=(3, 5))

    h = jnp.tanh(conv(x, params["conv1_w"], params["conv1_b"]))
    h = pool(h)
    h = jnp.tanh(conv(h, params["conv2_w"], params["conv2_b"]))
    h = pool(h)
    h = jnp.tanh(conv(h, params["conv3_w"], params["conv3_b"]))
    h = h.reshape(h.shape[0], -1)
    h = jnp.tanh(h @ params["fc1_w"].T + params["fc1_b"])
    logits = h @ params["fc2_w"].T + params["fc2_b"]
    return logits, jax.nn.softmax(logits, axis=1)


# ----------------------------------- main ------------------------------------

if __name__ == "__main__":
    n_classes = 10
    batch = 16          # 2 grid steps of BT=8 images (keeps both v7x TCs busy)
    bt = 8

    key = jax.random.PRNGKey(0)
    k_param, k_input = jax.random.split(key)

    params = init_lenet5_params(k_param, n_classes)
    # LeNet5's architecture implies 1x32x32 inputs (so conv3 yields 120x1x1).
    x = jax.random.normal(k_input, (batch, 1, 32, 32), dtype=jnp.float32)

    consts = prepare_lenet5_operands(params, bt)     # one-time, outside jit

    logits, probs = lenet5_forward(consts, x, n_classes=n_classes, bt=bt)
    jax.block_until_ready((logits, probs))

    assert logits.shape == (batch, n_classes)
    assert probs.shape == (batch, n_classes)
    assert bool(jnp.all(jnp.isfinite(logits)))
    assert bool(jnp.allclose(jnp.sum(probs, axis=1), 1.0, atol=5e-3))

    # Cross-check against a pure-JAX/XLA reference (loose tol: bf16 MXU inputs).
    ref_logits, ref_probs = lenet5_reference(params, x)
    assert bool(jnp.allclose(logits, ref_logits, atol=8e-2)), \
        float(jnp.max(jnp.abs(logits - ref_logits)))
    assert bool(jnp.allclose(probs, ref_probs, atol=2e-2)), \
        float(jnp.max(jnp.abs(probs - ref_probs)))

    print("KERNEL_OK")
</pallas_src>

<mosaic_0001>
module attributes {stable_mosaic.version = 11 : i64} {
  func.func @_lenet5_kernel(%arg0: i32, %arg1: memref<256x32xf32, #tpu.memory_space<vmem>>, %arg2: memref<160x224xbf16, #tpu.memory_space<vmem>>, %arg3: memref<1x224xf32, #tpu.memory_space<vmem>>, %arg4: memref<112x252xbf16, #tpu.memory_space<vmem>>, %arg5: memref<224x112xbf16, #tpu.memory_space<vmem>>, %arg6: memref<560x160xbf16, #tpu.memory_space<vmem>>, %arg7: memref<1x160xf32, #tpu.memory_space<vmem>>, %arg8: memref<40x108xbf16, #tpu.memory_space<vmem>>, %arg9: memref<160x80xbf16, #tpu.memory_space<vmem>>, %arg10: memref<400x128xbf16, #tpu.memory_space<vmem>>, %arg11: memref<1x128xf32, #tpu.memory_space<vmem>>, %arg12: memref<8x36xbf16, #tpu.memory_space<vmem>>, %arg13: memref<128x128xbf16, #tpu.memory_space<vmem>>, %arg14: memref<1x128xf32, #tpu.memory_space<vmem>>, %arg15: memref<128x128xbf16, #tpu.memory_space<vmem>>, %arg16: memref<1x128xf32, #tpu.memory_space<vmem>>, %arg17: memref<8x128xf32, #tpu.memory_space<vmem>>, %arg18: memref<8x128xf32, #tpu.memory_space<vmem>>) attributes {dimension_semantics = [#tpu.dimension_semantics<parallel>], iteration_bounds = array<i64: 2>, scalar_prefetch = 0 : i64, scratch_operands = 0 : i64, tpu.core_type = #tpu.core_type<tc>, window_params = [{transform_indices = @transform_0, window_bounds = array<i64: 256, 32>}, {pipeline_mode = #tpu.pipeline_mode<synchronous>, transform_indices = @transform_1, window_bounds = array<i64: 160, 224>}, {pipeline_mode = #tpu.pipeline_mode<synchronous>, transform_indices = @transform_2, window_bounds = array<i64: 1, 224>}, {pipeline_mode = #tpu.pipeline_mode<synchronous>, transform_indices = @transform_3, window_bounds = array<i64: 112, 252>}, {pipeline_mode = #tpu.pipeline_mode<synchronous>, transform_indices = @transform_4, window_bounds = array<i64: 224, 112>}, {pipeline_mode = #tpu.pipeline_mode<synchronous>, transform_indices = @transform_5, window_bounds = array<i64: 560, 160>}, {pipeline_mode = #tpu.pipeline_mode<synchronous>, transform_indices = @transform_6, window_bounds = array<i64: 1, 160>}, {pipeline_mode = #tpu.pipeline_mode<synchronous>, transform_indices = @transform_7, window_bounds = array<i64: 40, 108>}, {pipeline_mode = #tpu.pipeline_mode<synchronous>, transform_indices = @transform_8, window_bounds = array<i64: 160, 80>}, {pipeline_mode = #tpu.pipeline_mode<synchronous>, transform_indices = @transform_9, window_bounds = array<i64: 400, 128>}, {pipeline_mode = #tpu.pipeline_mode<synchronous>, transform_indices = @transform_10, window_bounds = array<i64: 1, 128>}, {pipeline_mode = #tpu.pipeline_mode<synchronous>, transform_indices = @transform_11, window_bounds = array<i64: 8, 36>}, {pipeline_mode = #tpu.pipeline_mode<synchronous>, transform_indices = @transform_12, window_bounds = array<i64: 128, 128>}, {pipeline_mode = #tpu.pipeline_mode<synchronous>, transform_indices = @transform_13, window_bounds = array<i64: 1, 128>}, {pipeline_mode = #tpu.pipeline_mode<synchronous>, transform_indices = @transform_14, window_bounds = array<i64: 128, 128>}, {pipeline_mode = #tpu.pipeline_mode<synchronous>, transform_indices = @transform_15, window_bounds = array<i64: 1, 128>}, {transform_indices = @transform_16, window_bounds = array<i64: 8, 128>}, {transform_indices = @transform_17, window_bounds = array<i64: 8, 128>}]} {
    %c0 = arith.constant 0 : index
    %c0_0 = arith.constant 0 : index
    %0 = vector.load %arg1[%c0, %c0_0] : memref<256x32xf32, #tpu.memory_space<vmem>>, vector<256x32xf32>
    %1 = arith.truncf %0 : vector<256x32xf32> to vector<256x32xbf16>
    %2 = vector.extract_strided_slice %1 {offsets = [0, 0], sizes = [252, 32], strides = [1, 1]} : vector<256x32xbf16> to vector<252x32xbf16>
    %3 = vector.extract_strided_slice %1 {offsets = [1, 0], sizes = [252, 32], strides = [1, 1]} : vector<256x32xbf16> to vector<252x32xbf16>
    %4 = vector.extract_strided_slice %1 {offsets = [2, 0], sizes = [252, 32], strides = [1, 1]} : vector<256x32xbf16> to vector<252x32xbf16>
    %5 = vector.extract_strided_slice %1 {offsets = [3, 0], sizes = [252, 32], strides = [1, 1]} : vector<256x32xbf16> to vector<252x32xbf16>
    %6 = vector.extract_strided_slice %1 {offsets = [4, 0], sizes = [252, 32], strides = [1, 1]} : vector<256x32xbf16> to vector<252x32xbf16>
    %7 = tpu.concatenate %2, %3, %4, %5, %6 in 1 : vector<252x32xbf16>, vector<252x32xbf16>, vector<252x32xbf16>, vector<252x32xbf16>, vector<252x32xbf16> -> vector<252x160xbf16>
    %c0_1 = arith.constant 0 : index
    %c0_2 = arith.constant 0 : index
    %8 = vector.load %arg2[%c0_1, %c0_2] : memref<160x224xbf16, #tpu.memory_space<vmem>>, vector<160x224xbf16>
    %cst = arith.constant dense<0.000000e+00> : vector<252x224xf32>
    %9 = tpu.matmul %7, %8, %cst {dimension_numbers = #tpu.dot_dimension_numbers<[1], [0], [0], [1], [0, 0, 1, 1], [], []>} : vector<252x160xbf16>, vector<160x224xbf16>, vector<252x224xf32> -> vector<252x224xf32>
    %c0_3 = arith.constant 0 : index
    %c0_4 = arith.constant 0 : index
    %10 = vector.load %arg3[%c0_3, %c0_4] : memref<1x224xf32, #tpu.memory_space<vmem>>, vector<1x224xf32>
    %11 = vector.broadcast %10 : vector<1x224xf32> to vector<252x224xf32>
    %12 = arith.addf %9, %11 : vector<252x224xf32>
    %13 = math.tanh %12 : vector<252x224xf32>
    %14 = arith.truncf %13 : vector<252x224xf32> to vector<252x224xbf16>
    %c0_5 = arith.constant 0 : index
    %c0_6 = arith.constant 0 : index
    %15 = vector.load %arg4[%c0_5, %c0_6] : memref<112x252xbf16, #tpu.memory_space<vmem>>, vector<112x252xbf16>
    %cst_7 = arith.constant dense<0.000000e+00> : vector<112x224xf32>
    %16 = tpu.matmul %15, %14, %cst_7 {dimension_numbers = #tpu.dot_dimension_numbers<[1], [0], [0], [1], [0, 0, 1, 1], [], []>} : vector<112x252xbf16>, vector<252x224xbf16>, vector<112x224xf32> -> vector<112x224xf32>
    %c0_8 = arith.constant 0 : index
    %c0_9 = arith.constant 0 : index
    %17 = vector.load %arg5[%c0_8, %c0_9] : memref<224x112xbf16, #tpu.memory_space<vmem>>, vector<224x112xbf16>
    %18 = arith.truncf %16 : vector<112x224xf32> to vector<112x224xbf16>
    %cst_10 = arith.constant dense<0.000000e+00> : vector<112x112xf32>
    %19 = tpu.matmul %18, %17, %cst_10 {dimension_numbers = #tpu.dot_dimension_numbers<[1], [0], [0], [1], [0, 0, 1, 1], [], []>} : vector<112x224xbf16>, vector<224x112xbf16>, vector<112x112xf32> -> vector<112x112xf32>
    %20 = arith.truncf %19 : vector<112x112xf32> to vector<112x112xbf16>
    %21 = vector.extract_strided_slice %20 {offsets = [0, 0], sizes = [108, 112], strides = [1, 1]} : vector<112x112xbf16> to vector<108x112xbf16>
    %22 = vector.extract_strided_slice %20 {offsets = [1, 0], sizes = [108, 112], strides = [1, 1]} : vector<112x112xbf16> to vector<108x112xbf16>
    %23 = vector.extract_strided_slice %20 {offsets = [2, 0], sizes = [108, 112], strides = [1, 1]} : vector<112x112xbf16> to vector<108x112xbf16>
    %24 = vector.extract_strided_slice %20 {offsets = [3, 0], sizes = [108, 112], strides = [1, 1]} : vector<112x112xbf16> to vector<108x112xbf16>
    %25 = vector.extract_strided_slice %20 {offsets = [4, 0], sizes = [108, 112], strides = [1, 1]} : vector<112x112xbf16> to vector<108x112xbf16>
    %26 = tpu.concatenate %21, %22, %23, %24, %25 in 1 : vector<108x112xbf16>, vector<108x112xbf16>, vector<108x112xbf16>, vector<108x112xbf16>, vector<108x112xbf16> -> vector<108x560xbf16>
    %c0_11 = arith.constant 0 : index
    %c0_12 = arith.constant 0 : index
    %27 = vector.load %arg6[%c0_11, %c0_12] : memref<560x160xbf16, #tpu.memory_space<vmem>>, vector<560x160xbf16>
    %cst_13 = arith.constant dense<0.000000e+00> : vector<108x160xf32>
    %28 = tpu.matmul %26, %27, %cst_13 {dimension_numbers = #tpu.dot_dimension_numbers<[1], [0], [0], [1], [0, 0, 1, 1], [], []>} : vector<108x560xbf16>, vector<560x160xbf16>, vector<108x160xf32> -> vector<108x160xf32>
    %c0_14 = arith.constant 0 : index
    %c0_15 = arith.constant 0 : index
    %29 = vector.load %arg7[%c0_14, %c0_15] : memref<1x160xf32, #tpu.memory_space<vmem>>, vector<1x160xf32>
    %30 = vector.broadcast %29 : vector<1x160xf32> to vector<108x160xf32>
    %31 = arith.addf %28, %30 : vector<108x160xf32>
    %32 = math.tanh %31 : vector<108x160xf32>
    %33 = arith.truncf %32 : vector<108x160xf32> to vector<108x160xbf16>
    %c0_16 = arith.constant 0 : index
    %c0_17 = arith.constant 0 : index
    %34 = vector.load %arg8[%c0_16, %c0_17] : memref<40x108xbf16, #tpu.memory_space<vmem>>, vector<40x108xbf16>
    %cst_18 = arith.constant dense<0.000000e+00> : vector<40x160xf32>
    %35 = tpu.matmul %34, %33, %cst_18 {dimension_numbers = #tpu.dot_dimension_numbers<[1], [0], [0], [1], [0, 0, 1, 1], [], []>} : vector<40x108xbf16>, vector<108x160xbf16>, vector<40x160xf32> -> vector<40x160xf32>
    %c0_19 = arith.constant 0 : index
    %c0_20 = arith.constant 0 : index
    %36 = vector.load %arg9[%c0_19, %c0_20] : memref<160x80xbf16, #tpu.memory_space<vmem>>, vector<160x80xbf16>
    %37 = arith.truncf %35 : vector<40x160xf32> to vector<40x160xbf16>
    %cst_21 = arith.constant dense<0.000000e+00> : vector<40x80xf32>
    %38 = tpu.matmul %37, %36, %cst_21 {dimension_numbers = #tpu.dot_dimension_numbers<[1], [0], [0], [1], [0, 0, 1, 1], [], []>} : vector<40x160xbf16>, vector<160x80xbf16>, vector<40x80xf32> -> vector<40x80xf32>
    %39 = arith.truncf %38 : vector<40x80xf32> to vector<40x80xbf16>
    %40 = vector.extract_strided_slice %39 {offsets = [0, 0], sizes = [36, 80], strides = [1, 1]} : vector<40x80xbf16> to vector<36x80xbf16>
    %41 = vector.extract_strided_slice %39 {offsets = [1, 0], sizes = [36, 80], strides = [1, 1]} : vector<40x80xbf16> to vector<36x80xbf16>
    %42 = vector.extract_strided_slice %39 {offsets = [2, 0], sizes = [36, 80], strides = [1, 1]} : vector<40x80xbf16> to vector<36x80xbf16>
    %43 = vector.extract_strided_slice %39 {offsets = [3, 0], sizes = [36, 80], strides = [1, 1]} : vector<40x80xbf16> to vector<36x80xbf16>
    %44 = vector.extract_strided_slice %39 {offsets = [4, 0], sizes = [36, 80], strides = [1, 1]} : vector<40x80xbf16> to vector<36x80xbf16>
    %45 = tpu.concatenate %40, %41, %42, %43, %44 in 1 : vector<36x80xbf16>, vector<36x80xbf16>, vector<36x80xbf16>, vector<36x80xbf16>, vector<36x80xbf16> -> vector<36x400xbf16>
    %c0_22 = arith.constant 0 : index
    %c0_23 = arith.constant 0 : index
    %46 = vector.load %arg10[%c0_22, %c0_23] : memref<400x128xbf16, #tpu.memory_space<vmem>>, vector<400x128xbf16>
    %cst_24 = arith.constant dense<0.000000e+00> : vector<36x128xf32>
    %47 = tpu.matmul %45, %46, %cst_24 {dimension_numbers = #tpu.dot_dimension_numbers<[1], [0], [0], [1], [0, 0, 1, 1], [], []>} : vector<36x400xbf16>, vector<400x128xbf16>, vector<36x128xf32> -> vector<36x128xf32>
    %c0_25 = arith.constant 0 : index
    %c0_26 = arith.constant 0 : index
    %48 = vector.load %arg11[%c0_25, %c0_26] : memref<1x128xf32, #tpu.memory_space<vmem>>, vector<1x128xf32>
    %49 = vector.broadcast %48 : vector<1x128xf32> to vector<36x128xf32>
    %50 = arith.addf %47, %49 : vector<36x128xf32>
    %51 = math.tanh %50 : vector<36x128xf32>
    %52 = arith.truncf %51 : vector<36x128xf32> to vector<36x128xbf16>
    %c0_27 = arith.constant 0 : index
    %c0_28 = arith.constant 0 : index
    %53 = vector.load %arg12[%c0_27, %c0_28] : memref<8x36xbf16, #tpu.memory_space<vmem>>, vector<8x36xbf16>
    %cst_29 = arith.constant dense<0.000000e+00> : vector<8x128xf32>
    %54 = tpu.matmul %53, %52, %cst_29 {dimension_numbers = #tpu.dot_dimension_numbers<[1], [0], [0], [1], [0, 0, 1, 1], [], []>} : vector<8x36xbf16>, vector<36x128xbf16>, vector<8x128xf32> -> vector<8x128xf32>
    %c0_30 = arith.constant 0 : index
    %c0_31 = arith.constant 0 : index
    %55 = vector.load %arg13[%c0_30, %c0_31] : memref<128x128xbf16, #tpu.memory_space<vmem>>, vector<128x128xbf16>
    %56 = arith.truncf %54 : vector<8x128xf32> to vector<8x128xbf16>
    %cst_32 = arith.constant dense<0.000000e+00> : vector<8x128xf32>
    %57 = tpu.matmul %56, %55, %cst_32 {dimension_numbers = #tpu.dot_dimension_numbers<[1], [0], [0], [1], [0, 0, 1, 1], [], []>} : vector<8x128xbf16>, vector<128x128xbf16>, vector<8x128xf32> -> vector<8x128xf32>
    %c0_33 = arith.constant 0 : index
    %c0_34 = arith.constant 0 : index
    %58 = vector.load %arg14[%c0_33, %c0_34] : memref<1x128xf32, #tpu.memory_space<vmem>>, vector<1x128xf32>
    %59 = vector.broadcast %58 : vector<1x128xf32> to vector<8x128xf32>
    %60 = arith.addf %57, %59 : vector<8x128xf32>
    %61 = math.tanh %60 : vector<8x128xf32>
    %c0_35 = arith.constant 0 : index
    %c0_36 = arith.constant 0 : index
    %62 = vector.load %arg15[%c0_35, %c0_36] : memref<128x128xbf16, #tpu.memory_space<vmem>>, vector<128x128xbf16>
    %63 = arith.truncf %61 : vector<8x128xf32> to vector<8x128xbf16>
    %cst_37 = arith.constant dense<0.000000e+00> : vector<8x128xf32>
    %64 = tpu.matmul %63, %62, %cst_37 {dimension_numbers = #tpu.dot_dimension_numbers<[1], [0], [0], [1], [0, 0, 1, 1], [], []>} : vector<8x128xbf16>, vector<128x128xbf16>, vector<8x128xf32> -> vector<8x128xf32>
    %c0_38 = arith.constant 0 : index
    %c0_39 = arith.constant 0 : index
    %65 = vector.load %arg16[%c0_38, %c0_39] : memref<1x128xf32, #tpu.memory_space<vmem>>, vector<1x128xf32>
    %66 = vector.broadcast %65 : vector<1x128xf32> to vector<8x128xf32>
    %67 = arith.addf %64, %66 : vector<8x128xf32>
    %68 = tpu.iota {dimensions = array<i32: 1>} : vector<8x128xi32>
    %c10_i32 = arith.constant 10 : i32
    %69 = vector.broadcast %c10_i32 : i32 to vector<8x128xi32>
    %70 = arith.cmpi slt, %68, %69 : vector<8x128xi32>
    %cst_40 = arith.constant 0xFF800000 : f32
    %71 = vector.broadcast %cst_40 : f32 to vector<8x128xf32>
    %72 = arith.select %70, %67, %71 : vector<8x128xi1>, vector<8x128xf32>
    %cst_41 = arith.constant dense<0xFF800000> : vector<8xf32>
    %73 = vector.multi_reduction <maximumf>, %72, %cst_41 [1] : vector<8x128xf32> to vector<8xf32>
    %74 = vector.shape_cast %73 : vector<8xf32> to vector<8x1xf32>
    %75 = vector.broadcast %74 : vector<8x1xf32> to vector<8x128xf32>
    %76 = arith.subf %72, %75 : vector<8x128xf32>
    %77 = math.exp %76 : vector<8x128xf32>
    %cst_42 = arith.constant 0.000000e+00 : f32
    %78 = vector.broadcast %cst_42 : f32 to vector<8x128xf32>
    %79 = arith.select %70, %77, %78 : vector<8x128xi1>, vector<8x128xf32>
    %cst_43 = arith.constant dense<0.000000e+00> : vector<8xf32>
    %80 = vector.multi_reduction <add>, %79, %cst_43 [1] : vector<8x128xf32> to vector<8xf32>
    %81 = vector.shape_cast %80 : vector<8xf32> to vector<8x1xf32>
    %82 = tpu.reciprocal %81 {approx = true} : vector<8x1xf32> -> vector<8x1xf32>
    %83 = vector.broadcast %82 : vector<8x1xf32> to vector<8x128xf32>
    %84 = arith.mulf %79, %83 : vector<8x128xf32>
    %c0_44 = arith.constant 0 : index
    %c0_45 = arith.constant 0 : index
    %85 = vector.load %arg17[%c0_44, %c0_45] : memref<8x128xf32, #tpu.memory_space<vmem>>, vector<8x128xf32>
    tpu.vector_store %arg17[%c0_44, %c0_45], %67 {strides = array<i32>} : memref<8x128xf32, #tpu.memory_space<vmem>>, vector<8x128xf32>,
    %c0_46 = arith.constant 0 : index
    %c0_47 = arith.constant 0 : index
    %86 = vector.load %arg18[%c0_46, %c0_47] : memref<8x128xf32, #tpu.memory_space<vmem>>, vector<8x128xf32>
    tpu.vector_store %arg18[%c0_46, %c0_47], %84 {strides = array<i32>} : memref<8x128xf32, #tpu.memory_space<vmem>>, vector<8x128xf32>,
    return
  }
  func.func @transform_0(%arg0: i32) -> (i32, i32) {
    %c0_i32 = arith.constant 0 : i32
    %c0_i32_0 = arith.constant 0 : i32
    return %arg0, %c0_i32 : i32, i32
  }
  func.func @transform_1(%arg0: i32) -> (i32, i32) {
    %c0_i32 = arith.constant 0 : i32
    %c0_i32_0 = arith.constant 0 : i32
    %c0_i32_1 = arith.constant 0 : i32
    return %c0_i32, %c0_i32_0 : i32, i32
  }
  func.func @transform_2(%arg0: i32) -> (i32, i32) {
    %c0_i32 = arith.constant 0 : i32
    %c0_i32_0 = arith.constant 0 : i32
    %c0_i32_1 = arith.constant 0 : i32
    return %c0_i32, %c0_i32_0 : i32, i32
  }
  func.func @transform_3(%arg0: i32) -> (i32, i32) {
    %c0_i32 = arith.constant 0 : i32
    %c0_i32_0 = arith.constant 0 : i32
    %c0_i32_1 = arith.constant 0 : i32
    return %c0_i32, %c0_i32_0 : i32, i32
  }
  func.func @transform_4(%arg0: i32) -> (i32, i32) {
    %c0_i32 = arith.constant 0 : i32
    %c0_i32_0 = arith.constant 0 : i32
    %c0_i32_1 = arith.constant 0 : i32
    return %c0_i32, %c0_i32_0 : i32, i32
  }
  func.func @transform_5(%arg0: i32) -> (i32, i32) {
    %c0_i32 = arith.constant 0 : i32
    %c0_i32_0 = arith.constant 0 : i32
    %c0_i32_1 = arith.constant 0 : i32
    return %c0_i32, %c0_i32_0 : i32, i32
  }
  func.func @transform_6(%arg0: i32) -> (i32, i32) {
    %c0_i32 = arith.constant 0 : i32
    %c0_i32_0 = arith.constant 0 : i32
    %c0_i32_1 = arith.constant 0 : i32
    return %c0_i32, %c0_i32_0 : i32, i32
  }
  func.func @transform_7(%arg0: i32) -> (i32, i32) {
    %c0_i32 = arith.constant 0 : i32
    %c0_i32_0 = arith.constant 0 : i32
    %c0_i32_1 = arith.constant 0 : i32
    return %c0_i32, %c0_i32_0 : i32, i32
  }
  func.func @transform_8(%arg0: i32) -> (i32, i32) {
    %c0_i32 = arith.constant 0 : i32
    %c0_i32_0 = arith.constant 0 : i32
    %c0_i32_1 = arith.constant 0 : i32
    return %c0_i32, %c0_i32_0 : i32, i32
  }
  func.func @transform_9(%arg0: i32) -> (i32, i32) {
    %c0_i32 = arith.constant 0 : i32
    %c0_i32_0 = arith.constant 0 : i32
    %c0_i32_1 = arith.constant 0 : i32
    return %c0_i32, %c0_i32_0 : i32, i32
  }
  func.func @transform_10(%arg0: i32) -> (i32, i32) {
    %c0_i32 = arith.constant 0 : i32
    %c0_i32_0 = arith.constant 0 : i32
    %c0_i32_1 = arith.constant 0 : i32
    return %c0_i32, %c0_i32_0 : i32, i32
  }
  func.func @transform_11(%arg0: i32) -> (i32, i32) {
    %c0_i32 = arith.constant 0 : i32
    %c0_i32_0 = arith.constant 0 : i32
    %c0_i32_1 = arith.constant 0 : i32
    return %c0_i32, %c0_i32_0 : i32, i32
  }
  func.func @transform_12(%arg0: i32) -> (i32, i32) {
    %c0_i32 = arith.constant 0 : i32
    %c0_i32_0 = arith.constant 0 : i32
    %c0_i32_1 = arith.constant 0 : i32
    return %c0_i32, %c0_i32_0 : i32, i32
  }
  func.func @transform_13(%arg0: i32) -> (i32, i32) {
    %c0_i32 = arith.constant 0 : i32
    %c0_i32_0 = arith.constant 0 : i32
    %c0_i32_1 = arith.constant 0 : i32
    return %c0_i32, %c0_i32_0 : i32, i32
  }
  func.func @transform_14(%arg0: i32) -> (i32, i32) {
    %c0_i32 = arith.constant 0 : i32
    %c0_i32_0 = arith.constant 0 : i32
    %c0_i32_1 = arith.constant 0 : i32
    return %c0_i32, %c0_i32_0 : i32, i32
  }
  func.func @transform_15(%arg0: i32) -> (i32, i32) {
    %c0_i32 = arith.constant 0 : i32
    %c0_i32_0 = arith.constant 0 : i32
    %c0_i32_1 = arith.constant 0 : i32
    return %c0_i32, %c0_i32_0 : i32, i32
  }
  func.func @transform_16(%arg0: i32) -> (i32, i32) {
    %c0_i32 = arith.constant 0 : i32
    %c0_i32_0 = arith.constant 0 : i32
    return %arg0, %c0_i32 : i32, i32
  }
  func.func @transform_17(%arg0: i32) -> (i32, i32) {
    %c0_i32 = arith.constant 0 : i32
    %c0_i32_0 = arith.constant 0 : i32
    return %arg0, %c0_i32 : i32, i32
  }
}

</mosaic_0001>

<bundles_post_ra>
// kernel: lenet5_forward.1
= control target key start
LH: loop header
LB: loop body
LE: loop exit
PB: predicated region body
PF: predicated region fallthrough
CT: control target
= control target key end

     0   :  { %s7417_s0 = inlined_call_operand.vmem [shape: f32[512,32], index: 0, kind: input, shape index: {}]   ;;  %s7418_s1 = inlined_call_operand.vmem [shape: bf16[160,224], index: 1, kind: input, shape index: {}]   ;;  %s7419_s2 = inlined_call_operand.hbm [shape: f32[1,224], index: 2, kind: input, shape index: {}]   ;;  %s7420_s3 = inlined_call_operand.vmem [shape: bf16[112,252], index: 3, kind: input, shape index: {}]   ;;  %s7421_s4 = inlined_call_operand.hbm [shape: bf16[224,112], index: 4, kind: input, shape index: {}]   ;;  %s7422_s5 = inlined_call_operand.vmem [shape: bf16[560,160], index: 5, kind: input, shape index: {}]   ;;  %s7423_s6 = inlined_call_operand.hbm [shape: f32[1,160], index: 6, kind: input, shape index: {}]   ;;  %s7424_s7 = inlined_call_operand.hbm [shape: bf16[40,108], index: 7, kind: input, shape index: {}]   ;;  %s7425_s8 = inlined_call_operand.hbm [shape: bf16[160,80], index: 8, kind: input, shape index: {}]   ;;  %s7426_s9 = inlined_call_operand.vmem [shape: bf16[400,128], index: 9, kind: input, shape index: {}]   ;;  %s7427_s10 = inlined_call_operand.vmem [shape: f32[1,128], index: 10, kind: input, shape index: {}]   ;;  %s7428_s11 = inlined_call_operand.vmem [shape: bf16[8,36], index: 11, kind: input, shape index: {}]   ;;  %s7429_s12 = inlined_call_operand.hbm [shape: bf16[128,128], index: 12, kind: input, shape index: {}]   ;;  %s7430_s13 = inlined_call_operand.hbm [shape: f32[1,128], index: 13, kind: input, shape index: {}]   ;;  %s7431_s14 = inlined_call_operand.hbm [shape: bf16[128,128], index: 14, kind: input, shape index: {}]   ;;  %s7432_s15 = inlined_call_operand.hbm [shape: f32[1,128], index: 15, kind: input, shape index: {}]   ;;  %s7433_s16 = inlined_call_operand.hbm [shape: f32[16,128], index: 16, kind: output, shape index: {0}]   ;;  %s7434_s17 = inlined_call_operand.hbm [shape: f32[16,128], index: 17, kind: output, shape index: {1}]  }
   0x1   :  { %7450 = sst [smem:[#allocation33_spill]] %s7417_s0 }
   0x2   :  { %7451 = sst [smem:[#allocation34_spill]] %s7418_s1 }
   0x3   :  { %7452 = sst [smem:[#allocation35_spill]] %s7419_s2 }
   0x4   :  { %7453 = sst [smem:[#allocation36_spill]] %s7421_s4 }
   0x5   :  { %7454 = sst [smem:[#allocation37_spill]] %s7434_s17 }
   0x6   :  { %23 = vsyncpa [#allocation3], 0 }
   0x7   :  { %24 = vsyncpa [#allocation6], 0 }
   0x8   :  { %25 = vsyncpa [#allocation9], 0 }
   0x9   :  { %26 = vsyncpa [#allocation12], 0 }
   0xa   :  { %27 = vsyncpa [#allocation15], 0 }
   0xb   :  { %28 = vsyncpa [#allocation4], 0 }
   0xc   :  { %30 = vsyncpa [#allocation4 + $0x1], 0 }
   0xd   :  { %31 = vsyncpa [#allocation19], 0 }
   0xe   :  { %33 = vsyncpa [#allocation19 + $0x1], 0  ;;  %s5767_s24 = smov 0   ;;  %s5769_s25 = smov 0  }
   0xf   :  { %s5771_s26 = smov 0   ;;  %s5773_s27 = smov 0  }
  0x10 LB: > { %7455 = sst [smem:[#allocation27_spill]] %s5642_s24  ;;  %s5788_s28 = sadd.s32 4294967295, %s5654_s27   ;;  %s5654_s27 = sphi %s5773_s27, %s7490_s27   ;;  %s5650_s26 = sphi %s5771_s26, %s7492_s26   ;;  %s5646_s25 = sphi %s5769_s25, %s7494_s25   ;;  %s5642_s24 = sphi %s5767_s24, %s7493_s24  }
  0x11   : > { %7456 = sst [smem:[#allocation28_spill]] %s5650_s26  ;;  %s4379_s29 = sadd.s32 4294967294, %s5654_s27  }
  0x12   : > { %7457 = sst [smem:[#allocation29_spill]] %s5654_s27  ;;  %s5792_s0 = sadd.s32 1, %s5654_s27  }
  0x13   : > { %7458 = sst [smem:[#allocation30_spill]] %s5792_s0  ;;  %s387_s30 = sadd.s32 1, %s5650_s26 }
  0x14   : > { %s384_s18 = ssub.s32 %s5654_s27, %s5792_s0  ;;  %p397_p0 = scmp.ne.s32.totalorder %s5650_s26, %s5646_s25 }
  0x15   : > { %p385_p1 = scmp.eq.s32.totalorder %s384_s18, 0  ;;  %p398_p2 = scmp.eq.s32.totalorder %s5788_s28, 1 }
  0x16   : > { %p403_p3 = scmp.ne.s32.totalorder %s5646_s25, %s5642_s24  ;;  %p404_p4 = scmp.eq.s32.totalorder %s4379_s29, 1 }
  0x17   : > { %s5803_s19 = scalar_select %p385_p1, %s5650_s26, %s387_s30  }
  0x18   : > { %p5805_p5 = por %p398_p2, %p397_p0  ;;  %p5809_p6 = por %p404_p4, %p403_p3 }
  0x19   : > { %7459 = sst [smem:[#allocation31_spill]] %s5803_s19  ;;  %p4380_p7 = scmp.ge.s32.totalorder %s5654_s27, 1 }
  0x1a   : > { %s7460_s1 = scalar_select %p5805_p5, 1, 0 }
  0x1b   : > { %s7461_s20 = scalar_select %p5809_p6, 1, 0 }
  0x1c   : > { %p437_p8 = scmp.lt.s32.totalorder %s5654_s27, 3  ;;  %p7443_p9 = scmp.eq.s32.totalorder %s5788_s28, 0 }
  0x1d   : > { %7462 = sst [smem:[#allocation32_spill]] %s7461_s20  ;;  %s5656_s22 = smov [#allocation5]  }
  0x1e   : > { %p5816_p10 = pnand %p4380_p7, %p437_p8  ;;  %s466_s23 = sshll.u32 %s5656_s22, 4  ;;  %s467_s23 = int_to_ptr.vmem [resolvable:$true] %s466_s23 }
  0x1f   : > { %s5657_s30 = smov [#allocation8]   ;;  %s5658_s19 = smov [#allocation11]  }
  0x20   : > { %s7463_s21 = scalar_select %p5816_p10, 1, 0 }
  0x21   : > { %p4781_p11 = pneg %p5816_p10  ;;  %s493_s18 = sshll.u32 %s5657_s30, 4  ;;  %s494_s18 = int_to_ptr.vmem [resolvable:$true] %s493_s18 }
  0x22   : > { %s528_s26 = sshll.u32 %s5658_s19, 4  ;;  %s5321_s22 = scalar_lea.vmem %s467_s23, 1792  ;;  %s529_s26 = int_to_ptr.vmem [resolvable:$true] %s528_s26 }
  0x23   : > { %p5824_p12 = pnand %p7443_p9, %p4781_p11  ;;  %p5322_p0 = scmp.ne.s32.totalorder %s467_s23, %s5321_s22 }
  0x24   : > { %p5329_p3 = scmp.lt.s32.totalorder %s467_s23, %s467_s23  ;;  %p5330_p4 = scmp.lt.s32.totalorder %s5321_s22, %s5321_s22 }
  0x25   : > { %p5830_p13 = pneg %p5824_p12 }
  0x26   : > { %p5331_p7 = por %p5330_p4, %p5329_p3 }
  0x27   : > { %p5324_p1 = pnand %p5322_p0, %p5830_p13 }
  0x29   : > { %p5325_p2 = pneg %p5324_p1 }
  0x2b   : > { %p5332_p8 = pnand %p5331_p7, %p5325_p2 }
  0x2d   : > { %5335 = shalt.err (!%p5332_p8)
}
  0x2e   : > { %s5659_s30 = smov 64   ;;  %s5660_s19 = smov 4  }
  0x2f   : > { %s7466_s4 = sld [smem:[#allocation36_spill]]  ;;  %s5347_s27 = scalar_lea.vmem %s494_s18, 320 }
  0x30   : > { %p5348_p11 = scmp.ne.s32.totalorder %s494_s18, %s5347_s27  ;;  %p5355_p3 = scmp.lt.s32.totalorder %s494_s18, %s494_s18 }
  0x31   : > { %p5356_p2 = scmp.lt.s32.totalorder %s5347_s27, %s5347_s27 }
  0x32   : > { %p5350_p0 = pnand %p5348_p11, %p5830_p13 }
  0x33   : > { %p5357_p4 = por %p5356_p2, %p5355_p3 }
  0x34   : > { %p5351_p1 = pneg %p5350_p0 }
  0x35   : > { %4787 = dma.hbm_to_vmem [thread:$0]  (!%p5824_p12), %s7466_s4, 1792, %s467_s23, [#allocation6], %s5659_s30, %s5659_s30, %s5660_s19  }
  0x36   : > { %p5358_p7 = pnand %p5357_p4, %p5351_p1 }
  0x38   : > { %5361 = shalt.err (!%p5358_p7)
}
  0x39   : > { %4793 = dma.hbm_to_vmem [thread:$0]  (!%p5824_p12), %s7424_s7, 320, %s494_s18, [#allocation9], %s5659_s30, %s5659_s30, %s5660_s19  }
  0x3a   : > { %s5373_s24 = scalar_lea.vmem %s529_s26, 1024  ;;  %p5381_p9 = scmp.lt.s32.totalorder %s529_s26, %s529_s26 }
  0x3b   : > { %p5374_p8 = scmp.ne.s32.totalorder %s529_s26, %s5373_s24  ;;  %p5382_p3 = scmp.lt.s32.totalorder %s5373_s24, %s5373_s24 }
  0x3d   : > { %p5376_p11 = pnand %p5374_p8, %p5830_p13  ;;  %p5383_p1 = por %p5382_p3, %p5381_p9 }
  0x3f   : > { %p5377_p0 = pneg %p5376_p11 }
  0x41   : > { %p5384_p2 = pnand %p5383_p1, %p5377_p0 }
  0x43   : > { %5387 = shalt.err (!%p5384_p2)
}
  0x44   : > { %4799 = dma.hbm_to_vmem [thread:$0]  (!%p5824_p12), %s7429_s12, 1024, %s529_s26, [#allocation12], %s5659_s30, %s5659_s30, %s5660_s19  }
  0x45   : > { %s5661_s20 = smov [#allocation14]   ;;  %s5662_s18 = smov [#allocation2]  }
  0x46   : > { %s552_s23 = sshll.u32 %s5661_s20, 4  ;;  %s453_s22 = sshll.u32 %s5662_s18, 4  ;;  %s553_s23 = int_to_ptr.vmem [resolvable:$true] %s552_s23  ;;  %s454_s22 = int_to_ptr.vmem [resolvable:$true] %s453_s22 }
  0x47   : > { %s5399_s4 = scalar_lea.vmem %s553_s23, 1024  ;;  %p5407_p8 = scmp.lt.s32.totalorder %s553_s23, %s553_s23 }
  0x48   : > { %p5400_p4 = scmp.ne.s32.totalorder %s553_s23, %s5399_s4  ;;  %p5408_p11 = scmp.lt.s32.totalorder %s5399_s4, %s5399_s4 }
  0x4a   : > { %p5402_p9 = pnand %p5400_p4, %p5830_p13  ;;  %p5409_p0 = por %p5408_p11, %p5407_p8 }
  0x4c   : > { %p5403_p7 = pneg %p5402_p9 }
  0x4e   : > { %p5410_p3 = pnand %p5409_p0, %p5403_p7 }
  0x50   : > { %5413 = shalt.err (!%p5410_p3)
}
  0x51   : > { %4805 = dma.hbm_to_vmem [thread:$0]  (!%p5824_p12), %s7431_s14, 1024, %s553_s23, [#allocation15], %s5659_s30, %s5659_s30, %s5660_s19  }
  0x52   : > { %s5425_s27 = scalar_lea.vmem %s454_s22, 32  ;;  %p5433_p9 = scmp.lt.s32.totalorder %s454_s22, %s454_s22 }
  0x53   : > { %p5426_p1 = scmp.ne.s32.totalorder %s454_s22, %s5425_s27  ;;  %p5434_p8 = scmp.lt.s32.totalorder %s5425_s27, %s5425_s27 }
  0x55   : > { %p5428_p2 = pnand %p5426_p1, %p5830_p13  ;;  %p5435_p7 = por %p5434_p8, %p5433_p9 }
  0x57   : > { %p5429_p4 = pneg %p5428_p2 }
  0x59   : > { %p5436_p11 = pnand %p5435_p7, %p5429_p4 }
  0x5b   : > { %5439 = shalt.err (!%p5436_p11)
}
  0x5c   : > { %s7467_s2 = sld [smem:[#allocation35_spill]]  ;;  %s5663_s20 = smov [#allocation7]  }
  0x5d   : > { %s483_s23 = sshll.u32 %s5663_s20, 4  ;;  %s5664_s18 = smov [#allocation10]   ;;  %s484_s23 = int_to_ptr.vmem [resolvable:$true] %s483_s23 }
  0x5e   : > { %s506_s26 = sshll.u32 %s5664_s18, 4  ;;  %s5451_s24 = scalar_lea.vmem %s484_s23, 32  ;;  %s507_s26 = int_to_ptr.vmem [resolvable:$true] %s506_s26 }
  0x5f   : > { %p5452_p0 = scmp.ne.s32.totalorder %s484_s23, %s5451_s24  ;;  %p5459_p2 = scmp.lt.s32.totalorder %s484_s23, %s484_s23 }
  0x60   : > { %p5460_p4 = scmp.lt.s32.totalorder %s5451_s24, %s5451_s24 }
  0x61   : > { %p5454_p3 = pnand %p5452_p0, %p5830_p13 }
  0x62   : > { %4784 = dma.hbm_to_vmem [thread:$0]  (!%p5824_p12), %s7467_s2, 32, %s454_s22, [#allocation3]  }
  0x63   : > { %p5455_p1 = pneg %p5454_p3  ;;  %p5461_p9 = por %p5460_p4, %p5459_p2 }
  0x65   : > { %p5462_p8 = pnand %p5461_p9, %p5455_p1 }
  0x67   : > { %5465 = shalt.err (!%p5462_p8)
}
  0x68   : > { %4790 = dma.hbm_to_vmem [thread:$0]  (!%p5824_p12), %s7423_s6, 32, %s484_s23, [#allocation6]  }
  0x69   : > { %s5477_s22 = scalar_lea.vmem %s507_s26, 1280  ;;  %p5485_p0 = scmp.lt.s32.totalorder %s507_s26, %s507_s26 }
  0x6a   : > { %p5478_p7 = scmp.ne.s32.totalorder %s507_s26, %s5477_s22  ;;  %p5486_p3 = scmp.lt.s32.totalorder %s5477_s22, %s5477_s22 }
  0x6c   : > { %p5480_p11 = pnand %p5478_p7, %p5830_p13  ;;  %p5487_p5 = por %p5486_p3, %p5485_p0 }
  0x6e   : > { %p5481_p6 = pneg %p5480_p11 }
  0x70   : > { %p5488_p10 = pnand %p5487_p5, %p5481_p6 }
  0x72   : > { %5491 = shalt.err (!%p5488_p10)
}
  0x73   : > { %4796 = dma.hbm_to_vmem [thread:$0]  (!%p5824_p12), %s7425_s8, 1280, %s507_s26, [#allocation9], %s5659_s30, %s5659_s30, %s5660_s19  }
  0x74   : > { %s5665_s23 = smov [#allocation13]   ;;  %s5666_s24 = smov [#allocation16]  }
  0x75   : > { %s542_s18 = sshll.u32 %s5665_s23, 4  ;;  %s566_s27 = sshll.u32 %s5666_s24, 4  ;;  %s543_s18 = int_to_ptr.vmem [resolvable:$true] %s542_s18  ;;  %s567_s27 = int_to_ptr.vmem [resolvable:$true] %s566_s27 }
  0x76   : > { %s5503_s4 = scalar_lea.vmem %s543_s18, 16  ;;  %s5510_s22 = scalar_lea.vmem %s543_s18, 32 }
  0x77   : > { %p5504_p1 = scmp.ne.s32.totalorder %s543_s18, %s5503_s4  ;;  %p5511_p10 = scmp.lt.s32.totalorder %s543_s18, %s543_s18 }
  0x78   : > { %p5512_p2 = scmp.lt.s32.totalorder %s5510_s22, %s5503_s4 }
  0x79   : > { %p5506_p5 = pnand %p5504_p1, %p5830_p13 }
  0x7a   : > { %p5513_p4 = por %p5512_p2, %p5511_p10 }
  0x7b   : > { %p5507_p6 = pneg %p5506_p5 }
  0x7d   : > { %p5514_p9 = pnand %p5513_p4, %p5507_p6 }
  0x7f   : > { %5517 = shalt.err (!%p5514_p9)
}
  0x80   : > { %4802 = dma.hbm_to_vmem [thread:$0]  (!%p5824_p12), %s7430_s13, 16, %s543_s18, [#allocation12]  }
  0x81   : > { %s5529_s19 = scalar_lea.vmem %s567_s27, 16  ;;  %s5536_s26 = scalar_lea.vmem %s567_s27, 32 }
  0x82   : > { %p5530_p8 = scmp.ne.s32.totalorder %s567_s27, %s5529_s19  ;;  %p5537_p0 = scmp.lt.s32.totalorder %s567_s27, %s567_s27 }
  0x83   : > { %p5538_p3 = scmp.lt.s32.totalorder %s5536_s26, %s5529_s19 }
  0x84   : > { %p5532_p7 = pnand %p5530_p8, %p5830_p13 }
  0x85   : > { %p5539_p1 = por %p5538_p3, %p5537_p0 }
  0x86   : > { %p5533_p11 = pneg %p5532_p7 }
  0x88   : > { %p5540_p5 = pnand %p5539_p1, %p5533_p11 }
  0x8a   : > { %5543 = shalt.err (!%p5540_p5)
}
  0x8b   : > { %4808 = dma.hbm_to_vmem [thread:$0]  (!%p5824_p12), %s7432_s15, 16, %s567_s27, [#allocation15]  }
  0x8c   : > { %p7468_p6 = scmp.ne.s32.totalorder %s7463_s21, 0 }
  0x8d   : > { %p7469_p10 = scmp.eq.s32.totalorder (!%p7468_p6), %s5788_s28, 0 }
  0x8e   : > { %588 = sbr.rel (%p7468_p6) target bundleno = 3284 (0xcd4), region = 84 }
  0x93   : > { %5613 = dma.done.wait (%p7469_p10), [#allocation3], 32   ;;  %p7470_p13 = pmov %p7469_p10 }
  0x94   : > { %p7471_p2 = pmov %p7469_p10 }
  0x95   : > { %5615 = vsyncadd (%p7470_p13), [#allocation3], 4294967264 }
  0x96   : > { %5617 = dma.done.wait (%p7471_p2), [#allocation6], 1824   ;;  %p7472_p4 = pmov %p7471_p2 }
  0x97   : > { %p7473_p9 = pmov %p7471_p2 }
  0x98   : > { %5619 = vsyncadd (%p7472_p4), [#allocation6], 4294965472 }
  0x99   : > { %5621 = dma.done.wait (%p7473_p9), [#allocation9], 1600   ;;  %p7474_p12 = pmov %p7471_p2 }
  0x9a   : > { %p7475_p8 = pmov %p7471_p2 }
  0x9b   : > { %5623 = vsyncadd (%p7474_p12), [#allocation9], 4294965696 }
  0x9c   : > { %5625 = dma.done.wait (%p7475_p8), [#allocation12], 1040   ;;  %p7476_p7 = pmov %p7471_p2 }
  0x9d   : > { %p7477_p11 = pmov %p7471_p2 }
  0x9e   : > { %5627 = vsyncadd (%p7476_p7), [#allocation12], 4294966256 }
  0x9f   : > { %5629 = dma.done.wait (%p7477_p11), [#allocation15], 1040   ;;  %p7478_p0 = pmov %p7471_p2 }
  0xa0   : > { %s4403_s0 = sshll.u32 %s5788_s28, 5  ;;  %s7479_s24 = sld [smem:[#allocation33_spill]]  ;;  %vm732_vm0 = vsmask.f32 7424  ;;  %vm972_vm1 = vsmask.f32 6400 }
  0xa1   : > { %5631 = vsyncadd (%p7478_p0), [#allocation15], 4294966256  ;;  %p678_p3 = scmp.lt.s32.totalorder %s4403_s0, 63  ;;  %vm908_vm2 = vcmask 1046528   ;;  %s7480_s17 = sld [smem:[#allocation34_spill]]  ;;  %vm1068_vm3 = vcmask 1045504  }
  0xa2   : > { %s5667_s30 = smov 32   ;;  %s5668_s20 = smov 96   ;;  %vm1100_vm4 = vcmask 261120   ;;  %vm1133_vm5 = vcmask 523264   ;;  %vm1166_vm6 = vcmask 785408   ;;  %vm1761_vm7 = vcmask 1014784  }
  0xa3   : > { %s7496_s0 = smov (!%p678_p3, %s4403_s0), 63  ;;  %s7446_s4 = smov 64   ;;  %vm2307_vm8 = vcmask 916480   ;;  %vm2350_vm9 = vcmask 654336   ;;  %vm2825_vm10 = vcmask 392192   ;;  %vm3209_vm11 = vcmask 883712  }
  0xa4   : > { %s4404_s21 = sshll.u32 %s7496_s0, 3  ;;  %vm3751_vm12 = vcmask 130048   ;;  %vm5674_vm13 = vmmov 0   ;;  %vm3883_vm14 = vcmask 1041408   ;;  %vm3879_vm15 = vcmask 293888   ;;  %p7482_p5 = scmp.ne.s32.totalorder %s7460_s1, 0 }
  0xa5   : > { %s5675_s23 = smov [#allocation17]  }
  0xa6   : > { %s5938_s27 = scalar_lea.vmem %s7479_s24, %s4404_s21  ;;  %s7481_s24 = smov 64  }
  0xa7   : > { %v684_v0 = vld [vmem:[%s5938_s27] sm:$0xff]  ;;  %v685_v1 = vld [vmem:[%s5938_s27 + $0x8] sm:$0xff]  ;;  %v686_v2 = vld [vmem:[%s5938_s27 + $0x10] sm:$0xff]  ;;  %s7355_s21 = sand.u32 1, %s5646_s25   ;;  %s5548_s0 = sshll.u32 %s5675_s23, 4  ;;  %s5549_s0 = int_to_ptr.vmem [resolvable:$false] %s5548_s0 }
  0xa8   : > { %v687_v3 = vld [vmem:[%s5938_s27 + $0x18] sm:$0xff]  ;;  %v5944_v4 = vpack.c.bf16 %v685_v1, %v684_v0  ;;  %v688_v5 = vld [vmem:[%s5938_s27 + $0x20] sm:$0xff]  ;;  %v689_v6 = vld [vmem:[%s5938_s27 + $0x28] sm:$0xff]  ;;  %s7448_s29 = sshll.u32 %s7355_s21, 3  ;;  %s4169_s19 = scalar_lea.sflag [#allocation4], %s7355_s21 }
  0xa9   : > { %v5948_v7 = vpack.c.bf16 %v687_v3, %v686_v2  ;;  %v5950_v8 = vpack.c.bf16 %v689_v6, %v688_v5  ;;  %v690_v11 = vld [vmem:[%s5938_s27 + $0x30] sm:$0xff]  ;;  %v691_v12 = vld [vmem:[%s5938_s27 + $0x38] sm:$0xff]  ;;  %v692_v32 = vld [vmem:[%s5938_s27 + $0x40] sm:$0xff]  ;;  %s669_s18 = scalar_lea.vmem [#allocation17], %s7448_s29 }
  0xaa   : > { %v734_v9 = vshrl.u32 %v5944_v4, 16  ;;  %v736_v10 = vshll.u32 %v5944_v4, 16  ;;  %v909_v19 = vrot.slane %v5944_v4, 1  ;;  %v5960_v23 = vpack.c.bf16 %v691_v12, %v690_v11  ;;  %v693_v34 = vld [vmem:[%s5938_s27 + $0x48] sm:$0xff]  ;;  %v4886_v35 = vld [vmem:[%s7480_s17 + $0x74] ss:$8 sps:$4 sm:$0xff]  }
  0xab   : > { %v741_v13 = vshll.u32 %v5948_v7, 16  ;;  %v745_v14 = vshrl.u32 %v5948_v7, 16  ;;  %v749_v15 = vshll.u32 %v5950_v8, 16  ;;  %v910_v26 = vrot.slane %v5948_v7, 1  ;;  %v4888_v39 = vld [vmem:[%s7480_s17 + $0x70] ss:$8 sps:$4 sm:$0xff]   ;;  %1395 = vmatprep.subr.bf16.mxu0 %v4886_v35 }
  0xac   : > { %v738_v16 = vrot.slane %v736_v10, 1  ;;  %v973_v17 = vrot.slane %v734_v9, 1  ;;  %v974_v18 = vrot.slane %v736_v10, 2  ;;  %v753_v30 = vshrl.u32 %v5950_v8, 16  ;;  %v4889_v43 = vld [vmem:[%s7480_s17 + $0x64] ss:$8 sps:$4 sm:$0xff]   ;;  %1396 = vmatpush1.bf16.msra.mxu0 %v4888_v39 }
  0xad   : > { %v743_v20 = vrot.slane %v741_v13, 1  ;;  %v976_v21 = vrot.slane %v745_v14, 1  ;;  %v977_v22 = vrot.slane %v741_v13, 2  ;;  %v751_v27 = vrot.slane %v749_v15, 1  ;;  %v4891_v47 = vld [vmem:[%s7480_s17 + $0x60] ss:$8 sps:$4 sm:$0xff]   ;;  %1397 = vmatprep.subr.bf16.mxu0 %v4889_v43 }
  0xae   : > { %v739_v24 = vor.u32 %v738_v16, %v734_v9  ;;  %v975_v25 = vor.u32 %v974_v18, %v973_v17  ;;  %v981_v31 = vrot.slane %v749_v15, 2  ;;  %v912_v37 = vrot.slane %v5950_v8, 1  ;;  %v4892_v48 = vld [vmem:[%s7480_s17 + $0x54] ss:$8 sps:$4 sm:$0xff]   ;;  %v4894_v60 = vld [vmem:[%s7480_s17 + $0x50] ss:$8 sps:$4 sm:$0xff]  }
  0xaf   : > { %v978_v28 = vor.u32 %v977_v22, %v976_v21  ;;  %v747_v29 = vor.u32 %v745_v14, %v743_v20  ;;  %v980_v38 = vrot.slane %v753_v30, 1  ;;  %v911_v40 = vsel %vm908_vm2, %v909_v19, %v910_v26  ;;  %v694_v55 = vld [vmem:[%s5938_s27 + $0x50] sm:$0xff]  ;;  %v695_v56 = vld [vmem:[%s5938_s27 + $0x58] sm:$0xff]  ;;  %v4895_v61 = vld [vmem:[%s7480_s17 + $0x44] ss:$8 sps:$4 sm:$0xff]   ;;  %s4187_s22 = sshll.u32 %s669_s18, 4  ;;  %s4188_s22 = int_to_ptr.vmem [resolvable:$true] %s4187_s22 }
  0xb0   : > { %v744_v33 = vsel %vm732_vm0, %v739_v24, %v743_v20  ;;  %v757_v41 = vshll.u32 %v5960_v23, 16  ;;  %v761_v42 = vshrl.u32 %v5960_v23, 16  ;;  %v5984_v46 = vpack.c.bf16 %v693_v34, %v692_v32  ;;  %1398 = vmatpush1.bf16.msra.mxu0 %v4891_v47  ;;  %v696_v2 = vld [vmem:[%s5938_s27 + $0x60] sm:$0xff]  ;;  %v697_v3 = vld [vmem:[%s5938_s27 + $0x68] sm:$0xff]  ;;  %v4898_v12 = vld [vmem:[%s7480_s17 + $0x34] ss:$8 sps:$4 sm:$0xff]   ;;  %p5551_p13 = scmp.lt.s32.totalorder %s4188_s22, %s5549_s0 }
  0xb1   : > { %860 = vrot.lane.b32.xlu0 %v744_v33, %s5667_s30  ;;  %v979_v36 = vsel %vm972_vm1, %v975_v25, %v978_v28  ;;  %v752_v44 = vsel %vm732_vm0, %v747_v29, %v751_v27  ;;  %v982_v45 = vor.u32 %v981_v31, %v980_v38  ;;  %v913_v49 = vsel %vm908_vm2, %v910_v26, %v912_v37  ;;  %v4897_v11 = vld [vmem:[%s7480_s17 + $0x40] ss:$8 sps:$4 sm:$0xff]   ;;  %v4900_v20 = vld [vmem:[%s7480_s17 + $0x30] ss:$8 sps:$4 sm:$0xff]   ;;  %v4901_v21 = vld [vmem:[%s7480_s17 + $0x24] ss:$8 sps:$4 sm:$0xff]  }
  0xb2   : > { %1036 = vrot.lane.b32.xlu1 %v979_v36, %s5668_s20  ;;  %v914_v50 = vrot.slane %v5960_v23, 1  ;;  %v755_v51 = vor.u32 %v753_v30, %v751_v27  ;;  %v759_v52 = vrot.slane %v757_v41, 1  ;;  %v984_v53 = vrot.slane %v761_v42, 1  ;;  %1399 = vmatprep.subr.bf16.mxu0 %v4892_v48  ;;  %v698_v25 = vld [vmem:[%s5938_s27 + $0x70] sm:$0xff]  ;;  %v699_v26 = vld [vmem:[%s5938_s27 + $0x78] sm:$0xff]  ;;  %v701_v38 = vld [vmem:[%s5938_s27 + $0x88] sm:$0xff] }
  0xb3   : > { %v985_v54 = vrot.slane %v757_v41, 2  ;;  %v983_v57 = vsel %vm972_vm1, %v978_v28, %v982_v45  ;;  %v765_v58 = vshll.u32 %v5984_v46, 16  ;;  %v769_v59 = vshrl.u32 %v5984_v46, 16  ;;  %v4903_v31 = vld [vmem:[%s7480_s17 + $0x20] ss:$8 sps:$4 sm:$0xff]   ;;  %s5544_s26 = scalar_lea.vmem %s4188_s22, 128 }
  0xb4   : > { %v6008_v62 = vpack.c.bf16 %v695_v56, %v694_v55  ;;  %v760_v63 = vsel %vm732_vm0, %v755_v51, %v759_v52  ;;  %v915_v0 = vsel %vm908_vm2, %v912_v37, %v914_v50  ;;  %v763_v5 = vor.u32 %v761_v42, %v759_v52  ;;  %1400 = vmatpush1.bf16.msra.mxu0 %v4894_v60  ;;  %v4904_v32 = vld [vmem:[%s7480_s17 + $0x14] ss:$8 sps:$4 sm:$0xff]   ;;  %v700_v37 = vld [vmem:[%s5938_s27 + $0x80] sm:$0xff]  ;;  %v4906_v39 = vld [vmem:[%s7480_s17 + $0x10] ss:$8 sps:$4 sm:$0xff]   ;;  %p5545_p1 = scmp.ne.s32.totalorder %s4188_s22, %s5544_s26 }
  0xb5   : > { %940 = vrot.lane.b32.xlu0 %v911_v40, %s7446_s4  ;;  %v986_v1 = vor.u32 %v985_v54, %v984_v53  ;;  %v767_v6 = vrot.slane %v765_v58, 1  ;;  %v988_v9 = vrot.slane %v769_v59, 1  ;;  %v989_v10 = vrot.slane %v765_v58, 2  ;;  %1401 = vmatprep.subr.bf16.mxu0 %v4895_v61  ;;  %v4909_v53 = vld [vmem:[%s7480_s17] ss:$8 sps:$4 sm:$0xff]   ;;  %v702_v60 = vld [vmem:[%s5938_s27 + $0x90] sm:$0xff] }
  0xb6   : > { %862 = vrot.lane.b32.xlu1 %v752_v44, %s5667_s30  ;;  %v773_v13 = vshll.u32 %v6008_v62, 16  ;;  %v777_v14 = vshrl.u32 %v6008_v62, 16  ;;  %v916_v16 = vrot.slane %v5984_v46, 1  ;;  %v6027_v17 = vpack.c.bf16 %v697_v3, %v696_v2  ;;  %v4910_v55 = vld [vmem:[%s7480_s17 + $0x94] ss:$8 sps:$4 sm:$0xff]   ;;  %p5546_p6 = pnand %p5545_p1, %p7482_p5 }
  0xb7   : > { %v987_v15 = vsel %vm972_vm1, %v982_v45, %v986_v1  ;;  %v768_v18 = vsel %vm732_vm0, %v763_v5, %v767_v6  ;;  %v990_v19 = vor.u32 %v989_v10, %v988_v9  ;;  %v771_v28 = vor.u32 %v769_v59, %v767_v6  ;;  %v703_v61 = vld [vmem:[%s5938_s27 + $0x98] sm:$0xff]  ;;  %v4913_v10 = vld [vmem:[%s7480_s17 + $0x84] ss:$8 sps:$4 sm:$0xff]  }
  0xb8   : > { %1402 = vmatpush1.bf16.msra.mxu0 %v4897_v11  ;;  %v775_v22 = vrot.slane %v773_v13, 1  ;;  %v992_v24 = vrot.slane %v777_v14, 1  ;;  %v917_v27 = vsel %vm908_vm2, %v914_v50, %v916_v16  ;;  %v993_v29 = vrot.slane %v773_v13, 2  ;;  %v4907_v50 = vld [vmem:[%s7480_s17 + $0x4] ss:$8 sps:$4 sm:$0xff]   ;;  %p5547_p10 = pneg %p5546_p6 }
  0xb9   : > { %942 = vrot.lane.b32.xlu0 %v913_v49, %s7446_s4  ;;  %1403 = vmatprep.subr.bf16.mxu0 %v4898_v12  ;;  %v781_v30 = vshll.u32 %v6027_v17, 16  ;;  %v991_v33 = vsel %vm972_vm1, %v986_v1, %v990_v19  ;;  %v918_v34 = vrot.slane %v6008_v62, 1  ;;  %v785_v35 = vshrl.u32 %v6027_v17, 16  ;;  %v4912_v3 = vld [vmem:[%s7480_s17 + $0x90] ss:$8 sps:$4 sm:$0xff]  }
  0xba   : > { %1038 = vrot.lane.b32.xlu1 %v983_v57, %s5668_s20  ;;  %v6051_v36 = vpack.c.bf16 %v699_v26, %v698_v25  ;;  %v776_v40 = vsel %vm732_vm0, %v771_v28, %v775_v22  ;;  %v994_v41 = vor.u32 %v993_v29, %v992_v24  ;;  %v920_v43 = vrot.slane %v6027_v17, 1 }
  0xbb   : > { %v783_v42 = vrot.slane %v781_v30, 1  ;;  %v919_v44 = vsel %vm908_vm2, %v916_v16, %v918_v34  ;;  %v779_v45 = vor.u32 %v777_v14, %v775_v22  ;;  %v996_v47 = vrot.slane %v785_v35, 1  ;;  %v705_v16 = vld [vmem:[%s5938_s27 + $0xa8] sm:$0xff] }
  0xbc   : > { %1404 = vmatpush1.bf16.msra.mxu0 %v4900_v20  ;;  %v997_v48 = vrot.slane %v781_v30, 2  ;;  %v789_v49 = vshll.u32 %v6051_v36, 16  ;;  %v793_v51 = vshrl.u32 %v6051_v36, 16  ;;  %v6069_v52 = vpack.c.bf16 %v701_v38, %v700_v37 }
  0xbd   : > { %864 = vrot.lane.b32.xlu0 %v760_v63, %s5667_s30  ;;  %1405 = vmatprep.subr.bf16.mxu0 %v4901_v21  ;;  %v995_v54 = vsel %vm972_vm1, %v990_v19, %v994_v41  ;;  %v784_v56 = vsel %vm732_vm0, %v779_v45, %v783_v42  ;;  %v921_v63 = vsel %vm908_vm2, %v918_v34, %v920_v43  ;;  %v922_v6 = vrot.slane %v6051_v36, 1 }
  0xbe   : > { %944 = vrot.lane.b32.xlu1 %v915_v0, %s7446_s4  ;;  %v998_v57 = vor.u32 %v997_v48, %v996_v47  ;;  %v791_v58 = vrot.slane %v789_v49, 1  ;;  %v797_v59 = vshll.u32 %v6069_v52, 16  ;;  %v787_v0 = vor.u32 %v785_v35, %v783_v42  ;;  %v708_v47 = vld [vmem:[%s5938_s27 + $0xc0] sm:$0xff]  ;;  %v709_v48 = vld [vmem:[%s5938_s27 + $0xc8] sm:$0xff] }
  0xbf   : > { %v1000_v1 = vrot.slane %v793_v51, 1  ;;  %v1001_v2 = vrot.slane %v789_v49, 2  ;;  %v801_v9 = vshrl.u32 %v6069_v52, 16  ;;  %v6098_v14 = vpack.c.bf16 %v703_v61, %v702_v60 }
  0xc0   : > { %1406 = vmatpush1.bf16.msra.mxu0 %v4903_v31  ;;  %v999_v5 = vsel %vm972_vm1, %v994_v41, %v998_v57  ;;  %v799_v11 = vrot.slane %v797_v59, 1  ;;  %v792_v12 = vsel %vm732_vm0, %v787_v0, %v791_v58  ;;  %v923_v19 = vsel %vm908_vm2, %v920_v43, %v922_v6  ;;  %v715_v0 = vld [vmem:[%s5938_s27 + $0xf8] sm:$0xff] }
  0xc1   : > { %1040 = vrot.lane.b32.xlu0 %v987_v15, %s5668_s20  ;;  %1407 = vmatprep.subr.bf16.mxu0 %v4904_v32  ;;  %v1002_v13 = vor.u32 %v1001_v2, %v1000_v1  ;;  %v704_v15 = vld [vmem:[%s5938_s27 + $0xa0] sm:$0xff]  ;;  %v795_v20 = vor.u32 %v793_v51, %v791_v58  ;;  %v1004_v21 = vrot.slane %v801_v9, 1  ;;  %v1005_v22 = vrot.slane %v797_v59, 2  ;;  %v706_v32 = vld [vmem:[%s5938_s27 + $0xb0] sm:$0xff]  ;;  %v711_v51 = vld [vmem:[%s5938_s27 + $0xd8] sm:$0xff] }
  0xc2   : > { %866 = vrot.lane.b32.xlu1 %v768_v18, %s5667_s30  ;;  %v4915_v18 = vld [vmem:[%s7480_s17 + $0x80] ss:$8 sps:$4 sm:$0xff]   ;;  %v924_v24 = vrot.slane %v6069_v52, 1  ;;  %v805_v26 = vshll.u32 %v6098_v14, 16  ;;  %v1069_v28 = vrot.slane %v5944_v4, 2  ;;  %v6114_v31 = vpack.c.bf16 %v705_v16, %v704_v15 }
  0xc3   : > { %v1003_v25 = vsel %vm972_vm1, %v998_v57, %v1002_v13  ;;  %v800_v29 = vsel %vm732_vm0, %v795_v20, %v799_v11  ;;  %v1006_v30 = vor.u32 %v1005_v22, %v1004_v21  ;;  %v1070_v34 = vrot.slane %v5948_v7, 2 }
  0xc4   : > { %1408 = vmatpush1.bf16.msra.mxu0 %v4906_v39  ;;  %v925_v35 = vsel %vm908_vm2, %v922_v6, %v924_v24  ;;  %v926_v37 = vrot.slane %v6098_v14, 1  ;;  %v803_v39 = vor.u32 %v801_v9, %v799_v11  ;;  %v1009_v42 = vrot.slane %v805_v26, 2 }
  0xc5   : > { %946 = vrot.lane.b32.xlu0 %v917_v27, %s7446_s4  ;;  %1409 = vmatprep.subr.bf16.mxu0 %v4907_v50  ;;  %v809_v27 = vshrl.u32 %v6098_v14, 16  ;;  %v1071_v38 = vsel %vm1068_vm3, %v1069_v28, %v1070_v34  ;;  %v1007_v43 = vsel %vm972_vm1, %v1002_v13, %v1006_v30  ;;  %v817_v45 = vshrl.u32 %v6114_v31, 16  ;;  %v710_v50 = vld [vmem:[%s5938_s27 + $0xd0] sm:$0xff] }
  0xc6   : > { %1042 = vrot.lane.b32.xlu1 %v991_v33, %s5668_s20  ;;  %v707_v33 = vld [vmem:[%s5938_s27 + $0xb8] sm:$0xff]  ;;  %4425 = vmatprep.mubr.msk.bf16.mxu0 %vm1100_vm4, %v1071_v38  ;;  %v6145_v2 = vpack.c.bf16 %v709_v48, %v708_v47  ;;  %v928_v6 = vrot.slane %v6114_v31, 1 }
  0xc7   : > { %v1008_v41 = vrot.slane %v809_v27, 1  ;;  %v6132_v49 = vpack.c.bf16 %v707_v33, %v706_v32  ;;  %v1012_v60 = vrot.slane %v817_v45, 1 }
  0xc8   : > { %1410 = vmatpush1.bf16.msra.mxu0 %v4909_v53  ;;  %v712_v53 = vld [vmem:[%s5938_s27 + $0xe0] sm:$0xff]  ;;  %v829_v16 = vshll.u32 %v6145_v2, 16  ;;  %v833_v21 = vshrl.u32 %v6145_v2, 16 }
  0xc9   : > { %868 = vrot.lane.b32.xlu0 %v776_v40, %s5667_s30  ;;  %1423 = vmatprep.subr.bf16.mxu0 %v4910_v55  ;;  %v807_v40 = vrot.slane %v805_v26, 1  ;;  %v1010_v57 = vor.u32 %v1009_v42, %v1008_v41  ;;  %v821_v1 = vshll.u32 %v6132_v49, 16  ;;  %v825_v9 = vshrl.u32 %v6132_v49, 16 }
  0xca   : > { %948 = vrot.lane.b32.xlu1 %v919_v44, %s7446_s4  ;;  %v813_v44 = vshll.u32 %v6114_v31, 16  ;;  %v930_v15 = vrot.slane %v6132_v49, 1  ;;  %v831_v33 = vrot.slane %v829_v16, 1 }
  0xcb   : > { %v808_v55 = vsel %vm732_vm0, %v803_v39, %v807_v40  ;;  %v811_v58 = vor.u32 %v809_v27, %v807_v40  ;;  %v823_v13 = vrot.slane %v821_v1, 1  ;;  %v1017_v20 = vrot.slane %v821_v1, 2 }
  0xcc   : > { %1424 = vmatpush2.bf16.msra.mxu0 %v4912_v3  ;;  %v815_v59 = vrot.slane %v813_v44, 1  ;;  %v1013_v61 = vrot.slane %v813_v44, 2  ;;  %v6148_v3 = vpack.c.bf16 %v711_v51, %v710_v50  ;;  %v931_v32 = vsel %vm908_vm2, %v928_v6, %v930_v15 }
  0xcd   : > { %1044 = vrot.lane.b32.xlu0 %v995_v54, %s5668_s20  ;;  %1425 = vmatprep.subr.bf16.mxu0 %v4913_v10  ;;  %v713_v54 = vld [vmem:[%s5938_s27 + $0xe8] sm:$0xff]  ;;  %v1020_v39 = vrot.slane %v833_v21, 1  ;;  %v1021_v40 = vrot.slane %v829_v16, 2  ;;  %v827_v47 = vor.u32 %v825_v9, %v823_v13 }
  0xce   : > { %870 = vrot.lane.b32.xlu1 %v784_v56, %s5667_s30  ;;  %v927_v56 = vsel %vm908_vm2, %v924_v24, %v926_v37  ;;  %v6154_v10 = vpack.c.bf16 %v713_v54, %v712_v53  ;;  %v816_v11 = vsel %vm732_vm0, %v811_v58, %v815_v59  ;;  %v837_v22 = vshll.u32 %v6148_v3, 16 }
  0xcf   : > { %v929_v24 = vsel %vm908_vm2, %v926_v37, %v928_v6  ;;  %v841_v26 = vshrl.u32 %v6148_v3, 16  ;;  %v835_v58 = vor.u32 %v833_v21, %v831_v33 }
  0xd0   : > { %1426 = vmatpush2.bf16.msra.mxu0 %v4915_v18  ;;  %v845_v27 = vshll.u32 %v6154_v10, 16  ;;  %v839_v41 = vrot.slane %v837_v22, 1  ;;  %v1025_v44 = vrot.slane %v837_v22, 2  ;;  %v936_v48 = vrot.slane %v6154_v10, 1 }
  0xd1   : > { %950 = vrot.lane.b32.xlu0 %v921_v63, %s7446_s4  ;;  %v714_v63 = vld [vmem:[%s5938_s27 + $0xf0] sm:$0xff]  ;;  %s5671_s27 = smov 112  }
  0xd2   : > { %1046 = vrot.lane.b32.xlu1 %v999_v5, %s5668_s20  ;;  %v1011_v5 = vsel %vm972_vm1, %v1006_v30, %v1010_v57  ;;  %v6159_v18 = vpack.c.bf16 %v715_v0, %v714_v63  ;;  %v849_v30 = vshrl.u32 %v6154_v10, 16  ;;  %v1029_v51 = vrot.slane %v845_v27, 2 }
  0xd3   : > { %v840_v63 = vsel %vm732_vm0, %v835_v58, %v839_v41 }
  0xd4   : > { %v853_v38 = vshll.u32 %v6159_v18, 16  ;;  %v1028_v50 = vrot.slane %v849_v30, 1 }
  0xd5   : > { %872 = vrot.lane.b32.xlu0 %v792_v12, %s5667_s30  ;;  %v1014_v12 = vor.u32 %v1013_v61, %v1012_v60  ;;  %v857_v60 = vshrl.u32 %v6159_v18, 16 }
  0xd6   : > { %952 = vrot.lane.b32.xlu1 %v923_v19, %s7446_s4  ;;  %v819_v19 = vor.u32 %v817_v45, %v815_v59  ;;  %v847_v45 = vrot.slane %v845_v27, 1  ;;  %v855_v53 = vrot.slane %v853_v38, 1  ;;  %v938_v59 = vrot.slane %v6159_v18, 1 }
  0xd7   : > { %v1015_v28 = vsel %vm972_vm1, %v1010_v57, %v1014_v12 }
  0xd8   : > { %v824_v37 = vsel %vm732_vm0, %v819_v19, %v823_v13  ;;  %v1030_v13 = vor.u32 %v1029_v51, %v1028_v50  ;;  %v851_v16 = vor.u32 %v849_v30, %v847_v45  ;;  %v939_v22 = vsel %vm908_vm2, %v936_v48, %v938_v59 }
  0xd9   : > { %1048 = vrot.lane.b32.xlu0 %v1003_v25, %s5668_s20  ;;  %v1016_v25 = vrot.slane %v825_v9, 1  ;;  %v1032_v9 = vrot.slane %v857_v60, 1 }
  0xda   : > { %874 = vrot.lane.b32.xlu1 %v800_v29, %s5667_s30  ;;  %v932_v29 = vrot.slane %v6145_v2, 1 }
  0xdb   : > { %v1018_v42 = vor.u32 %v1017_v20, %v1016_v25  ;;  %v856_v20 = vsel %vm732_vm0, %v851_v16, %v855_v53  ;;  %v859_v25 = vor.u32 %v857_v60, %v855_v53 }
  0xdc   : > { %v933_v57 = vsel %vm908_vm2, %v930_v15, %v932_v29 }
  0xdd   : > { %954 = vrot.lane.b32.xlu0 %v925_v35, %s7446_s4  ;;  %v934_v35 = vrot.slane %v6148_v3, 1  ;;  %v1019_v54 = vsel %vm972_vm1, %v1014_v12, %v1018_v42 }
  0xde   : > { %1050 = vrot.lane.b32.xlu1 %v1007_v43, %s5668_s20  ;;  %v1024_v43 = vrot.slane %v841_v26, 1 }
  0xdf   : > { %v935_v1 = vsel %vm908_vm2, %v932_v29, %v934_v35  ;;  %v937_v15 = vsel %vm908_vm2, %v934_v35, %v936_v48 }
  0xe0   : > { %v1026_v0 = vor.u32 %v1025_v44, %v1024_v43 }
  0xe1   : > { %876 = vrot.lane.b32.xlu0 %v808_v55, %s5667_s30  ;;  %v832_v55 = vsel %vm732_vm0, %v827_v47, %v831_v33 }
  0xe2   : > { %956 = vrot.lane.b32.xlu1 %v927_v56, %s7446_s4  ;;  %v1022_v56 = vor.u32 %v1021_v40, %v1020_v39  ;;  %v1031_v19 = vsel %vm972_vm1, %v1026_v0, %v1030_v13  ;;  %v1074_v40 = vrot.slane %v5960_v23, 2 }
  0xe4   : > { %v1023_v61 = vsel %vm972_vm1, %v1018_v42, %v1022_v56  ;;  %v1027_v6 = vsel %vm972_vm1, %v1022_v56, %v1026_v0 }
  0xe5   : > { %1052 = vrot.lane.b32.xlu0 %v1011_v5, %s5668_s20  ;;  %v843_v5 = vor.u32 %v841_v26, %v839_v41 }
  0xe6   : > { %878 = vrot.lane.b32.xlu1 %v816_v11, %s5667_s30  ;;  %v1033_v11 = vrot.slane %v853_v38, 2 }
  0xe7   : > { %v848_v12 = vsel %vm732_vm0, %v843_v5, %v847_v45 }
  0xe8   : > { %v1034_v21 = vor.u32 %v1033_v11, %v1032_v9 }
  0xe9   : > { %958 = vrot.lane.b32.xlu0 %v929_v24, %s7446_s4 }
  0xea   : > { %1054 = vrot.lane.b32.xlu1 %v1015_v28, %s5668_s20  ;;  %v1035_v24 = vsel %vm972_vm1, %v1030_v13, %v1034_v21  ;;  %v1072_v28 = vrot.slane %v5950_v8, 2 }
  0xec   : > { %v1073_v35 = vsel %vm1068_vm3, %v1070_v34, %v1072_v28  ;;  %v1075_v43 = vsel %vm1068_vm3, %v1072_v28, %v1074_v40 }
  0xed   : > { %880 = vrot.lane.b32.xlu0 %v824_v37, %s5667_s30 }
  0xee   : > { %960 = vrot.lane.b32.xlu1 %v931_v32, %s7446_s4 }
  0xf1   : > { %1056 = vrot.lane.b32.xlu0 %v1019_v54, %s5668_s20 }
  0xf2   : > { %882 = vrot.lane.b32.xlu1 %v832_v55, %s5667_s30 }
  0xf5   : > { %962 = vrot.lane.b32.xlu0 %v933_v57, %s7446_s4 }
  0xf6   : > { %1058 = vrot.lane.b32.xlu1 %v1023_v61, %s5668_s20 }
  0xf9   : > { %884 = vrot.lane.b32.xlu0 %v840_v63, %s5667_s30 }
  0xfa   : > { %964 = vrot.lane.b32.xlu1 %v935_v1, %s7446_s4 }
  0xfd   : > { %1060 = vrot.lane.b32.xlu0 %v1027_v6, %s5668_s20 }
  0xfe   : > { %886 = vrot.lane.b32.xlu1 %v848_v12, %s5667_s30 }
 0x101   : > { %966 = vrot.lane.b32.xlu0 %v937_v15, %s7446_s4 }
 0x102   : > { %1062 = vrot.lane.b32.xlu1 %v1031_v19, %s5668_s20 }
 0x105   : > { %888 = vrot.lane.b32.xlu0 %v856_v20, %s5667_s30 }
 0x106   : > { %968 = vrot.lane.b32.xlu1 %v939_v22, %s7446_s4 }
 0x109   : > { %1064 = vrot.lane.b32.xlu0 %v1035_v24, %s5668_s20 }
 0x10a   : > { %890 = vrot.lane.b32.xlu1 %v859_v25, %s5667_s30 }
 0x10d   : > { %970 = vrot.lane.b32.xlu0 %v938_v59, %s7446_s4 }
 0x10e   : > { %1066 = vrot.lane.b32.xlu1 %v1034_v21, %s5668_s20 }
 0x123   : > { %v861_v26 = vpop.permute.xlu0 %860 }
 0x124   : > { %v1037_v27 = vpop.permute.xlu1 %1036  ;;  %v1102_v29 = vsel %vm1100_vm4, %v5944_v4, %v861_v26 }
 0x127   : > { %v941_v30 = vpop.permute.xlu0 %940 }
 0x128   : > { %v1135_v32 = vsel %vm1133_vm5, %v1102_v29, %v941_v30  ;;  %v863_v33 = vpop.permute.xlu1 %862 }
 0x129   : > { %v1168_v38 = vsel %vm1166_vm6, %v1135_v32, %v1037_v27  ;;  %v1104_v37 = vsel %vm1100_vm4, %v5948_v7, %v863_v33  ;;  %v1076_v7 = vrot.slane %v5984_v46, 2 }
 0x12a   : > { %1428 = vmatmul.mubr.bf16.vlgmr.msra.gmra.mxu0 %v1168_v38 }
 0x12b   : > { %v943_v39 = vpop.permute.xlu0 %942  ;;  %4426 = vmatprep.mubr.msk.bf16.mxu0 %vm1100_vm4, %v1073_v35  ;;  %v1077_v51 = vsel %vm1068_vm3, %v1074_v40, %v1076_v7 }
 0x12c   : > { %v1137_v4 = vsel %vm1133_vm5, %v1104_v37, %v943_v39  ;;  %v1039_v41 = vpop.permute.xlu1 %1038 }
 0x12d   : > { %v1171_v44 = vsel %vm1166_vm6, %v1137_v4, %v1039_v41 }
 0x12f   : > { %v865_v42 = vpop.permute.xlu0 %864 }
 0x130   : > { %v945_v34 = vpop.permute.xlu1 %944  ;;  %v1106_v45 = vsel %vm1100_vm4, %v5950_v8, %v865_v42  ;;  %v1078_v8 = vrot.slane %v6008_v62, 2 }
 0x131   : > { %v1139_v47 = vsel %vm1133_vm5, %v1106_v45, %v945_v34 }
 0x132   : > { %1438 = vmatmul.mubr.bf16.gmra.mxu0 %v1171_v44  ;;  %v1079_v59 = vsel %vm1068_vm3, %v1076_v7, %v1078_v8 }
 0x133   : > { %4427 = vmatprep.mubr.msk.bf16.mxu0 %vm1100_vm4, %v1075_v43  ;;  %v1041_v48 = vpop.permute.xlu0 %1040 }
 0x134   : > { %v867_v50 = vpop.permute.xlu1 %866  ;;  %v1174_v53 = vsel %vm1166_vm6, %v1139_v47, %v1041_v48 }
 0x135   : > { %v1108_v55 = vsel %vm1100_vm4, %v5960_v23, %v867_v50  ;;  %v1080_v23 = vrot.slane %v6027_v17, 2 }
 0x137   : > { %v947_v54 = vpop.permute.xlu0 %946  ;;  %v1081_v6 = vsel %vm1068_vm3, %v1078_v8, %v1080_v23 }
 0x138   : > { %v1141_v56 = vsel %vm1133_vm5, %v1108_v55, %v947_v54  ;;  %v1043_v57 = vpop.permute.xlu1 %1042 }
 0x139   : > { %v1177_v60 = vsel %vm1166_vm6, %v1141_v56, %v1043_v57 }
 0x13a   : > { %1448 = vmatmul.mubr.bf16.gmra.mxu0 %v1174_v53 }
 0x13b   : > { %4428 = vmatprep.mubr.msk.bf16.mxu0 %vm1100_vm4, %v1077_v51  ;;  %v869_v58 = vpop.permute.xlu0 %868 }
 0x13c   : > { %v949_v61 = vpop.permute.xlu1 %948  ;;  %v1110_v63 = vsel %vm1100_vm4, %v5984_v46, %v869_v58  ;;  %v1082_v46 = vrot.slane %v6051_v36, 2 }
 0x13d   : > { %v1143_v0 = vsel %vm1133_vm5, %v1110_v63, %v949_v61 }
 0x13e   : > { %v1083_v19 = vsel %vm1068_vm3, %v1080_v23, %v1082_v46 }
 0x13f   : > { %v1045_v1 = vpop.permute.xlu0 %1044 }
 0x140   : > { %v871_v5 = vpop.permute.xlu1 %870  ;;  %v1180_v9 = vsel %vm1166_vm6, %v1143_v0, %v1045_v1 }
 0x141   : > { %v1112_v12 = vsel %vm1100_vm4, %v6008_v62, %v871_v5  ;;  %v1084_v62 = vrot.slane %v6069_v52, 2 }
 0x142   : > { %1458 = vmatmul.mubr.bf16.gmra.mxu0 %v1177_v60 }
 0x143   : > { %4429 = vmatprep.mubr.msk.bf16.mxu0 %vm1100_vm4, %v1079_v59  ;;  %v951_v11 = vpop.permute.xlu0 %950  ;;  %v1085_v27 = vsel %vm1068_vm3, %v1082_v46, %v1084_v62 }
 0x144   : > { %v1145_v13 = vsel %vm1133_vm5, %v1112_v12, %v951_v11  ;;  %v1047_v15 = vpop.permute.xlu1 %1046 }
 0x145   : > { %v1183_v20 = vsel %vm1166_vm6, %v1145_v13, %v1047_v15 }
 0x147   : > { %v873_v16 = vpop.permute.xlu0 %872 }
 0x148   : > { %v953_v21 = vpop.permute.xlu1 %952  ;;  %v1114_v22 = vsel %vm1100_vm4, %v6027_v17, %v873_v16  ;;  %v1086_v17 = vrot.slane %v6098_v14, 2 }
 0x149   : > { %v1147_v24 = vsel %vm1133_vm5, %v1114_v22, %v953_v21 }
 0x14a   : > { %1468 = vmatmul.mubr.bf16.gmra.mxu0 %v1180_v9  ;;  %v1087_v38 = vsel %vm1068_vm3, %v1084_v62, %v1086_v17 }
 0x14b   : > { %4430 = vmatprep.mubr.msk.bf16.mxu0 %vm1100_vm4, %v1081_v6  ;;  %v1049_v25 = vpop.permute.xlu0 %1048 }
 0x14c   : > { %v875_v26 = vpop.permute.xlu1 %874  ;;  %v1186_v28 = vsel %vm1166_vm6, %v1147_v24, %v1049_v25 }
 0x14d   : > { %v1116_v30 = vsel %vm1100_vm4, %v6051_v36, %v875_v26  ;;  %v1088_v36 = vrot.slane %v6114_v31, 2 }
 0x14f   : > { %v955_v29 = vpop.permute.xlu0 %954  ;;  %v1089_v43 = vsel %vm1068_vm3, %v1086_v17, %v1088_v36 }
 0x150   : > { %v1149_v32 = vsel %vm1133_vm5, %v1116_v30, %v955_v29  ;;  %v1051_v33 = vpop.permute.xlu1 %1050 }
 0x151   : > { %v1189_v37 = vsel %vm1166_vm6, %v1149_v32, %v1051_v33  ;;  %v1237_v33 = vlaneseq }
 0x152   : > { %1478 = vmatmul.mubr.bf16.gmra.mxu0 %v1183_v20 }
 0x153   : > { %4431 = vmatprep.mubr.msk.bf16.mxu0 %vm1100_vm4, %v1083_v19  ;;  %v877_v35 = vpop.permute.xlu0 %876 }
 0x154   : > { %v957_v39 = vpop.permute.xlu1 %956  ;;  %v1118_v40 = vsel %vm1100_vm4, %v6069_v52, %v877_v35  ;;  %v1090_v52 = vrot.slane %v6132_v49, 2  ;;  %v6321_v35 = vshrl.u32 %v1237_v33, 7 }
 0x155   : > { %v1151_v4 = vsel %vm1133_vm5, %v1118_v40, %v957_v39 }
 0x156   : > { %v1091_v50 = vsel %vm1068_vm3, %v1088_v36, %v1090_v52 }
 0x157   : > { %v1053_v41 = vpop.permute.xlu0 %1052 }
 0x158   : > { %v879_v42 = vpop.permute.xlu1 %878  ;;  %v1192_v44 = vsel %vm1166_vm6, %v1151_v4, %v1053_v41 }
 0x159   : > { %v1120_v45 = vsel %vm1100_vm4, %v6098_v14, %v879_v42  ;;  %v1092_v14 = vrot.slane %v6145_v2, 2 }
 0x15a   : > { %1488 = vmatmul.mubr.bf16.gmra.mxu0 %v1186_v28 }
 0x15b   : > { %4432 = vmatprep.mubr.msk.bf16.mxu0 %vm1100_vm4, %v1085_v27  ;;  %v959_v34 = vpop.permute.xlu0 %958  ;;  %v1093_v57 = vsel %vm1068_vm3, %v1090_v52, %v1092_v14 }
 0x15c   : > { %v1153_v7 = vsel %vm1133_vm5, %v1120_v45, %v959_v34  ;;  %v1055_v47 = vpop.permute.xlu1 %1054 }
 0x15d   : > { %v1195_v51 = vsel %vm1166_vm6, %v1153_v7, %v1055_v47 }
 0x15f   : > { %v881_v48 = vpop.permute.xlu0 %880 }
 0x160   : > { %v961_v53 = vpop.permute.xlu1 %960  ;;  %v1122_v54 = vsel %vm1100_vm4, %v6114_v31, %v881_v48  ;;  %v1094_v31 = vrot.slane %v6148_v3, 2 }
 0x161   : > { %v1155_v55 = vsel %vm1133_vm5, %v1122_v54, %v961_v53 }
 0x162   : > { %1498 = vmatmul.mubr.bf16.gmra.mxu0 %v1189_v37  ;;  %v1095_v0 = vsel %vm1068_vm3, %v1092_v14, %v1094_v31  ;;  %v1235_v37 = vld [vmem:[#allocation2] sm:$0x3] }
 0x163   : > { %4433 = vmatprep.mubr.msk.bf16.mxu0 %vm1100_vm4, %v1087_v38  ;;  %v1057_v8 = vpop.permute.xlu0 %1056  ;;  %v1239_v38 = vsub.s32 0, %v6321_v35 }
 0x164   : > { %v883_v56 = vpop.permute.xlu1 %882  ;;  %v1198_v58 = vsel %vm1166_vm6, %v1155_v55, %v1057_v8 }
 0x165   : > { %v1124_v60 = vsel %vm1100_vm4, %v6132_v49, %v883_v56  ;;  %v1096_v49 = vrot.slane %v6154_v10, 2  ;;  %v6326_v39 = vrot.slane %v1235_v37, %v1239_v38 }
 0x167   : > { %v963_v59 = vpop.permute.xlu0 %962  ;;  %v1097_v46 = vsel %vm1068_vm3, %v1094_v31, %v1096_v49 }
 0x168   : > { %v1157_v61 = vsel %vm1133_vm5, %v1124_v60, %v963_v59  ;;  %v1059_v63 = vpop.permute.xlu1 %1058 }
 0x169   : > { %v1201_v1 = vsel %vm1166_vm6, %v1157_v61, %v1059_v63 }
 0x16a   : > { %1508 = vmatmul.mubr.bf16.gmra.mxu0 %v1192_v44 }
 0x16b   : > { %4434 = vmatprep.mubr.msk.bf16.mxu0 %vm1100_vm4, %v1089_v43  ;;  %v885_v23 = vpop.permute.xlu0 %884 }
 0x16c   : > { %v965_v5 = vpop.permute.xlu1 %964  ;;  %v1126_v6 = vsel %vm1100_vm4, %v6145_v2, %v885_v23  ;;  %v1098_v2 = vrot.slane %v6159_v18, 2 }
 0x16d   : > { %v1159_v9 = vsel %vm1133_vm5, %v1126_v6, %v965_v5  ;;  %v1243_v5 = vsub.s32 1, %v6321_v35 }
 0x16e   : > { %v1099_v22 = vsel %vm1068_vm3, %v1096_v49, %v1098_v2 }
 0x16f   : > { %v1061_v11 = vpop.permute.xlu0 %1060 }
 0x170   : > { %v887_v12 = vpop.permute.xlu1 %886  ;;  %v1204_v13 = vsel %vm1166_vm6, %v1159_v9, %v1061_v11  ;;  %v4918_v9 = vld [vmem:[%s7420_s3 + $0x4] ss:$8 sps:$4 sm:$0xff]   ;;  %v6372_v11 = vrot.slane %v1235_v37, %v1243_v5 }
 0x171   : > { %v1128_v16 = vsel %vm1100_vm4, %v6148_v3, %v887_v12  ;;  %4456 = vmatprep.mubr.msk.bf16.mxu1 %vm1761_vm7, %v4918_v9 }
 0x172   : > { %1518 = vmatmul.mubr.bf16.gmra.mxu0 %v1195_v51 }
 0x173   : > { %4435 = vmatprep.mubr.msk.bf16.mxu0 %vm1100_vm4, %v1091_v50  ;;  %v967_v15 = vpop.permute.xlu0 %966 }
 0x174   : > { %v1161_v19 = vsel %vm1133_vm5, %v1128_v16, %v967_v15  ;;  %v1063_v20 = vpop.permute.xlu1 %1062 }
 0x175   : > { %v1207_v62 = vsel %vm1166_vm6, %v1161_v19, %v1063_v20 }
 0x177   : > { %v889_v21 = vpop.permute.xlu0 %888 }
 0x178   : > { %v969_v24 = vpop.permute.xlu1 %968  ;;  %v1130_v25 = vsel %vm1100_vm4, %v6154_v10, %v889_v21 }
 0x179   : > { %v1163_v3 = vsel %vm1133_vm5, %v1130_v25, %v969_v24 }
 0x17a   : > { %1528 = vmatmul.mubr.bf16.gmra.mxu0 %v1198_v58 }
 0x17b   : > { %4436 = vmatprep.mubr.msk.bf16.mxu0 %vm1100_vm4, %v1093_v57  ;;  %v1065_v26 = vpop.permute.xlu0 %1064 }
 0x17c   : > { %v891_v27 = vpop.permute.xlu1 %890  ;;  %v1210_v28 = vsel %vm1166_vm6, %v1163_v3, %v1065_v26 }
 0x17d   : > { %v1132_v29 = vsel %vm1100_vm4, %v6159_v18, %v891_v27 }
 0x17f   : > { %v971_v30 = vpop.permute.xlu0 %970 }
 0x180   : > { %v1165_v17 = vsel %vm1133_vm5, %v1132_v29, %v971_v30  ;;  %v1067_v32 = vpop.permute.xlu1 %1066 }
 0x181   : > { %v1213_v10 = vsel %vm1166_vm6, %v1165_v17, %v1067_v32 }
 0x182   : > { %1538 = vmatmul.mubr.bf16.gmra.mxu0 %v1201_v1 }
 0x183   : > { %4437 = vmatprep.mubr.msk.bf16.mxu0 %vm1100_vm4, %v1095_v0 }
 0x18a   : > { %1548 = vmatmul.mubr.bf16.gmra.mxu0 %v1204_v13 }
 0x18b   : > { %4438 = vmatprep.mubr.msk.bf16.mxu0 %vm1100_vm4, %v1097_v46 }
 0x192   : > { %1558 = vmatmul.mubr.bf16.gmra.mxu0 %v1207_v62 }
 0x193   : > { %4439 = vmatprep.mubr.msk.bf16.mxu0 %vm1100_vm4, %v1099_v22 }
 0x19a   : > { %1568 = vmatmul.mubr.bf16.gmra.mxu0 %v1210_v28 }
 0x19b   : > { %4440 = vmatprep.mubr.msk.bf16.mxu0 %vm1100_vm4, %v1098_v2 }
 0x1a2   : > { %1578 = vmatmul.mubr.bf16.gmra.mxu0 %v1213_v10 }
 0x1ea   : > { %v1429_v18 = vpop.f32.mrf.mxu0 }
 0x1eb   : > { %v1430_v40 = vadd.f32 %v1429_v18, %v6326_v39 }
 0x1ec   : > { %v6329_v36 = vpop.f32.mrf.mxu0 }
 0x1ed   : > { %5110 = vtanh.f32 %v1430_v40 }
 0x1ee   : > { %v1433_v4 = vpop.f32.mrf.mxu0 }
 0x1ef   : > { %v1434_v41 = vadd.f32 %v1433_v4, %v6326_v39 }
 0x1f0   : > { %v6332_v42 = vpop.f32.mrf.mxu0 }
 0x1f1   : > { %5112 = vtanh.f32 %v1434_v41 }
 0x1f2   : > { %v1439_v43 = vpop.f32.mrf.mxu0 }
 0x1f3   : > { %v1440_v44 = vadd.f32 %v1439_v43, %v6326_v39 }
 0x1f4   : > { %v6335_v34 = vpop.f32.mrf.mxu0 }
 0x1f5   : > { %5114 = vtanh.f32 %v1440_v44 }
 0x1f6   : > { %v1443_v45 = vpop.f32.mrf.mxu0 }
 0x1f7   : > { %v1444_v52 = vadd.f32 %v1443_v45, %v6326_v39 }
 0x1f8   : > { %v6338_v7 = vpop.f32.mrf.mxu0 }
 0x1f9   : > { %5116 = vtanh.f32 %v1444_v52 }
 0x1fa   : > { %v6340_v47 = vpop.f32.mrf.mxu0  ;;  %v6344_v50 = vpop.eup %5110 }
 0x1fc   : > { %v6342_v48 = vpop.f32.mrf.mxu0 }
 0x1fe   : > { %v6346_v51 = vpop.eup %5112  ;;  %v6348_v53 = vpop.f32.mrf.mxu0 }
 0x1ff   : > { %v1652_v54 = vpack.c.bf16 %v6346_v51, %v6344_v50 }
 0x200   : > { %v1455_v14 = vpop.f32.mrf.mxu0 }
 0x201   : > { %v1456_v46 = vadd.f32 %v1455_v14, %v6372_v11 }
 0x202   : > { %v6352_v55 = vpop.f32.mrf.mxu0  ;;  %v6354_v56 = vpop.eup %5114 }
 0x203   : > { %5118 = vtanh.f32 %v1456_v46 }
 0x204   : > { %v1461_v8 = vpop.f32.mrf.mxu0 }
 0x205   : > { %v1462_v15 = vadd.f32 %v1461_v8, %v6372_v11 }
 0x206   : > { %v6356_v57 = vpop.eup %5116  ;;  %v1463_v58 = vpop.f32.mrf.mxu0 }
 0x207   : > { %v1654_v59 = vpack.c.bf16 %v6356_v57, %v6354_v56  ;;  %v1464_v16 = vadd.f32 %v1463_v58, %v6326_v39  ;;  %5120 = vtanh.f32 %v1462_v15 }
 0x208   : > { %v1465_v60 = vpop.f32.mrf.mxu0 }
 0x209   : > { %v1466_v19 = vadd.f32 %v1465_v60, %v6372_v11  ;;  %5122 = vtanh.f32 %v1464_v16 }
 0x20a   : > { %v6360_v31 = vpop.f32.mrf.mxu0 }
 0x20b   : > { %5124 = vtanh.f32 %v1466_v19 }
 0x20c   : > { %v6362_v61 = vpop.f32.mrf.mxu0 }
 0x20e   : > { %v6364_v63 = vpop.f32.mrf.mxu0 }
 0x210   : > { %v1475_v23 = vpop.f32.mrf.mxu0  ;;  %v6392_v43 = vpop.eup %5118 }
 0x211   : > { %v1476_v20 = vadd.f32 %v1475_v23, %v6372_v11 }
 0x212   : > { %v1479_v0 = vpop.f32.mrf.mxu0 }
 0x213   : > { %5126 = vtanh.f32 %v1476_v20  ;;  %v1480_v60 = vadd.f32 %v1479_v0, %v6326_v39  ;;  %v1470_v0 = vadd.f32 %v6360_v31, %v6326_v39  ;;  %v1460_v31 = vadd.f32 %v6352_v55, %v6326_v39 }
 0x214   : > { %v1481_v1 = vpop.f32.mrf.mxu0  ;;  %v6394_v44 = vpop.eup %5120  ;;  %v1446_v55 = vadd.f32 %v6338_v7, %v6372_v11 }
 0x215   : > { %v1482_v22 = vadd.f32 %v1481_v1, %v6372_v11 }
 0x216   : > { %v1483_v6 = vpop.f32.mrf.mxu0  ;;  %v6397_v14 = vpop.eup %5122 }
 0x217   : > { %v1484_v62 = vadd.f32 %v1483_v6, %v6326_v39  ;;  %5128 = vtanh.f32 %v1482_v22  ;;  %v1472_v6 = vadd.f32 %v6362_v61, %v6372_v11 }
 0x218   : > { %v1485_v49 = vpop.f32.mrf.mxu0  ;;  %v6400_v58 = vpop.eup %5124 }
 0x219   : > { %v1486_v25 = vadd.f32 %v1485_v49, %v6372_v11  ;;  %5130 = vtanh.f32 %v1484_v62 }
 0x21a   : > { %v1489_v12 = vpop.f32.mrf.mxu0 }
 0x21b   : > { %5132 = vtanh.f32 %v1486_v25  ;;  %v1490_v40 = vadd.f32 %v1489_v12, %v6326_v39  ;;  %v1474_v12 = vadd.f32 %v6364_v63, %v6326_v39 }
 0x21c   : > { %v1491_v13 = vpop.f32.mrf.mxu0 }
 0x21d   : > { %v1492_v32 = vadd.f32 %v1491_v13, %v6372_v11 }
 0x21e   : > { %v1493_v2 = vpop.f32.mrf.mxu0 }
 0x21f   : > { %v1494_v37 = vadd.f32 %v1493_v2, %v6326_v39 }
 0x220   : > { %v1495_v21 = vpop.f32.mrf.mxu0  ;;  %v6403_v1 = vpop.eup %5126 }
 0x221   : > { %v1496_v3 = vadd.f32 %v1495_v21, %v6372_v11 }
 0x222   : > { %v1499_v24 = vpop.f32.mrf.mxu0 }
 0x223   : > { %5134 = vtanh.f32 %v1496_v3  ;;  %v1500_v30 = vadd.f32 %v1499_v24, %v6326_v39  ;;  %v1452_v3 = vadd.f32 %v6342_v48, %v6372_v11 }
 0x224   : > { %v1501_v26 = vpop.f32.mrf.mxu0  ;;  %v6408_v9 = vpop.eup %5128 }
 0x225   : > { %v1502_v27 = vadd.f32 %v1501_v26, %v6372_v11 }
 0x226   : > { %v1503_v28 = vpop.f32.mrf.mxu0  ;;  %v6412_v13 = vpop.eup %5130 }
 0x227   : > { %v1504_v29 = vadd.f32 %v1503_v28, %v6326_v39  ;;  %5136 = vtanh.f32 %v1502_v27 }
 0x228   : > { %v1505_v17 = vpop.f32.mrf.mxu0  ;;  %v5133_v15 = vpop.eup %5132 }
 0x229   : > { %v1506_v10 = vadd.f32 %v1505_v17, %v6372_v11  ;;  %5138 = vtanh.f32 %v1504_v29  ;;  %v1454_v29 = vadd.f32 %v6348_v53, %v6326_v39 }
 0x22a   : > { %v1509_v18 = vpop.f32.mrf.mxu0 }
 0x22b   : > { %5140 = vtanh.f32 %v1506_v10  ;;  %v1510_v4 = vadd.f32 %v1509_v18, %v6326_v39 }
 0x22c   : > { %5142 = vtanh.f32 %v1500_v30  ;;  %v1511_v41 = vpop.f32.mrf.mxu0 }
 0x22d   : > { %5144 = vtanh.f32 %v1492_v32  ;;  %v1512_v45 = vadd.f32 %v1511_v41, %v6372_v11 }
 0x22e   : > { %5146 = vtanh.f32 %v1494_v37  ;;  %v1513_v52 = vpop.f32.mrf.mxu0  ;;  %v1450_v37 = vadd.f32 %v6340_v47, %v6326_v39  ;;  %v1436_v47 = vadd.f32 %v6332_v42, %v6372_v11 }
 0x22f   : > { %5148 = vtanh.f32 %v1490_v40  ;;  %v1514_v8 = vadd.f32 %v1513_v52, %v6326_v39  ;;  %v1442_v40 = vadd.f32 %v6335_v34, %v6372_v11  ;;  %v1663_v52 = vpack.c.bf16 %v5133_v15, %v6408_v9 }
 0x230   : > { %5150 = vtanh.f32 %v1510_v4  ;;  %v1515_v23 = vpop.f32.mrf.mxu0  ;;  %v5135_v2 = vpop.eup %5134 }
 0x231   : > { %5152 = vtanh.f32 %v1514_v8  ;;  %v1516_v49 = vadd.f32 %v1515_v23, %v6372_v11 }
 0x232   : > { %5154 = vtanh.f32 %v1512_v45  ;;  %v1519_v46 = vpop.f32.mrf.mxu0 }
 0x233   : > { %5156 = vtanh.f32 %v1516_v49  ;;  %v1520_v61 = vadd.f32 %v1519_v46, %v6326_v39 }
 0x234   : > { %5158 = vtanh.f32 %v1480_v60  ;;  %v1521_v16 = vpop.f32.mrf.mxu0  ;;  %v5137_v19 = vpop.eup %5136 }
 0x235   : > { %5160 = vtanh.f32 %v1472_v6  ;;  %v1522_v20 = vadd.f32 %v1521_v16, %v6372_v11  ;;  %v1432_v6 = vadd.f32 %v6329_v36, %v6372_v11 }
 0x236   : > { %5162 = vtanh.f32 %v1474_v12  ;;  %v1523_v63 = vpop.f32.mrf.mxu0  ;;  %v5139_v21 = vpop.eup %5138 }
 0x237   : > { %5164 = vtanh.f32 %v1470_v0  ;;  %v1524_v22 = vadd.f32 %v1523_v63, %v6326_v39 }
 0x238   : > { %v5141_v62 = vpop.eup %5140  ;;  %5166 = vtanh.f32 %v1520_v61  ;;  %v1525_v24 = vpop.f32.mrf.mxu0 }
 0x239   : > { %v5143_v25 = vpop.eup %5142  ;;  %5168 = vtanh.f32 %v1524_v22  ;;  %v1526_v26 = vadd.f32 %v1525_v24, %v6372_v11  ;;  %v1667_v27 = vpack.c.bf16 %v5141_v62, %v5137_v19 }
 0x23a   : > { %v5145_v28 = vpop.eup %5144  ;;  %5170 = vtanh.f32 %v1522_v20  ;;  %v6426_v30 = vpop.f32.mrf.mxu0  ;;  %v1666_v17 = vpack.c.bf16 %v5139_v21, %v5143_v25 }
 0x23b   : > { %v5147_v32 = vpop.eup %5146  ;;  %5172 = vtanh.f32 %v1526_v26  ;;  %1790 = vmatprep.subr.bf16.mxu1 %v1667_v27  ;;  %v1665_v10 = vpack.c.bf16 %v5135_v2, %v5145_v28 }
 0x23c   : > { %v5149_v48 = vpop.eup %5148  ;;  %5174 = vtanh.f32 %v1460_v31  ;;  %v6432_v18 = vpop.f32.mrf.mxu0  ;;  %1791 = vmatpush1.bf16.msra.mxu1 %v1666_v17 }
 0x23d   : > { %v6434_v53 = vpop.eup %5150  ;;  %5176 = vtanh.f32 %v1452_v3  ;;  %1792 = vmatprep.subr.bf16.mxu1 %v1665_v10  ;;  %v1664_v41 = vpack.c.bf16 %v5147_v32, %v5149_v48 }
 0x23e   : > { %v6438_v4 = vpop.eup %5152  ;;  %5178 = vtanh.f32 %v1454_v29  ;;  %v6440_v7 = vpop.f32.mrf.mxu0 }
 0x23f   : > { %v6442_v45 = vpop.eup %5154  ;;  %5180 = vtanh.f32 %v1446_v55  ;;  %v1668_v8 = vpack.c.bf16 %v6438_v4, %v6434_v53  ;;  %v4921_v53 = vld [vmem:[%s7420_s3 + $0x10] ss:$8 sps:$4 sm:$0xff]   ;;  %v4922_v4 = vld [vmem:[%s7420_s3 + $0x24] ss:$8 sps:$4 sm:$0xff]  }
 0x240   : > { %v6449_v34 = vpop.eup %5156  ;;  %5182 = vtanh.f32 %v1450_v37  ;;  %v6451_v60 = vpop.f32.mrf.mxu0  ;;  %1793 = vmatpush1.bf16.msra.mxu1 %v1664_v41 }
 0x241   : > { %v5159_v23 = vpop.eup %5158  ;;  %5184 = vtanh.f32 %v1442_v40  ;;  %1794 = vmatprep.subr.bf16.mxu1 %v1663_v52  ;;  %v1669_v42 = vpack.c.bf16 %v6449_v34, %v6442_v45  ;;  %v4938_v45 = vld [vmem:[#allocation5 + $0x30] sm:$0xff]   ;;  %v4940_v34 = vld [vmem:[#allocation5 + $0x20] sm:$0xff]  }
 0x242   : > { %v5161_v49 = vpop.eup %5160  ;;  %v6457_v9 = vpop.f32.mrf.mxu0  ;;  %v1662_v12 = vpack.c.bf16 %v6412_v13, %v5159_v23  ;;  %5186 = vtanh.f32 %v1436_v47  ;;  %v1659_v13 = vpack.c.bf16 %v6400_v58, %v6394_v44 }
 0x243   : > { %v5163_v46 = vpop.eup %5162  ;;  %v1661_v0 = vpack.c.bf16 %v6403_v1, %v5161_v49  ;;  %5188 = vtanh.f32 %v1432_v6 }
 0x244   : > { %v5165_v15 = vpop.eup %5164  ;;  %v6461_v61 = vpop.f32.mrf.mxu0  ;;  %1795 = vmatpush1.bf16.msra.mxu1 %v1662_v12 }
 0x245   : > { %v6463_v16 = vpop.eup %5166  ;;  %1796 = vmatprep.subr.bf16.mxu1 %v1661_v0  ;;  %v1660_v19 = vpack.c.bf16 %v5163_v46, %v5165_v15 }
 0x246   : > { %v6465_v36 = vpop.eup %5168  ;;  %v6467_v2 = vpop.f32.mrf.mxu0 }
 0x247   : > { %v6469_v20 = vpop.eup %5170  ;;  %v1670_v1 = vpack.c.bf16 %v6465_v36, %v6463_v16  ;;  %v4925_v16 = vld [vmem:[%s7420_s3 + $0x34] ss:$8 sps:$4 sm:$0xff]  }
 0x248   : > { %v6475_v63 = vpop.eup %5172  ;;  %v6477_v21 = vpop.f32.mrf.mxu0  ;;  %1797 = vmatpush1.bf16.msra.mxu1 %v1660_v19  ;;  %v4941_v36 = vld [vmem:[#allocation5 + $0x18] sm:$0xff]  }
 0x249   : > { %v5175_v22 = vpop.eup %5174  ;;  %1798 = vmatprep.subr.bf16.mxu1 %v1659_v13  ;;  %v1671_v62 = vpack.c.bf16 %v6475_v63, %v6469_v20  ;;  %v4919_v20 = vld [vmem:[%s7420_s3 + $0x14] ss:$8 sps:$4 sm:$0xff]  }
 0x24a   : > { %v5177_v31 = vpop.eup %5176  ;;  %v6481_v24 = vpop.f32.mrf.mxu0  ;;  %v1658_v25 = vpack.c.bf16 %v6397_v14, %v5175_v22  ;;  %v4937_v63 = vld [vmem:[#allocation5 + $0x38] sm:$0xff]  }
 0x24b   : > { %v5179_v3 = vpop.eup %5178  ;;  %v1657_v44 = vpack.c.bf16 %v6392_v43, %v5177_v31 }
 0x24c   : > { %v5181_v58 = vpop.eup %5180  ;;  %v1551_v26 = vpop.f32.mrf.mxu0  ;;  %1799 = vmatpush1.bf16.msra.mxu1 %v1658_v25 }
 0x24d   : > { %v5183_v27 = vpop.eup %5182  ;;  %1800 = vmatprep.subr.bf16.mxu1 %v1657_v44  ;;  %v1552_v44 = vadd.f32 %v1551_v26, %v6372_v11  ;;  %v1544_v26 = vadd.f32 %v6467_v2, %v6326_v39  ;;  %v1534_v2 = vadd.f32 %v6440_v7, %v6326_v39 }
 0x24e   : > { %v5185_v28 = vpop.eup %5184  ;;  %v1553_v29 = vpop.f32.mrf.mxu0  ;;  %v1656_v17 = vpack.c.bf16 %v5179_v3, %v5183_v27  ;;  %v1546_v27 = vadd.f32 %v6477_v21, %v6372_v11  ;;  %v1536_v21 = vadd.f32 %v6451_v60, %v6372_v11 }
 0x24f   : > { %v1655_v32 = vpack.c.bf16 %v5181_v58, %v5185_v28  ;;  %v5187_v55 = vpop.eup %5186  ;;  %v1554_v58 = vadd.f32 %v1553_v29, %v6326_v39 }
 0x250   : > { %v1555_v10 = vpop.f32.mrf.mxu0  ;;  %1801 = vmatpush1.bf16.msra.mxu1 %v1656_v17  ;;  %v5189_v48 = vpop.eup %5188  ;;  %v1550_v17 = vadd.f32 %v6481_v24, %v6326_v39  ;;  %v1540_v24 = vadd.f32 %v6457_v9, %v6326_v39  ;;  %v1530_v9 = vadd.f32 %v6426_v30, %v6326_v39 }
 0x251   : > { %1802 = vmatprep.subr.bf16.mxu1 %v1655_v32  ;;  %v1653_v40 = vpack.c.bf16 %v5187_v55, %v5189_v48  ;;  %v1556_v25 = vadd.f32 %v1555_v10, %v6372_v11  ;;  %v1542_v55 = vadd.f32 %v6461_v61, %v6372_v11  ;;  %v1532_v61 = vadd.f32 %v6432_v18, %v6372_v11 }
 0x252   : > { %v1559_v37 = vpop.f32.mrf.mxu0 }
 0x253   : > { %v1560_v3 = vadd.f32 %v1559_v37, %v6326_v39 }
 0x254   : > { %v1561_v14 = vpop.f32.mrf.mxu0  ;;  %1803 = vmatpush1.bf16.msra.mxu1 %v1654_v59 }
 0x255   : > { %1804 = vmatprep.subr.bf16.mxu1 %v1653_v40  ;;  %v1562_v22 = vadd.f32 %v1561_v14, %v6372_v11 }
 0x256   : > { %v1563_v43 = vpop.f32.mrf.mxu0 }
 0x257   : > { %v1564_v31 = vadd.f32 %v1563_v43, %v6326_v39 }
 0x258   : > { %v1565_v41 = vpop.f32.mrf.mxu0  ;;  %1805 = vmatpush1.bf16.msra.mxu1 %v1652_v54 }
 0x259   : > { %v1566_v19 = vadd.f32 %v1565_v41, %v6372_v11 }
 0x25a   : > { %v1569_v47 = vpop.f32.mrf.mxu0 }
 0x25b   : > { %v1570_v13 = vadd.f32 %v1569_v47, %v6326_v39 }
 0x25c   : > { %v1571_v52 = vpop.f32.mrf.mxu0 }
 0x25d   : > { %v1572_v50 = vadd.f32 %v1571_v52, %v6372_v11 }
 0x25e   : > { %v1573_v23 = vpop.f32.mrf.mxu0 }
 0x25f   : > { %v1574_v54 = vadd.f32 %v1573_v23, %v6326_v39 }
 0x260   : > { %v1575_v6 = vpop.f32.mrf.mxu0 }
 0x261   : > { %v1576_v12 = vadd.f32 %v1575_v6, %v6372_v11 }
 0x262   : > { %v1579_v49 = vpop.f32.mrf.mxu0 }
 0x263   : > { %v1580_v46 = vadd.f32 %v1579_v49, %v6326_v39  ;;  %5190 = vtanh.f32 %v1576_v12 }
 0x264   : > { %v1581_v0 = vpop.f32.mrf.mxu0 }
 0x265   : > { %v1582_v56 = vadd.f32 %v1581_v0, %v6372_v11  ;;  %5192 = vtanh.f32 %v1580_v46 }
 0x266   : > { %v1583_v57 = vpop.f32.mrf.mxu0 }
 0x267   : > { %v1584_v59 = vadd.f32 %v1583_v57, %v6326_v39 }
 0x268   : > { %v1585_v15 = vpop.f32.mrf.mxu0 }
 0x269   : > { %5194 = vtanh.f32 %v1584_v59  ;;  %v1586_v51 = vadd.f32 %v1585_v15, %v6372_v11 }
 0x26a   : > { %5196 = vtanh.f32 %v1582_v56 }
 0x26b   : > { %5198 = vtanh.f32 %v1586_v51 }
 0x26c   : > { %5200 = vtanh.f32 %v1572_v50 }
 0x26d   : > { %5202 = vtanh.f32 %v1574_v54 }
 0x26e   : > { %5204 = vtanh.f32 %v1566_v19 }
 0x26f   : > { %5206 = vtanh.f32 %v1570_v13 }
 0x270   : > { %5208 = vtanh.f32 %v1562_v22  ;;  %v5191_v28 = vpop.eup %5190 }
 0x271   : > { %5210 = vtanh.f32 %v1564_v31 }
 0x272   : > { %5212 = vtanh.f32 %v1556_v25  ;;  %v5193_v32 = vpop.eup %5192 }
 0x273   : > { %5214 = vtanh.f32 %v1560_v3 }
 0x274   : > { %5216 = vtanh.f32 %v1552_v44  ;;  %v4916_v44 = vld [vmem:[%s7420_s3] ss:$8 sps:$4 sm:$0xff]  }
 0x275   : > { %5218 = vtanh.f32 %v1554_v58  ;;  %v4927_v58 = vld [vmem:[%s7420_s3 + $0x30] ss:$8 sps:$4 sm:$0xff]  }
 0x276   : > { %v5195_v10 = vpop.eup %5194  ;;  %5220 = vtanh.f32 %v1546_v27  ;;  %v4928_v27 = vld [vmem:[%s7420_s3 + $0x44] ss:$8 sps:$4 sm:$0xff]  }
 0x277   : > { %v5197_v29 = vpop.eup %5196  ;;  %v1682_v48 = vpack.c.bf16 %v5195_v10, %v5193_v32  ;;  %5222 = vtanh.f32 %v1550_v17  ;;  %v4944_v17 = vld [vmem:[#allocation5] sm:$0xff]   ;;  %v4945_v10 = vld [vmem:[#allocation5 + $0x68] sm:$0xff]  }
 0x278   : > { %v5199_v37 = vpop.eup %5198  ;;  %5224 = vtanh.f32 %v1542_v55  ;;  %v4930_v32 = vld [vmem:[%s7420_s3 + $0x40] ss:$8 sps:$4 sm:$0xff]   ;;  %v4931_v55 = vld [vmem:[%s7420_s3 + $0x54] ss:$8 sps:$4 sm:$0xff]  }
 0x279   : > { %v1683_v40 = vpack.c.bf16 %v5199_v37, %v5197_v29  ;;  %v5201_v14 = vpop.eup %5200  ;;  %5226 = vtanh.f32 %v1544_v26  ;;  %v1785_v60 = vsel %vm1068_vm3, %v1682_v48, 0  ;;  %v4946_v26 = vld [vmem:[#allocation5 + $0x60] sm:$0xff]   ;;  %v4933_v29 = vld [vmem:[%s7420_s3 + $0x50] ss:$8 sps:$4 sm:$0xff]  }
 0x27a   : > { %v5203_v43 = vpop.eup %5202  ;;  %5228 = vtanh.f32 %v1536_v21  ;;  %v1681_v41 = vpack.c.bf16 %v5191_v28, %v5201_v14  ;;  %v4943_v28 = vld [vmem:[#allocation5 + $0x8] sm:$0xff]   ;;  %v4947_v48 = vld [vmem:[#allocation5 + $0x58] sm:$0xff]   ;;  %v4948_v37 = vld [vmem:[#allocation5 + $0x50] sm:$0xff]  }
 0x27b   : > { %4455 = vmatprep.subr.msk.bf16.mxu1 %vm1068_vm3, %v1683_v40  ;;  %v5205_v47 = vpop.eup %5204  ;;  %5230 = vtanh.f32 %v1540_v24  ;;  %v4934_v21 = vld [vmem:[%s7420_s3 + $0x64] ss:$8 sps:$4 sm:$0xff]   ;;  %v4936_v24 = vld [vmem:[%s7420_s3 + $0x60] ss:$8 sps:$4 sm:$0xff]  }
 0x27c   : > { %1807 = vmatpush2.bf16.msra.mxu1 %v1785_v60  ;;  %v5207_v11 = vpop.eup %5206  ;;  %5232 = vtanh.f32 %v1532_v61  ;;  %v4949_v61 = vld [vmem:[#allocation5 + $0x48] sm:$0xff]   ;;  %v4950_v40 = vld [vmem:[#allocation5 + $0x40] sm:$0xff]  }
 0x27d   : > { %1808 = vmatprep.subr.bf16.mxu1 %v1681_v41  ;;  %v5209_v18 = vpop.eup %5208  ;;  %5234 = vtanh.f32 %v1534_v2  ;;  %v1680_v7 = vpack.c.bf16 %v5203_v43, %v5207_v11 }
 0x27e   : > { %v5211_v52 = vpop.eup %5210  ;;  %v1679_v23 = vpack.c.bf16 %v5205_v47, %v5209_v18  ;;  %5236 = vtanh.f32 %v1530_v9 }
 0x27f   : > { %v5213_v6 = vpop.eup %5212 }
 0x280   : > { %1809 = vmatpush2.bf16.msra.mxu1 %v1680_v7  ;;  %v5215_v49 = vpop.eup %5214 }
 0x281   : > { %1810 = vmatprep.subr.bf16.mxu1 %v1679_v23  ;;  %v5217_v12 = vpop.eup %5216  ;;  %v1678_v46 = vpack.c.bf16 %v5211_v52, %v5215_v49 }
 0x282   : > { %v5219_v0 = vpop.eup %5218  ;;  %v1677_v56 = vpack.c.bf16 %v5213_v6, %v5217_v12 }
 0x283   : > { %v5221_v39 = vpop.eup %5220 }
 0x284   : > { %1811 = vmatpush2.bf16.msra.mxu1 %v1678_v46  ;;  %v5223_v30 = vpop.eup %5222 }
 0x285   : > { %1812 = vmatprep.subr.bf16.mxu1 %v1677_v56  ;;  %v5225_v57 = vpop.eup %5224  ;;  %v1676_v59 = vpack.c.bf16 %v5219_v0, %v5223_v30 }
 0x286   : > { %v5227_v15 = vpop.eup %5226  ;;  %v1675_v50 = vpack.c.bf16 %v5221_v39, %v5225_v57 }
 0x287   : > { %v5229_v51 = vpop.eup %5228 }
 0x288   : > { %1813 = vmatpush2.bf16.msra.mxu1 %v1676_v59  ;;  %v5231_v54 = vpop.eup %5230 }
 0x289   : > { %1814 = vmatprep.subr.bf16.mxu1 %v1675_v50  ;;  %v5233_v19 = vpop.eup %5232  ;;  %v1674_v13 = vpack.c.bf16 %v5227_v15, %v5231_v54 }
 0x28a   : > { %v5235_v22 = vpop.eup %5234  ;;  %v1673_v31 = vpack.c.bf16 %v5229_v51, %v5233_v19 }
 0x28b   : > { %v5237_v25 = vpop.eup %5236 }
 0x28c   : > { %1815 = vmatpush2.bf16.msra.mxu1 %v1674_v13  ;;  %v1672_v3 = vpack.c.bf16 %v5235_v22, %v5237_v25 }
 0x28d   : > { %1816 = vmatprep.subr.bf16.mxu1 %v1673_v31 }
 0x290   : > { %1817 = vmatpush2.bf16.msra.mxu1 %v1672_v3 }
 0x291   : > { %1818 = vmatprep.subr.bf16.mxu1 %v1671_v62  ;;  %v5670_v62 = vmov 0  }
 0x294   : > { %1819 = vmatpush2.bf16.msra.mxu1 %v1670_v1  ;;  %v4942_v1 = vld [vmem:[#allocation5 + $0x10] sm:$0xff]  }
 0x295   : > { %1820 = vmatprep.subr.bf16.mxu1 %v1669_v42  ;;  %v4924_v42 = vld [vmem:[%s7420_s3 + $0x20] ss:$8 sps:$4 sm:$0xff]  }
 0x298   : > { %1821 = vmatpush2.bf16.msra.mxu1 %v1668_v8  ;;  %v4939_v8 = vld [vmem:[#allocation5 + $0x28] sm:$0xff]  }
 0x299   : > { %2040 = vmatprep.subr.bf16.mxu1 %v5670_v62 }
 0x29b   : > { %1823 = vmatmul.mubr.bf16.vlgmr.msra.gmra.mxu1 %v4916_v44 }
 0x29c   : > { %4457 = vmatprep.mubr.msk.bf16.mxu1 %vm1761_vm7, %v4919_v20  ;;  %2041 = vmatpush1.bf16.msra.mxu1 %v4937_v63 }
 0x29d   : > { %2042 = vmatprep.subr.bf16.mxu1 %v5670_v62 }
 0x2a0   : > { %2043 = vmatpush1.bf16.msra.mxu1 %v4938_v45 }
 0x2a1   : > { %2044 = vmatprep.subr.bf16.mxu1 %v5670_v62 }
 0x2a3   : > { %1833 = vmatmul.mubr.bf16.gmra.mxu1 %v4921_v53 }
 0x2a4   : > { %4458 = vmatprep.mubr.msk.bf16.mxu1 %vm1761_vm7, %v4922_v4  ;;  %2045 = vmatpush1.bf16.msra.mxu1 %v4939_v8 }
 0x2a5   : > { %2046 = vmatprep.subr.bf16.mxu1 %v5670_v62 }
 0x2a8   : > { %2047 = vmatpush1.bf16.msra.mxu1 %v4940_v34 }
 0x2a9   : > { %2048 = vmatprep.subr.bf16.mxu1 %v5670_v62 }
 0x2ab   : > { %1843 = vmatmul.mubr.bf16.gmra.mxu1 %v4924_v42 }
 0x2ac   : > { %4459 = vmatprep.mubr.msk.bf16.mxu1 %vm1761_vm7, %v4925_v16  ;;  %2049 = vmatpush1.bf16.msra.mxu1 %v4941_v36  ;;  %v4951_v36 = vld [vmem:[%s7422_s5 + $0x70] ss:$8 sps:$4 sm:$0xff]  }
 0x2ad   : > { %2050 = vmatprep.subr.bf16.mxu1 %v5670_v62 }
 0x2b0   : > { %2051 = vmatpush1.bf16.msra.mxu1 %v4942_v1  ;;  %v4953_v1 = vld [vmem:[%s7422_s5 + $0x74] ss:$8 sps:$4 sm:$0xff]  }
 0x2b1   : > { %2052 = vmatprep.subr.bf16.mxu1 %v5670_v62  ;;  %2840 = vmatprep.subr.bf16.mxu0 %v4953_v1 }
 0x2b2   : > { %2841 = vmatpush1.bf16.msra.mxu0 %v4951_v36 }
 0x2b3   : > { %1853 = vmatmul.mubr.bf16.gmra.mxu1 %v4927_v58  ;;  %v4954_v58 = vld [vmem:[%s7422_s5 + $0x60] ss:$8 sps:$4 sm:$0xff]  }
 0x2b4   : > { %4460 = vmatprep.mubr.msk.bf16.mxu1 %vm1761_vm7, %v4928_v27  ;;  %2053 = vmatpush1.bf16.msra.mxu1 %v4943_v28  ;;  %v4956_v27 = vld [vmem:[%s7422_s5 + $0x64] ss:$8 sps:$4 sm:$0xff]   ;;  %v4957_v28 = vld [vmem:[%s7422_s5 + $0x50] ss:$8 sps:$4 sm:$0xff]  }
 0x2b5   : > { %2054 = vmatprep.subr.bf16.mxu1 %v5670_v62  ;;  %2842 = vmatprep.subr.bf16.mxu0 %v4956_v27 }
 0x2b6   : > { %2843 = vmatpush1.bf16.msra.mxu0 %v4954_v58  ;;  %v5019_v58 = vld [vmem:[%s7422_s5 + $0x114] ss:$8 sps:$4 sm:$0xff]  }
 0x2b8   : > { %2055 = vmatpush1.bf16.msra.mxu1 %v4944_v17  ;;  %v4959_v17 = vld [vmem:[%s7422_s5 + $0x54] ss:$8 sps:$4 sm:$0xff]  }
 0x2b9   : > { %2060 = vmatprep.subr.bf16.mxu1 %v5670_v62  ;;  %2844 = vmatprep.subr.bf16.mxu0 %v4959_v17 }
 0x2ba   : > { %2845 = vmatpush1.bf16.msra.mxu0 %v4957_v28 }
 0x2bb   : > { %1863 = vmatmul.mubr.bf16.gmra.mxu1 %v4930_v32  ;;  %v4960_v32 = vld [vmem:[%s7422_s5 + $0x40] ss:$8 sps:$4 sm:$0xff]  }
 0x2bc   : > { %4461 = vmatprep.mubr.msk.bf16.mxu1 %vm1761_vm7, %v4931_v55  ;;  %2061 = vmatpush2.bf16.msra.mxu1 %v4945_v10  ;;  %v4962_v55 = vld [vmem:[%s7422_s5 + $0x44] ss:$8 sps:$4 sm:$0xff]   ;;  %v4963_v10 = vld [vmem:[%s7422_s5 + $0x30] ss:$8 sps:$4 sm:$0xff]  }
 0x2bd   : > { %2062 = vmatprep.subr.bf16.mxu1 %v5670_v62  ;;  %2846 = vmatprep.subr.bf16.mxu0 %v4962_v55 }
 0x2be   : > { %2847 = vmatpush1.bf16.msra.mxu0 %v4960_v32  ;;  %v5017_v32 = vld [vmem:[%s7422_s5 + $0x110] ss:$8 sps:$4 sm:$0xff]  }
 0x2c0   : > { %2063 = vmatpush2.bf16.msra.mxu1 %v4946_v26  ;;  %v4965_v26 = vld [vmem:[%s7422_s5 + $0x34] ss:$8 sps:$4 sm:$0xff]  }
 0x2c1   : > { %2064 = vmatprep.subr.bf16.mxu1 %v5670_v62  ;;  %2848 = vmatprep.subr.bf16.mxu0 %v4965_v26 }
 0x2c2   : > { %2849 = vmatpush1.bf16.msra.mxu0 %v4963_v10 }
 0x2c3   : > { %1873 = vmatmul.mubr.bf16.gmra.mxu1 %v4933_v29  ;;  %v4966_v29 = vld [vmem:[%s7422_s5 + $0x20] ss:$8 sps:$4 sm:$0xff]  }
 0x2c4   : > { %4462 = vmatprep.mubr.msk.bf16.mxu1 %vm1761_vm7, %v4934_v21  ;;  %2065 = vmatpush2.bf16.msra.mxu1 %v4947_v48  ;;  %v4968_v21 = vld [vmem:[%s7422_s5 + $0x24] ss:$8 sps:$4 sm:$0xff]   ;;  %v4969_v48 = vld [vmem:[%s7422_s5 + $0x10] ss:$8 sps:$4 sm:$0xff]  }
 0x2c5   : > { %2066 = vmatprep.subr.bf16.mxu1 %v5670_v62  ;;  %2850 = vmatprep.subr.bf16.mxu0 %v4968_v21  ;;  %v5022_v21 = vld [vmem:[%s7422_s5 + $0x104] ss:$8 sps:$4 sm:$0xff]  }
 0x2c6   : > { %2851 = vmatpush1.bf16.msra.mxu0 %v4966_v29  ;;  %v5020_v29 = vld [vmem:[%s7422_s5 + $0x100] ss:$8 sps:$4 sm:$0xff]  }
 0x2c8   : > { %2067 = vmatpush2.bf16.msra.mxu1 %v4948_v37  ;;  %v4971_v37 = vld [vmem:[%s7422_s5 + $0x14] ss:$8 sps:$4 sm:$0xff]  }
 0x2c9   : > { %2068 = vmatprep.subr.bf16.mxu1 %v5670_v62  ;;  %2852 = vmatprep.subr.bf16.mxu0 %v4971_v37 }
 0x2ca   : > { %2853 = vmatpush1.bf16.msra.mxu0 %v4969_v48 }
 0x2cb   : > { %1883 = vmatmul.mubr.bf16.gmra.mxu1 %v4936_v24  ;;  %v4972_v24 = vld [vmem:[%s7422_s5] ss:$8 sps:$4 sm:$0xff]  }
 0x2cc   : > { %2069 = vmatpush2.bf16.msra.mxu1 %v4949_v61  ;;  %v4974_v61 = vld [vmem:[%s7422_s5 + $0x4] ss:$8 sps:$4 sm:$0xff]  }
 0x2cd   : > { %2070 = vmatprep.subr.bf16.mxu1 %v5670_v62  ;;  %2854 = vmatprep.subr.bf16.mxu0 %v4974_v61 }
 0x2ce   : > { %2855 = vmatpush1.bf16.msra.mxu0 %v4972_v24 }
 0x2d0   : > { %2071 = vmatpush2.bf16.msra.mxu1 %v4950_v40  ;;  %v4977_v40 = vld [vmem:[%s7422_s5 + $0xf4] ss:$8 sps:$4 sm:$0xff]  }
 0x2d1   : > { %2856 = vmatprep.subr.bf16.mxu0 %v4977_v40 }
 0x35b   : > { %v1824_v14 = vpop.f32.mrf.mxu1 }
 0x35d   : > { %v1826_v2 = vpop.f32.mrf.mxu1 }
 0x35f   : > { %v1828_v43 = vpop.f32.mrf.mxu1 }
 0x360   : > { %v1921_v47 = vpack.c.bf16 %v1828_v43, %v1824_v14  ;;  %v4975_v14 = vld [vmem:[%s7422_s5 + $0xf0] ss:$8 sps:$4 sm:$0xff]  }
 0x361   : > { %v1830_v60 = vpop.f32.mrf.mxu1  ;;  %v4990_v43 = vld [vmem:[%s7422_s5 + $0x170] ss:$8 sps:$4 sm:$0xff]   ;;  %2857 = vmatpush2.bf16.msra.mxu0 %v4975_v14 }
 0x362   : > { %v1922_v41 = vpack.c.bf16 %v1830_v60, %v1826_v2  ;;  %v4980_v2 = vld [vmem:[%s7422_s5 + $0xe4] ss:$8 sps:$4 sm:$0xff]   ;;  %v4992_v60 = vld [vmem:[%s7422_s5 + $0x174] ss:$8 sps:$4 sm:$0xff]  }
 0x363   : > { %v1834_v9 = vpop.f32.mrf.mxu1  ;;  %2943 = vmatprep.subr.bf16.mxu1 %v4992_v60  ;;  %2858 = vmatprep.subr.bf16.mxu0 %v4980_v2  ;;  %v5025_v2 = vld [vmem:[%s7422_s5 + $0x1f4] ss:$8 sps:$4 sm:$0xff]  }
 0x364   : > { %4477 = vmatprep.mubr.msk.bf16.mxu1 %vm1166_vm6, %v1922_v41  ;;  %v4998_v41 = vld [vmem:[%s7422_s5 + $0x164] ss:$8 sps:$4 sm:$0xff]  }
 0x365   : > { %v1836_v11 = vpop.f32.mrf.mxu1  ;;  %2073 = vmatmul.mubr.bf16.vlgmr.msra.gmra.mxu1 %v1921_v47  ;;  %v4978_v47 = vld [vmem:[%s7422_s5 + $0xe0] ss:$8 sps:$4 sm:$0xff]  }
 0x366   : > { %2944 = vmatpush1.bf16.msra.mxu1 %v4990_v43  ;;  %2859 = vmatpush2.bf16.msra.mxu0 %v4978_v47  ;;  %v5023_v47 = vld [vmem:[%s7422_s5 + $0x1f0] ss:$8 sps:$4 sm:$0xff]  }
 0x367   : > { %v1838_v18 = vpop.f32.mrf.mxu1  ;;  %2945 = vmatprep.subr.bf16.mxu1 %v4998_v41 }
 0x368   : > { %v1923_v23 = vpack.c.bf16 %v1838_v18, %v1834_v9  ;;  %v4996_v9 = vld [vmem:[%s7422_s5 + $0x160] ss:$8 sps:$4 sm:$0xff]   ;;  %v5004_v18 = vld [vmem:[%s7422_s5 + $0x154] ss:$8 sps:$4 sm:$0xff]  }
 0x369   : > { %v1840_v7 = vpop.f32.mrf.mxu1 }
 0x36a   : > { %v1924_v52 = vpack.c.bf16 %v1840_v7, %v1836_v11  ;;  %v4983_v11 = vld [vmem:[%s7422_s5 + $0xd4] ss:$8 sps:$4 sm:$0xff]   ;;  %v4981_v7 = vld [vmem:[%s7422_s5 + $0xd0] ss:$8 sps:$4 sm:$0xff]   ;;  %2946 = vmatpush1.bf16.msra.mxu1 %v4996_v9 }
 0x36b   : > { %v1844_v6 = vpop.f32.mrf.mxu1  ;;  %2860 = vmatprep.subr.bf16.mxu0 %v4983_v11  ;;  %2947 = vmatprep.subr.bf16.mxu1 %v5004_v18 }
 0x36c   : > { %4478 = vmatprep.mubr.msk.bf16.mxu1 %vm1166_vm6, %v1924_v52  ;;  %v5002_v52 = vld [vmem:[%s7422_s5 + $0x150] ss:$8 sps:$4 sm:$0xff]   ;;  %2861 = vmatpush2.bf16.msra.mxu0 %v4981_v7  ;;  %v5026_v7 = vld [vmem:[%s7422_s5 + $0x1e0] ss:$8 sps:$4 sm:$0xff]  }
 0x36d   : > { %v1846_v49 = vpop.f32.mrf.mxu1  ;;  %2081 = vmatmul.mubr.bf16.gmra.mxu1 %v1923_v23  ;;  %v4986_v23 = vld [vmem:[%s7422_s5 + $0xc4] ss:$8 sps:$4 sm:$0xff]  }
 0x36e   : > { %2948 = vmatpush1.bf16.msra.mxu1 %v5002_v52  ;;  %2862 = vmatprep.subr.bf16.mxu0 %v4986_v23  ;;  %v5028_v52 = vld [vmem:[%s7422_s5 + $0x1e4] ss:$8 sps:$4 sm:$0xff]  }
 0x36f   : > { %v1848_v12 = vpop.f32.mrf.mxu1 }
 0x370   : > { %v1925_v56 = vpack.c.bf16 %v1848_v12, %v1844_v6  ;;  %v4984_v6 = vld [vmem:[%s7422_s5 + $0xc0] ss:$8 sps:$4 sm:$0xff]   ;;  %v4987_v12 = vld [vmem:[%s7422_s5 + $0xb0] ss:$8 sps:$4 sm:$0xff]  }
 0x371   : > { %v1850_v46 = vpop.f32.mrf.mxu1  ;;  %2863 = vmatpush2.bf16.msra.mxu0 %v4984_v6 }
 0x372   : > { %v1926_v0 = vpack.c.bf16 %v1850_v46, %v1846_v49  ;;  %v4989_v49 = vld [vmem:[%s7422_s5 + $0xb4] ss:$8 sps:$4 sm:$0xff]   ;;  %v4995_v46 = vld [vmem:[%s7422_s5 + $0xa4] ss:$8 sps:$4 sm:$0xff]  }
 0x373   : > { %v1854_v39 = vpop.f32.mrf.mxu1  ;;  %2864 = vmatprep.subr.bf16.mxu0 %v4989_v49 }
 0x374   : > { %4479 = vmatprep.mubr.msk.bf16.mxu1 %vm1166_vm6, %v1926_v0  ;;  %v4993_v0 = vld [vmem:[%s7422_s5 + $0xa0] ss:$8 sps:$4 sm:$0xff]  }
 0x375   : > { %v1856_v30 = vpop.f32.mrf.mxu1  ;;  %2089 = vmatmul.mubr.bf16.gmra.mxu1 %v1925_v56  ;;  %2865 = vmatpush2.bf16.msra.mxu0 %v4987_v12  ;;  %v5001_v56 = vld [vmem:[%s7422_s5 + $0x94] ss:$8 sps:$4 sm:$0xff]  }
 0x376   : > { %2866 = vmatprep.subr.bf16.mxu0 %v4995_v46 }
 0x377   : > { %v1858_v57 = vpop.f32.mrf.mxu1 }
 0x378   : > { %v1927_v50 = vpack.c.bf16 %v1858_v57, %v1854_v39  ;;  %v4999_v39 = vld [vmem:[%s7422_s5 + $0x90] ss:$8 sps:$4 sm:$0xff]  }
 0x379   : > { %v1860_v59 = vpop.f32.mrf.mxu1  ;;  %2867 = vmatpush2.bf16.msra.mxu0 %v4993_v0 }
 0x37a   : > { %v1928_v15 = vpack.c.bf16 %v1860_v59, %v1856_v30  ;;  %2868 = vmatprep.subr.bf16.mxu0 %v5001_v56  ;;  %v5031_v56 = vld [vmem:[%s7422_s5 + $0x1d4] ss:$8 sps:$4 sm:$0xff]  }
 0x37b   : > { %v1864_v51 = vpop.f32.mrf.mxu1 }
 0x37c   : > { %4480 = vmatprep.mubr.msk.bf16.mxu1 %vm1166_vm6, %v1928_v15  ;;  %v5005_v15 = vld [vmem:[%s7422_s5 + $0x80] ss:$8 sps:$4 sm:$0xff]  }
 0x37d   : > { %v1866_v54 = vpop.f32.mrf.mxu1  ;;  %2097 = vmatmul.mubr.bf16.gmra.mxu1 %v1927_v50  ;;  %2869 = vmatpush2.bf16.msra.mxu0 %v4999_v39  ;;  %v5007_v50 = vld [vmem:[%s7422_s5 + $0x84] ss:$8 sps:$4 sm:$0xff]  }
 0x37e   : > { %2870 = vmatprep.subr.bf16.mxu0 %v5007_v50 }
 0x37f   : > { %v1868_v19 = vpop.f32.mrf.mxu1 }
 0x380   : > { %v1929_v31 = vpack.c.bf16 %v1868_v19, %v1864_v51  ;;  %v5008_v51 = vld [vmem:[%s7422_s5 + $0x140] ss:$8 sps:$4 sm:$0xff]   ;;  %v5010_v19 = vld [vmem:[%s7422_s5 + $0x144] ss:$8 sps:$4 sm:$0xff]  }
 0x381   : > { %v1870_v13 = vpop.f32.mrf.mxu1  ;;  %2949 = vmatprep.subr.bf16.mxu1 %v5010_v19  ;;  %2871 = vmatpush2.bf16.msra.mxu0 %v5005_v15  ;;  %v5032_v19 = vld [vmem:[%s7422_s5 + $0x1c0] ss:$8 sps:$4 sm:$0xff]  }
 0x382   : > { %v1930_v22 = vpack.c.bf16 %v1870_v13, %v1866_v54  ;;  %2950 = vmatpush1.bf16.msra.mxu1 %v5008_v51 }
 0x383   : > { %v1874_v25 = vpop.f32.mrf.mxu1 }
 0x384   : > { %4481 = vmatprep.mubr.msk.bf16.mxu1 %vm1166_vm6, %v1930_v22 }
 0x385   : > { %v1876_v3 = vpop.f32.mrf.mxu1  ;;  %2105 = vmatmul.mubr.bf16.gmra.mxu1 %v1929_v31  ;;  %v5013_v31 = vld [vmem:[%s7422_s5 + $0x134] ss:$8 sps:$4 sm:$0xff]  }
 0x386   : > { %2951 = vmatprep.subr.bf16.mxu1 %v5013_v31  ;;  %v5037_v31 = vld [vmem:[%s7422_s5 + $0x224] ss:$8 sps:$4 sm:$0xff]  }
 0x387   : > { %v1878_v44 = vpop.f32.mrf.mxu1  ;;  %3056 = vmatprep.subr.bf16.mxu0 %v5037_v31 }
 0x388   : > { %v1931_v45 = vpack.c.bf16 %v1878_v44, %v1874_v25 }
 0x389   : > { %v1880_v20 = vpop.f32.mrf.mxu1 }
 0x38a   : > { %v1932_v63 = vpack.c.bf16 %v1880_v20, %v1876_v3  ;;  %v5011_v3 = vld [vmem:[%s7422_s5 + $0x130] ss:$8 sps:$4 sm:$0xff]  }
 0x38b   : > { %v1884_v53 = vpop.f32.mrf.mxu1  ;;  %2952 = vmatpush1.bf16.msra.mxu1 %v5011_v3 }
 0x38c   : > { %4482 = vmatprep.mubr.msk.bf16.mxu1 %vm1166_vm6, %v1932_v63  ;;  %v5014_v63 = vld [vmem:[%s7422_s5 + $0x120] ss:$8 sps:$4 sm:$0xff]  }
 0x38d   : > { %v1886_v4 = vpop.f32.mrf.mxu1  ;;  %2113 = vmatmul.mubr.bf16.gmra.mxu1 %v1931_v45  ;;  %v5016_v45 = vld [vmem:[%s7422_s5 + $0x124] ss:$8 sps:$4 sm:$0xff]  }
 0x38e   : > { %2953 = vmatprep.subr.bf16.mxu1 %v5016_v45 }
 0x38f   : > { %v1888_v8 = vpop.f32.mrf.mxu1  ;;  %2954 = vmatpush1.bf16.msra.mxu1 %v5014_v63 }
 0x390   : > { %v1933_v16 = vpack.c.bf16 %v1888_v8, %v1884_v53  ;;  %2955 = vmatprep.subr.bf16.mxu1 %v5019_v58 }
 0x391   : > { %v1890_v34 = vpop.f32.mrf.mxu1 }
 0x392   : > { %v1934_v42 = vpack.c.bf16 %v1890_v34, %v1886_v4 }
 0x393   : > { %2956 = vmatpush1.bf16.msra.mxu1 %v5017_v32  ;;  %v5043_v32 = vld [vmem:[%s7422_s5 + $0x1a4] ss:$8 sps:$4 sm:$0xff]  }
 0x394   : > { %4483 = vmatprep.mubr.msk.bf16.mxu1 %vm1166_vm6, %v1934_v42  ;;  %2957 = vmatprep.subr.bf16.mxu1 %v5022_v21 }
 0x395   : > { %2121 = vmatmul.mubr.bf16.gmra.mxu1 %v1933_v16 }
 0x397   : > { %2958 = vmatpush1.bf16.msra.mxu1 %v5020_v29 }
 0x398   : > { %2959 = vmatprep.subr.bf16.mxu1 %v5025_v2 }
 0x39b   : > { %2960 = vmatpush2.bf16.msra.mxu1 %v5023_v47 }
 0x39c   : > { %2961 = vmatprep.subr.bf16.mxu1 %v5028_v52 }
 0x39f   : > { %2962 = vmatpush2.bf16.msra.mxu1 %v5026_v7 }
 0x3a0   : > { %2963 = vmatprep.subr.bf16.mxu1 %v5031_v56 }
 0x425   : > { %v2074_v30 = vpop.f32.mrf.mxu1 }
 0x427   : > { %v2076_v57 = vpop.f32.mrf.mxu1 }
 0x429   : > { %v2077_v59 = vpop.f32.mrf.mxu1 }
 0x42a   : > { %v6721_v54 = vpack.c.bf16 %v2077_v59, %v2074_v30  ;;  %v5029_v59 = vld [vmem:[%s7422_s5 + $0x1d0] ss:$8 sps:$4 sm:$0xff]  }
 0x42b   : > { %v2079_v13 = vpop.f32.mrf.mxu1  ;;  %2964 = vmatpush2.bf16.msra.mxu1 %v5029_v59 }
 0x42c   : > { %v2139_v25 = vshll.u32 %v6721_v54, 16  ;;  %v2212_v34 = vrot.slane %v6721_v54, 1  ;;  %v2137_v16 = vshrl.u32 %v6721_v54, 16  ;;  %v5034_v13 = vld [vmem:[%s7422_s5 + $0x1c4] ss:$8 sps:$4 sm:$0xff]  }
 0x42d   : > { %v2082_v22 = vpop.f32.mrf.mxu1  ;;  %2965 = vmatprep.subr.bf16.mxu1 %v5034_v13 }
 0x42e   : > { %v2141_v4 = vrot.slane %v2139_v25, 1  ;;  %v2240_v13 = vrot.slane %v2139_v25, 2 }
 0x42f   : > { %v2084_v44 = vpop.f32.mrf.mxu1  ;;  %2966 = vmatpush2.bf16.msra.mxu1 %v5032_v19  ;;  %v2239_v19 = vrot.slane %v2137_v16, 1 }
 0x430   : > { %v2142_v28 = vor.u32 %v2141_v4, %v2137_v16  ;;  %v5040_v4 = vld [vmem:[%s7422_s5 + $0x1b4] ss:$8 sps:$4 sm:$0xff]  }
 0x431   : > { %v2085_v20 = vpop.f32.mrf.mxu1  ;;  %2967 = vmatprep.subr.bf16.mxu1 %v5040_v4  ;;  %v2241_v16 = vor.u32 %v2240_v13, %v2239_v19 }
 0x432   : > { %v6739_v53 = vpack.c.bf16 %v2085_v20, %v2082_v22 }
 0x433   : > { %v2087_v8 = vpop.f32.mrf.mxu1 }
 0x434   : > { %v2213_v42 = vrot.slane %v6739_v53, 1  ;;  %v2144_v36 = vshll.u32 %v6739_v53, 16  ;;  %v2148_v61 = vshrl.u32 %v6739_v53, 16 }
 0x435   : > { %v2090_v1 = vpop.f32.mrf.mxu1 }
 0x436   : > { %v2214_v27 = vsel %vm908_vm2, %v2212_v34, %v2213_v42  ;;  %v2146_v17 = vrot.slane %v2144_v36, 1  ;;  %v2242_v59 = vrot.slane %v2148_v61, 1 }
 0x437   : > { %2225 = vrot.lane.b32.xlu1 %v2214_v27, %s5668_s20  ;;  %v2092_v55 = vpop.f32.mrf.mxu1 }
 0x438   : > { %v2147_v10 = vsel %vm732_vm0, %v2142_v28, %v2146_v17  ;;  %v2150_v60 = vor.u32 %v2148_v61, %v2146_v17  ;;  %v5041_v17 = vld [vmem:[%s7422_s5 + $0x1a0] ss:$8 sps:$4 sm:$0xff]   ;;  %v2280_v61 = vrot.slane %v6721_v54, 2 }
 0x439   : > { %2191 = vrot.lane.b32.xlu0 %v2147_v10, %s5671_s27  ;;  %v2093_v26 = vpop.f32.mrf.mxu1 }
 0x43a   : > { %v6767_v48 = vpack.c.bf16 %v2093_v26, %v2090_v1  ;;  %v5038_v1 = vld [vmem:[%s7422_s5 + $0x1b0] ss:$8 sps:$4 sm:$0xff]  }
 0x43b   : > { %v2095_v37 = vpop.f32.mrf.mxu1  ;;  %2968 = vmatpush2.bf16.msra.mxu1 %v5038_v1 }
 0x43c   : > { %v2215_v24 = vrot.slane %v6767_v48, 1  ;;  %v2152_v40 = vshll.u32 %v6767_v48, 16  ;;  %v2156_v12 = vshrl.u32 %v6767_v48, 16  ;;  %2969 = vmatprep.subr.bf16.mxu1 %v5043_v32  ;;  %v2283_v4 = vrot.slane %v6767_v48, 2 }
 0x43d   : > { %v2098_v14 = vpop.f32.mrf.mxu1 }
 0x43e   : > { %v2216_v43 = vsel %vm908_vm2, %v2213_v42, %v2215_v24  ;;  %v2154_v41 = vrot.slane %v2152_v40, 1 }
 0x43f   : > { %2227 = vrot.lane.b32.xlu1 %v2216_v43, %s5668_s20  ;;  %v2100_v9 = vpop.f32.mrf.mxu1  ;;  %2970 = vmatpush2.bf16.msra.mxu1 %v5041_v17 }
 0x440   : > { %v2155_v11 = vsel %vm732_vm0, %v2150_v60, %v2154_v41  ;;  %v2158_v30 = vor.u32 %v2156_v12, %v2154_v41  ;;  %v5044_v60 = vld [vmem:[%s7422_s5 + $0x190] ss:$8 sps:$4 sm:$0xff]  }
 0x441   : > { %2193 = vrot.lane.b32.xlu0 %v2155_v11, %s5671_s27  ;;  %v2101_v18 = vpop.f32.mrf.mxu1  ;;  %v5047_v11 = vld [vmem:[%s7422_s5 + $0x180] ss:$8 sps:$4 sm:$0xff]  }
 0x442   : > { %v6792_v23 = vpack.c.bf16 %v2101_v18, %v2098_v14  ;;  %v5049_v18 = vld [vmem:[%s7422_s5 + $0x184] ss:$8 sps:$4 sm:$0xff]  }
 0x443   : > { %v2103_v6 = vpop.f32.mrf.mxu1 }
 0x444   : > { %v2217_v49 = vrot.slane %v6792_v23, 1  ;;  %v2160_v46 = vshll.u32 %v6792_v23, 16  ;;  %v2164_v20 = vshrl.u32 %v6792_v23, 16 }
 0x445   : > { %v2106_v0 = vpop.f32.mrf.mxu1 }
 0x446   : > { %v2218_v39 = vsel %vm908_vm2, %v2215_v24, %v2217_v49  ;;  %v2162_v57 = vrot.slane %v2160_v46, 1  ;;  %v5046_v24 = vld [vmem:[%s7422_s5 + $0x194] ss:$8 sps:$4 sm:$0xff]  }
 0x447   : > { %2229 = vrot.lane.b32.xlu1 %v2218_v39, %s5668_s20  ;;  %v2108_v15 = vpop.f32.mrf.mxu1  ;;  %2971 = vmatprep.subr.bf16.mxu1 %v5046_v24 }
 0x448   : > { %v2163_v50 = vsel %vm732_vm0, %v2158_v30, %v2162_v57  ;;  %v2166_v34 = vor.u32 %v2164_v20, %v2162_v57  ;;  %2972 = vmatpush2.bf16.msra.mxu1 %v5044_v60  ;;  %v2243_v15 = vrot.slane %v2144_v36, 2  ;;  %v2246_v36 = vrot.slane %v2156_v12, 1 }
 0x449   : > { %2195 = vrot.lane.b32.xlu0 %v2163_v50, %s5671_s27  ;;  %v2109_v51 = vpop.f32.mrf.mxu1  ;;  %2973 = vmatprep.subr.bf16.mxu1 %v5049_v18  ;;  %v2251_v12 = vrot.slane %v2160_v46, 2 }
 0x44a   : > { %v6817_v22 = vpack.c.bf16 %v2109_v51, %v2106_v0  ;;  %v2281_v51 = vrot.slane %v6739_v53, 2 }
 0x44b   : > { %v2111_v3 = vpop.f32.mrf.mxu1 }
 0x44c   : > { %v2219_v44 = vrot.slane %v6817_v22, 1  ;;  %v2168_v63 = vshll.u32 %v6817_v22, 16  ;;  %v2172_v29 = vshrl.u32 %v6817_v22, 16  ;;  %2974 = vmatpush2.bf16.msra.mxu1 %v5047_v11  ;;  %v2244_v3 = vor.u32 %v2243_v15, %v2242_v59 }
 0x44d   : > { %v2114_v45 = vpop.f32.mrf.mxu1 }
 0x44e   : > { %v2220_v8 = vsel %vm908_vm2, %v2217_v49, %v2219_v44  ;;  %v2170_v42 = vrot.slane %v2168_v63, 1  ;;  %v2245_v25 = vsel %vm972_vm1, %v2241_v16, %v2244_v3 }
 0x44f   : > { %2231 = vrot.lane.b32.xlu1 %v2220_v8, %s5668_s20  ;;  %v2116_v58 = vpop.f32.mrf.mxu1 }
 0x450   : > { %v2171_v27 = vsel %vm732_vm0, %v2166_v34, %v2170_v42  ;;  %v2174_v2 = vor.u32 %v2172_v29, %v2170_v42  ;;  %v2250_v34 = vrot.slane %v2164_v20, 1  ;;  %v2285_v42 = vrot.slane %v6792_v23, 2 }
 0x451   : > { %2197 = vrot.lane.b32.xlu0 %v2171_v27, %s5671_s27  ;;  %v2117_v28 = vpop.f32.mrf.mxu1  ;;  %v2254_v27 = vrot.slane %v2172_v29, 1  ;;  %v2287_v20 = vrot.slane %v6817_v22, 2 }
 0x452   : > { %v6845_v55 = vpack.c.bf16 %v2117_v28, %v2114_v45  ;;  %v2282_v45 = vsel %vm1068_vm3, %v2280_v61, %v2281_v51  ;;  %v2252_v58 = vor.u32 %v2251_v12, %v2250_v34  ;;  %v2255_v28 = vrot.slane %v2168_v63, 2 }
 0x453   : > { %v2119_v10 = vpop.f32.mrf.mxu1  ;;  %v2286_v46 = vsel %vm1068_vm3, %v2283_v4, %v2285_v42  ;;  %v2288_v29 = vsel %vm1068_vm3, %v2285_v42, %v2287_v20 }
 0x454   : > { %v2221_v26 = vrot.slane %v6845_v55, 1  ;;  %v2176_v21 = vshll.u32 %v6845_v55, 16  ;;  %v2180_v49 = vshrl.u32 %v6845_v55, 16  ;;  %v2256_v32 = vor.u32 %v2255_v28, %v2254_v27 }
 0x455   : > { %v2122_v37 = vpop.f32.mrf.mxu1  ;;  %v2289_v63 = vrot.slane %v6845_v55, 2 }
 0x456   : > { %v2222_v14 = vsel %vm908_vm2, %v2219_v44, %v2221_v26  ;;  %v2178_v43 = vrot.slane %v2176_v21, 1  ;;  %v2247_v44 = vrot.slane %v2152_v40, 2  ;;  %v2284_v40 = vsel %vm1068_vm3, %v2281_v51, %v2283_v4 }
 0x457   : > { %2233 = vrot.lane.b32.xlu1 %v2222_v14, %s5668_s20  ;;  %v2124_v41 = vpop.f32.mrf.mxu1  ;;  %v2258_v10 = vrot.slane %v2180_v49, 1  ;;  %v2257_v24 = vsel %vm972_vm1, %v2252_v58, %v2256_v32 }
 0x458   : > { %v2179_v47 = vsel %vm732_vm0, %v2174_v2, %v2178_v43  ;;  %v2182_v39 = vor.u32 %v2180_v49, %v2178_v43  ;;  %v2248_v8 = vor.u32 %v2247_v44, %v2246_v36  ;;  %v2290_v43 = vsel %vm1068_vm3, %v2287_v20, %v2289_v63 }
 0x459   : > { %2199 = vrot.lane.b32.xlu0 %v2179_v47, %s5671_s27  ;;  %v2125_v9 = vpop.f32.mrf.mxu1 }
 0x45a   : > { %v6868_v7 = vpack.c.bf16 %v2125_v9, %v2122_v37  ;;  %v2249_v1 = vsel %vm972_vm1, %v2244_v3, %v2248_v8  ;;  %v2253_v17 = vsel %vm972_vm1, %v2248_v8, %v2252_v58 }
 0x45b   : > { %v2127_v52 = vpop.f32.mrf.mxu1 }
 0x45c   : > { %v2223_v6 = vrot.slane %v6868_v7, 1  ;;  %v2184_v0 = vshll.u32 %v6868_v7, 16  ;;  %v2188_v50 = vshrl.u32 %v6868_v7, 16  ;;  %v2291_v60 = vrot.slane %v6868_v7, 2  ;;  %v5035_v52 = vld [vmem:[%s7422_s5 + $0x220] ss:$8 sps:$4 sm:$0xff]  }
 0x45e   : > { %v2224_v56 = vsel %vm908_vm2, %v2221_v26, %v2223_v6  ;;  %v2186_v30 = vrot.slane %v2184_v0, 1  ;;  %v2259_v26 = vrot.slane %v2176_v21, 2  ;;  %v2262_v37 = vrot.slane %v2188_v50, 1 }
 0x45f   : > { %2235 = vrot.lane.b32.xlu1 %v2224_v56, %s5668_s20  ;;  %v2263_v2 = vrot.slane %v2184_v0, 2  ;;  %v2292_v47 = vsel %vm1068_vm3, %v2289_v63, %v2291_v60  ;;  %v5052_v0 = vld [vmem:[%s7422_s5 + $0x214] ss:$8 sps:$4 sm:$0xff]   ;;  %v5050_v56 = vld [vmem:[%s7422_s5 + $0x210] ss:$8 sps:$4 sm:$0xff]  }
 0x460   : > { %v2187_v57 = vsel %vm732_vm0, %v2182_v39, %v2186_v30  ;;  %v2190_v31 = vor.u32 %v2188_v50, %v2186_v30  ;;  %v2260_v14 = vor.u32 %v2259_v26, %v2258_v10  ;;  %v5055_v39 = vld [vmem:[%s7422_s5 + $0x204] ss:$8 sps:$4 sm:$0xff]  }
 0x461   : > { %2201 = vrot.lane.b32.xlu0 %v2187_v57, %s5671_s27  ;;  %v2264_v41 = vor.u32 %v2263_v2, %v2262_v37  ;;  %v5053_v57 = vld [vmem:[%s7422_s5 + $0x200] ss:$8 sps:$4 sm:$0xff]  }
 0x462   : > { %v2261_v21 = vsel %vm972_vm1, %v2256_v32, %v2260_v14 }
 0x463   : > { %2237 = vrot.lane.b32.xlu1 %v2223_v6, %s5668_s20  ;;  %s5672_s20 = smov 80   ;;  %v2265_v9 = vsel %vm972_vm1, %v2260_v14, %v2264_v41 }
 0x465   : > { %2203 = vrot.lane.b32.xlu0 %v2190_v31, %s5671_s27 }
 0x467   : > { %2293 = vrot.lane.b32.xlu1 %v2282_v45, %s7446_s4 }
 0x469   : > { %2266 = vrot.lane.b32.xlu0 %v2245_v25, %s5672_s20 }
 0x46b   : > { %2295 = vrot.lane.b32.xlu1 %v2284_v40, %s7446_s4 }
 0x46d   : > { %2268 = vrot.lane.b32.xlu0 %v2249_v1, %s5672_s20 }
 0x46f   : > { %2297 = vrot.lane.b32.xlu1 %v2286_v46, %s7446_s4 }
 0x471   : > { %2270 = vrot.lane.b32.xlu0 %v2253_v17, %s5672_s20 }
 0x473   : > { %2299 = vrot.lane.b32.xlu1 %v2288_v29, %s7446_s4 }
 0x475   : > { %2272 = vrot.lane.b32.xlu0 %v2257_v24, %s5672_s20 }
 0x477   : > { %2301 = vrot.lane.b32.xlu1 %v2290_v43, %s7446_s4 }
 0x479   : > { %2274 = vrot.lane.b32.xlu0 %v2261_v21, %s5672_s20 }
 0x47b   : > { %2303 = vrot.lane.b32.xlu1 %v2292_v47, %s7446_s4 }
 0x47d   : > { %2276 = vrot.lane.b32.xlu0 %v2265_v9, %s5672_s20 }
 0x47f   : > { %2305 = vrot.lane.b32.xlu1 %v2291_v60, %s7446_s4  ;;  %s5550_s4 = scalar_lea.vmem %s5549_s0, 256 }
 0x480   : > { %p5552_p2 = scmp.lt.s32.totalorder %s5550_s4, %s5544_s26 }
 0x481   : > { %2278 = vrot.lane.b32.xlu0 %v2264_v41, %s5672_s20 }
 0x482   : > { %p5553_p4 = por %p5552_p2, %p5551_p13 }
 0x484   : > { %p5554_p9 = pnand %p5553_p4, %p5547_p10 }
 0x4a9   : > { %v2226_v11 = vpop.permute.xlu1 %2225 }
 0x4ab   : > { %v2192_v18 = vpop.permute.xlu0 %2191 }
 0x4ac   : > { %v2309_v6 = vsel %vm2307_vm8, %v6721_v54, %v2192_v18  ;;  %v2330_v49 = vsel %vm1166_vm6, %v2192_v18, %v2226_v11 }
 0x4ad   : > { %2872 = vmatprep.mubr.bf16.mxu0 %v2330_v49 }
 0x4ae   : > { %2873 = vmatmul.mubr.bf16.vlgmr.msra.gmra.mxu0 %v2309_v6 }
 0x4af   : > { %3057 = vmatpush1.bf16.msra.mxu0 %v5035_v52 }
 0x4b0   : > { %3058 = vmatprep.subr.bf16.mxu0 %v5052_v0 }
 0x4b1   : > { %v2228_v30 = vpop.permute.xlu1 %2227 }
 0x4b3   : > { %v2194_v54 = vpop.permute.xlu0 %2193  ;;  %3059 = vmatpush1.bf16.msra.mxu0 %v5050_v56 }
 0x4b4   : > { %v2333_v59 = vsel %vm1166_vm6, %v2194_v54, %v2228_v30  ;;  %v2312_v15 = vsel %vm2307_vm8, %v6739_v53, %v2194_v54  ;;  %3060 = vmatprep.subr.bf16.mxu0 %v5055_v39 }
 0x4b5   : > { %2882 = vmatprep.mubr.bf16.mxu0 %v2333_v59 }
 0x4b6   : > { %2883 = vmatmul.mubr.bf16.gmra.mxu0 %v2312_v15 }
 0x4b7   : > { %3061 = vmatpush1.bf16.msra.mxu0 %v5053_v57 }
 0x4b8   : > { %3381 = vmatprep.subr.bf16.mxu0 %v5670_v62 }
 0x4b9   : > { %v2230_v50 = vpop.permute.xlu1 %2229 }
 0x4bb   : > { %v2196_v51 = vpop.permute.xlu0 %2195 }
 0x4bc   : > { %v2336_v19 = vsel %vm1166_vm6, %v2196_v51, %v2230_v50  ;;  %v2315_v13 = vsel %vm2307_vm8, %v6767_v48, %v2196_v51 }
 0x4bd   : > { %2892 = vmatprep.mubr.bf16.mxu0 %v2336_v19 }
 0x4be   : > { %2893 = vmatmul.mubr.bf16.gmra.mxu0 %v2315_v13 }
 0x4c1   : > { %v2232_v31 = vpop.permute.xlu1 %2231 }
 0x4c3   : > { %v2198_v61 = vpop.permute.xlu0 %2197 }
 0x4c4   : > { %v2339_v3 = vsel %vm1166_vm6, %v2198_v61, %v2232_v31  ;;  %v2318_v53 = vsel %vm2307_vm8, %v6792_v23, %v2198_v61 }
 0x4c5   : > { %2902 = vmatprep.mubr.bf16.mxu0 %v2339_v3 }
 0x4c6   : > { %2903 = vmatmul.mubr.bf16.gmra.mxu0 %v2318_v53 }
 0x4c9   : > { %v2234_v36 = vpop.permute.xlu1 %2233 }
 0x4cb   : > { %v2200_v44 = vpop.permute.xlu0 %2199 }
 0x4cc   : > { %v2342_v45 = vsel %vm1166_vm6, %v2200_v44, %v2234_v36  ;;  %v2321_v16 = vsel %vm2307_vm8, %v6817_v22, %v2200_v44  ;;  %v2463_v44 = vld [vmem:[#allocation7] sm:$0x3] }
 0x4cd   : > { %2912 = vmatprep.mubr.bf16.mxu0 %v2342_v45 }
 0x4ce   : > { %2913 = vmatmul.mubr.bf16.gmra.mxu0 %v2321_v16 }
 0x4d1   : > { %v2236_v48 = vpop.permute.xlu1 %2235 }
 0x4d3   : > { %v2202_v4 = vpop.permute.xlu0 %2201 }
 0x4d4   : > { %v2345_v25 = vsel %vm1166_vm6, %v2202_v4, %v2236_v48  ;;  %v2324_v8 = vsel %vm2307_vm8, %v6845_v55, %v2202_v4 }
 0x4d5   : > { %v2238_v34 = vpop.permute.xlu1 %2237  ;;  %2922 = vmatprep.mubr.bf16.mxu0 %v2345_v25  ;;  %v7041_v25 = vrot.slane %v2463_v44, %v1243_v5 }
 0x4d6   : > { %2923 = vmatmul.mubr.bf16.gmra.mxu0 %v2324_v8  ;;  %v5059_v8 = vld [vmem:[#allocation10 + $0x38] sm:$0xff]  }
 0x4d7   : > { %v2204_v23 = vpop.permute.xlu0 %2203 }
 0x4d8   : > { %v2348_v12 = vsel %vm1166_vm6, %v2204_v23, %v2238_v34  ;;  %v2327_v58 = vsel %vm2307_vm8, %v6868_v7, %v2204_v23 }
 0x4d9   : > { %v2294_v40 = vpop.permute.xlu1 %2293  ;;  %2932 = vmatprep.mubr.bf16.mxu0 %v2348_v12  ;;  %v5060_v12 = vld [vmem:[#allocation10 + $0x30] sm:$0xff]  }
 0x4db   : > { %v2267_v42 = vpop.permute.xlu0 %2266 }
 0x4dc   : > { %v2352_v22 = vsel %vm2350_vm9, %v2226_v11, %v2267_v42  ;;  %v2373_v1 = vsel %vm1133_vm5, %v2267_v42, %v2294_v40 }
 0x4dd   : > { %2975 = vmatprep.mubr.bf16.mxu1 %v2373_v1  ;;  %v2296_v55 = vpop.permute.xlu1 %2295 }
 0x4de   : > { %2933 = vmatmul.mubr.bf16.gmra.mxu0 %v2327_v58  ;;  %2976 = vmatmul.mubr.bf16.vlgmr.msra.gmra.mxu1 %v2352_v22 }
 0x4df   : > { %v2269_v27 = vpop.permute.xlu0 %2268  ;;  %3078 = vmatprep.mubr.bf16.mxu0 %v5670_v62 }
 0x4e0   : > { %v2376_v28 = vsel %vm1133_vm5, %v2269_v27, %v2296_v55  ;;  %v2355_v17 = vsel %vm2350_vm9, %v2228_v30, %v2269_v27 }
 0x4e1   : > { %2985 = vmatprep.mubr.bf16.mxu1 %v2376_v28  ;;  %v2298_v20 = vpop.permute.xlu1 %2297 }
 0x4e3   : > { %v2271_v46 = vpop.permute.xlu0 %2270 }
 0x4e4   : > { %v2379_v32 = vsel %vm1133_vm5, %v2271_v46, %v2298_v20  ;;  %v2358_v26 = vsel %vm2350_vm9, %v2230_v50, %v2271_v46 }
 0x4e5   : > { %v2300_v10 = vpop.permute.xlu1 %2299 }
 0x4e6   : > { %2986 = vmatmul.mubr.bf16.gmra.mxu1 %v2355_v17  ;;  %4554 = vmatmul.mubr.msk.bf16.vlgmr.msra.gmra.mxu0 %vm2825_vm10, %v2294_v40 }
 0x4e7   : > { %2995 = vmatprep.mubr.bf16.mxu1 %v2379_v32  ;;  %3088 = vmatprep.mubr.bf16.mxu0 %v5670_v62  ;;  %v2273_v7 = vpop.permute.xlu0 %2272 }
 0x4e8   : > { %v2382_v29 = vsel %vm1133_vm5, %v2273_v7, %v2300_v10  ;;  %v2361_v24 = vsel %vm2350_vm9, %v2232_v31, %v2273_v7  ;;  %3382 = vmatpush1.bf16.msra.mxu0 %v5059_v8 }
 0x4e9   : > { %v2302_v37 = vpop.permute.xlu1 %2301  ;;  %3383 = vmatprep.subr.bf16.mxu0 %v5670_v62 }
 0x4eb   : > { %v2275_v63 = vpop.permute.xlu0 %2274 }
 0x4ec   : > { %v2385_v14 = vsel %vm1133_vm5, %v2275_v63, %v2302_v37  ;;  %v2364_v60 = vsel %vm2350_vm9, %v2234_v36, %v2275_v63  ;;  %3384 = vmatpush1.bf16.msra.mxu0 %v5060_v12 }
 0x4ed   : > { %v2304_v43 = vpop.permute.xlu1 %2303  ;;  %3385 = vmatprep.subr.bf16.mxu0 %v5670_v62 }
 0x4ee   : > { %2996 = vmatmul.mubr.bf16.gmra.mxu1 %v2358_v26  ;;  %4555 = vmatmul.mubr.msk.bf16.gmra.mxu0 %vm2825_vm10, %v2296_v55  ;;  %v5061_v55 = vld [vmem:[#allocation10 + $0x28] sm:$0xff]   ;;  %v5062_v26 = vld [vmem:[#allocation10 + $0x20] sm:$0xff]  }
 0x4ef   : > { %3005 = vmatprep.mubr.bf16.mxu1 %v2382_v29  ;;  %3098 = vmatprep.mubr.bf16.mxu0 %v5670_v62  ;;  %v2277_v2 = vpop.permute.xlu0 %2276 }
 0x4f0   : > { %v2388_v21 = vsel %vm1133_vm5, %v2277_v2, %v2304_v43  ;;  %v2367_v9 = vsel %vm2350_vm9, %v2236_v48, %v2277_v2  ;;  %v7035_v48 = vrot.slane %v2463_v44, %v1239_v38  ;;  %3386 = vmatpush1.bf16.msra.mxu0 %v5061_v55 }
 0x4f1   : > { %v2306_v47 = vpop.permute.xlu1 %2305  ;;  %3387 = vmatprep.subr.bf16.mxu0 %v5670_v62 }
 0x4f3   : > { %v2279_v41 = vpop.permute.xlu0 %2278 }
 0x4f4   : > { %v2391_v11 = vsel %vm1133_vm5, %v2279_v41, %v2306_v47  ;;  %v2370_v18 = vsel %vm2350_vm9, %v2238_v34, %v2279_v41  ;;  %3388 = vmatpush1.bf16.msra.mxu0 %v5062_v26 }
 0x4f5   : > { %3389 = vmatprep.subr.bf16.mxu0 %v5670_v62 }
 0x4f6   : > { %3006 = vmatmul.mubr.bf16.gmra.mxu1 %v2361_v24  ;;  %4556 = vmatmul.mubr.msk.bf16.gmra.mxu0 %vm2825_vm10, %v2298_v20 }
 0x4f7   : > { %3015 = vmatprep.mubr.bf16.mxu1 %v2385_v14  ;;  %3108 = vmatprep.mubr.bf16.mxu0 %v5670_v62 }
 0x4fe   : > { %3016 = vmatmul.mubr.bf16.gmra.mxu1 %v2364_v60  ;;  %4557 = vmatmul.mubr.msk.bf16.gmra.mxu0 %vm2825_vm10, %v2300_v10  ;;  %v5063_v60 = vld [vmem:[#allocation10 + $0x18] sm:$0xff]  }
 0x4ff   : > { %3025 = vmatprep.mubr.bf16.mxu1 %v2388_v21  ;;  %3118 = vmatprep.mubr.bf16.mxu0 %v5670_v62 }
 0x500   : > { %3390 = vmatpush1.bf16.msra.mxu0 %v5063_v60 }
 0x501   : > { %3391 = vmatprep.subr.bf16.mxu0 %v5670_v62 }
 0x506   : > { %3026 = vmatmul.mubr.bf16.gmra.mxu1 %v2367_v9  ;;  %4558 = vmatmul.mubr.msk.bf16.gmra.mxu0 %vm2825_vm10, %v2302_v37 }
 0x507   : > { %3035 = vmatprep.mubr.bf16.mxu1 %v2391_v11  ;;  %3128 = vmatprep.mubr.bf16.mxu0 %v5670_v62 }
 0x50e   : > { %3036 = vmatmul.mubr.bf16.gmra.mxu1 %v2370_v18  ;;  %4559 = vmatmul.mubr.msk.bf16.gmra.mxu0 %vm2825_vm10, %v2304_v43 }
 0x50f   : > { %3138 = vmatprep.mubr.bf16.mxu0 %v5670_v62  ;;  %3257 = vmatprep.mubr.bf16.mxu1 %v5670_v62 }
 0x516   : > { %4560 = vmatmul.mubr.msk.bf16.gmra.mxu0 %vm2825_vm10, %v2306_v47 }
 0x56e   : > { %v2874_v52 = vpop.f32.mrf.mxu0 }
 0x56f   : > { %v2875_v23 = vadd.f32 %v2874_v52, %v7035_v48  ;;  %v5064_v52 = vld [vmem:[#allocation10 + $0x10] sm:$0xff]  }
 0x570   : > { %v2876_v6 = vpop.f32.mrf.mxu0  ;;  %3392 = vmatpush1.bf16.msra.mxu0 %v5064_v52 }
 0x571   : > { %v2877_v38 = vadd.f32 %v2876_v6, %v7041_v25  ;;  %3393 = vmatprep.subr.bf16.mxu0 %v5670_v62 }
 0x572   : > { %v2878_v49 = vpop.f32.mrf.mxu0 }
 0x573   : > { %v2879_v5 = vadd.f32 %v2878_v49, %v7035_v48 }
 0x574   : > { %v2880_v0 = vpop.f32.mrf.mxu0 }
 0x575   : > { %v2881_v46 = vadd.f32 %v2880_v0, %v7041_v25 }
 0x576   : > { %v2884_v56 = vpop.f32.mrf.mxu0 }
 0x577   : > { %v2885_v7 = vadd.f32 %v2884_v56, %v7035_v48 }
 0x578   : > { %v6999_v39 = vpop.f32.mrf.mxu0 }
 0x579   : > { %v2887_v6 = vadd.f32 %v6999_v39, %v7041_v25 }
 0x57a   : > { %v7001_v30 = vpop.f32.mrf.mxu0 }
 0x57b   : > { %v2889_v56 = vadd.f32 %v7001_v30, %v7035_v48 }
 0x57c   : > { %v7003_v54 = vpop.f32.mrf.mxu0 }
 0x57e   : > { %v7005_v57 = vpop.f32.mrf.mxu0 }
 0x57f   : > { %v2895_v30 = vadd.f32 %v7005_v57, %v7035_v48 }
 0x580   : > { %v7007_v59 = vpop.f32.mrf.mxu0 }
 0x582   : > { %v7009_v15 = vpop.f32.mrf.mxu0 }
 0x584   : > { %v7011_v50 = vpop.f32.mrf.mxu0 }
 0x586   : > { %v7013_v51 = vpop.f32.mrf.mxu0 }
 0x588   : > { %v7015_v19 = vpop.f32.mrf.mxu0 }
 0x58a   : > { %v7017_v13 = vpop.f32.mrf.mxu0 }
 0x58c   : > { %v7019_v31 = vpop.f32.mrf.mxu0 }
 0x58e   : > { %v7021_v61 = vpop.f32.mrf.mxu0 }
 0x590   : > { %v7023_v3 = vpop.f32.mrf.mxu0 }
 0x592   : > { %v7025_v53 = vpop.f32.mrf.mxu0 }
 0x594   : > { %v7027_v36 = vpop.f32.mrf.mxu0 }
 0x596   : > { %v7029_v45 = vpop.f32.mrf.mxu0 }
 0x598   : > { %v7031_v16 = vpop.f32.mrf.mxu0 }
 0x59a   : > { %v7037_v4 = vpop.f32.mrf.mxu0 }
 0x59c   : > { %v7043_v34 = vpop.f32.mrf.mxu0 }
 0x59e   : > { %v7046_v40 = vpop.f32.mrf.mxu0  ;;  %v2977_v42 = vpop.f32.mrf.mxu1 }
 0x59f   : > { %v2978_v22 = vadd.f32 %v2977_v42, %v2875_v23  ;;  %v2891_v42 = vadd.f32 %v7003_v54, %v7041_v25  ;;  %v5066_v54 = vld [vmem:[#allocation10] sm:$0xff]  }
 0x5a0   : > { %v7050_v1 = vpop.f32.mrf.mxu0  ;;  %v2979_v35 = vpop.f32.mrf.mxu1 }
 0x5a1   : > { %v2980_v58 = vadd.f32 %v2979_v35, %v2877_v38 }
 0x5a2   : > { %v7053_v27 = vpop.f32.mrf.mxu0  ;;  %v2981_v28 = vpop.f32.mrf.mxu1 }
 0x5a3   : > { %v2982_v20 = vadd.f32 %v2981_v28, %v2879_v5 }
 0x5a4   : > { %v7057_v17 = vpop.f32.mrf.mxu0  ;;  %v2983_v32 = vpop.f32.mrf.mxu1 }
 0x5a5   : > { %v2984_v10 = vadd.f32 %v2983_v32, %v2881_v46  ;;  %v2897_v32 = vadd.f32 %v7007_v59, %v7041_v25 }
 0x5a6   : > { %v2987_v29 = vpop.f32.mrf.mxu1  ;;  %v3080_v63 = vpop.f32.mrf.mxu0 }
 0x5a7   : > { %v2988_v37 = vadd.f32 %v2987_v29, %v2885_v7  ;;  %v3081_v24 = vadd.f32 %v3080_v63, %v2978_v22  ;;  %v5065_v22 = vld [vmem:[#allocation10 + $0x8] sm:$0xff]   ;;  %v2899_v29 = vadd.f32 %v7009_v15, %v7035_v48 }
 0x5a8   : > { %v2989_v14 = vpop.f32.mrf.mxu1  ;;  %v3082_v2 = vpop.f32.mrf.mxu0  ;;  %3394 = vmatpush1.bf16.msra.mxu0 %v5065_v22 }
 0x5a9   : > { %v3083_v43 = vadd.f32 %v3082_v2, %v2980_v58  ;;  %5238 = vtanh.f32 %v3081_v24  ;;  %v2990_v8 = vadd.f32 %v2989_v14, %v2887_v6  ;;  %3395 = vmatprep.subr.bf16.mxu0 %v5670_v62  ;;  %v2901_v2 = vadd.f32 %v7011_v50, %v7041_v25 }
 0x5aa   : > { %v2991_v21 = vpop.f32.mrf.mxu1  ;;  %v3084_v41 = vpop.f32.mrf.mxu0  ;;  %v2905_v50 = vadd.f32 %v7013_v51, %v7035_v48 }
 0x5ab   : > { %v3085_v47 = vadd.f32 %v3084_v41, %v2982_v20  ;;  %v2992_v38 = vadd.f32 %v2991_v21, %v2889_v56  ;;  %v2907_v56 = vadd.f32 %v7015_v19, %v7041_v25 }
 0x5ac   : > { %v2993_v9 = vpop.f32.mrf.mxu1  ;;  %v3086_v11 = vpop.f32.mrf.mxu0  ;;  %3396 = vmatpush1.bf16.msra.mxu0 %v5066_v54 }
 0x5ad   : > { %5240 = vtanh.f32 %v3085_v47  ;;  %v3087_v18 = vadd.f32 %v3086_v11, %v2984_v10  ;;  %v2994_v58 = vadd.f32 %v2993_v9, %v2891_v42  ;;  %3409 = vmatprep.subr.bf16.mxu0 %v5670_v62 }
 0x5ae   : > { %5242 = vtanh.f32 %v3083_v43  ;;  %v2997_v49 = vpop.f32.mrf.mxu1  ;;  %v3090_v0 = vpop.f32.mrf.mxu0 }
 0x5af   : > { %5244 = vtanh.f32 %v3087_v18  ;;  %v3091_v44 = vadd.f32 %v3090_v0, %v2988_v37  ;;  %v2998_v7 = vadd.f32 %v2997_v49, %v2895_v30 }
 0x5b0   : > { %v2999_v23 = vpop.f32.mrf.mxu1  ;;  %v3092_v12 = vpop.f32.mrf.mxu0 }
 0x5b1   : > { %v3093_v39 = vadd.f32 %v3092_v12, %v2990_v8  ;;  %5246 = vtanh.f32 %v3091_v44  ;;  %v3000_v57 = vadd.f32 %v2999_v23, %v2897_v32  ;;  %v2909_v12 = vadd.f32 %v7017_v13, %v7035_v48 }
 0x5b2   : > { %v3001_v35 = vpop.f32.mrf.mxu1  ;;  %v3094_v5 = vpop.f32.mrf.mxu0  ;;  %v2915_v32 = vadd.f32 %v7021_v61, %v7035_v48 }
 0x5b3   : > { %v3095_v55 = vadd.f32 %v3094_v5, %v2992_v38  ;;  %v3002_v59 = vadd.f32 %v3001_v35, %v2899_v29  ;;  %v2911_v35 = vadd.f32 %v7019_v31, %v7041_v25  ;;  %v2917_v29 = vadd.f32 %v7023_v3, %v7041_v25 }
 0x5b4   : > { %v3003_v28 = vpop.f32.mrf.mxu1  ;;  %v3096_v46 = vpop.f32.mrf.mxu0 }
 0x5b5   : > { %5248 = vtanh.f32 %v3095_v55  ;;  %v3097_v20 = vadd.f32 %v3096_v46, %v2994_v58  ;;  %v3004_v47 = vadd.f32 %v3003_v28, %v2901_v2 }
 0x5b6   : > { %5250 = vtanh.f32 %v3093_v39  ;;  %v3007_v10 = vpop.f32.mrf.mxu1  ;;  %v3100_v26 = vpop.f32.mrf.mxu0 }
 0x5b7   : > { %5252 = vtanh.f32 %v3097_v20  ;;  %v3101_v63 = vadd.f32 %v3100_v26, %v2998_v7  ;;  %v7077_v14 = vpop.eup %5238  ;;  %v3008_v44 = vadd.f32 %v3007_v10, %v2905_v50 }
 0x5b8   : > { %v3009_v37 = vpop.f32.mrf.mxu1  ;;  %v3102_v24 = vpop.f32.mrf.mxu0 }
 0x5b9   : > { %v3103_v60 = vadd.f32 %v3102_v24, %v3000_v57  ;;  %5254 = vtanh.f32 %v3101_v63  ;;  %v3010_v51 = vadd.f32 %v3009_v37, %v2907_v56  ;;  %v2919_v24 = vadd.f32 %v7025_v53, %v7035_v48 }
 0x5ba   : > { %v7081_v43 = vpop.eup %5240  ;;  %v3011_v21 = vpop.f32.mrf.mxu1 }
 0x5bb   : > { %v3104_v41 = vpop.f32.mrf.mxu0  ;;  %v7084_v15 = vpop.eup %5242  ;;  %v3177_v11 = vpack.c.bf16 %v7081_v43, %v7077_v14  ;;  %v3012_v5 = vadd.f32 %v3011_v21, %v2909_v12 }
 0x5bc   : > { %v3105_v9 = vadd.f32 %v3104_v41, %v3002_v59  ;;  %v7088_v18 = vpop.eup %5244  ;;  %v3013_v52 = vpop.f32.mrf.mxu1  ;;  %v2921_v41 = vadd.f32 %v7027_v36, %v7041_v25 }
 0x5bd   : > { %v3106_v6 = vpop.f32.mrf.mxu0  ;;  %v3178_v0 = vpack.c.bf16 %v7088_v18, %v7084_v15  ;;  %v3014_v46 = vadd.f32 %v3013_v52, %v2911_v35  ;;  %v2929_v35 = vadd.f32 %v7037_v4, %v7035_v48  ;;  %v5068_v15 = vld [vmem:[#allocation10 + $0x40] sm:$0xff]  }
 0x5be   : > { %5256 = vtanh.f32 %v3105_v9  ;;  %v3107_v49 = vadd.f32 %v3106_v6, %v3004_v47  ;;  %v3017_v8 = vpop.f32.mrf.mxu1  ;;  %v7098_v39 = vpop.eup %5246 }
 0x5bf   : > { %5258 = vtanh.f32 %v3103_v60  ;;  %v3110_v23 = vpop.f32.mrf.mxu0  ;;  %v3018_v57 = vadd.f32 %v3017_v8, %v2915_v32  ;;  %v2925_v8 = vadd.f32 %v7029_v45, %v7035_v48 }
 0x5c0   : > { %5260 = vtanh.f32 %v3107_v49  ;;  %v3111_v42 = vadd.f32 %v3110_v23, %v3008_v44  ;;  %v3019_v38 = vpop.f32.mrf.mxu1 }
 0x5c1   : > { %v3112_v22 = vpop.f32.mrf.mxu0  ;;  %v3020_v61 = vadd.f32 %v3019_v38, %v2917_v29  ;;  %v2935_v29 = vadd.f32 %v7046_v40, %v7035_v48 }
 0x5c2   : > { %v7102_v58 = vpop.eup %5248  ;;  %v3113_v19 = vadd.f32 %v3112_v22, %v3010_v51  ;;  %v3021_v55 = vpop.f32.mrf.mxu1  ;;  %5262 = vtanh.f32 %v3111_v42 }
 0x5c3   : > { %v3114_v30 = vpop.f32.mrf.mxu0  ;;  %v7104_v28 = vpop.eup %5250  ;;  %v3179_v20 = vpack.c.bf16 %v7102_v58, %v7098_v39  ;;  %v3022_v47 = vadd.f32 %v3021_v55, %v2919_v24  ;;  %v5067_v39 = vld [vmem:[#allocation10 + $0x48] sm:$0xff]  }
 0x5c4   : > { %v3115_v13 = vadd.f32 %v3114_v30, %v3012_v5  ;;  %v7108_v54 = vpop.eup %5252  ;;  %v3023_v31 = vpop.f32.mrf.mxu1  ;;  %3410 = vmatpush2.bf16.msra.mxu0 %v5067_v39 }
 0x5c5   : > { %v3116_v7 = vpop.f32.mrf.mxu0  ;;  %v3180_v26 = vpack.c.bf16 %v7108_v54, %v7104_v28  ;;  %v3024_v49 = vadd.f32 %v3023_v31, %v2921_v41  ;;  %v2931_v31 = vadd.f32 %v7043_v34, %v7041_v25  ;;  %v5058_v28 = vld [vmem:[#allocation8 + $0x10] ss:$0 sps:$4 sm:$0xff]   ;;  %3411 = vmatprep.subr.bf16.mxu0 %v5670_v62 }
 0x5c6   : > { %5264 = vtanh.f32 %v3115_v13  ;;  %v3117_v10 = vadd.f32 %v3116_v7, %v3014_v46  ;;  %v3027_v63 = vpop.f32.mrf.mxu1  ;;  %v7118_v21 = vpop.eup %5254 }
 0x5c7   : > { %5266 = vtanh.f32 %v3113_v19  ;;  %v3120_v37 = vpop.f32.mrf.mxu0  ;;  %v3028_v42 = vadd.f32 %v3027_v63, %v2925_v8 }
 0x5c8   : > { %5268 = vtanh.f32 %v3117_v10  ;;  %v3121_v2 = vadd.f32 %v3120_v37, %v3018_v57  ;;  %v3029_v59 = vpop.f32.mrf.mxu1  ;;  %3412 = vmatpush2.bf16.msra.mxu0 %v5068_v15 }
 0x5c9   : > { %v3122_v60 = vpop.f32.mrf.mxu0 }
 0x5ca   : > { %v3123_v3 = vadd.f32 %v3122_v60, %v3020_v61  ;;  %v3031_v50 = vpop.f32.mrf.mxu1  ;;  %5270 = vtanh.f32 %v3121_v2  ;;  %v2937_v61 = vadd.f32 %v7050_v1, %v7041_v25  ;;  %v2939_v60 = vadd.f32 %v7053_v27, %v7035_v48 }
 0x5cb   : > { %v7122_v9 = vpop.eup %5256  ;;  %v3124_v52 = vpop.f32.mrf.mxu0  ;;  %v3032_v30 = vadd.f32 %v3031_v50, %v2929_v35 }
 0x5cc   : > { %v7124_v6 = vpop.eup %5258  ;;  %v3125_v53 = vadd.f32 %v3124_v52, %v3022_v47  ;;  %v3181_v56 = vpack.c.bf16 %v7122_v9, %v7118_v21  ;;  %v3033_v36 = vpop.f32.mrf.mxu1  ;;  %v2927_v47 = vadd.f32 %v7031_v16, %v7041_v25  ;;  %v5057_v21 = vld [vmem:[#allocation8 + $0x8] sm:$0xff]  }
 0x5cd   : > { %v7128_v44 = vpop.eup %5260  ;;  %v3126_v23 = vpop.f32.mrf.mxu0  ;;  %v3034_v37 = vadd.f32 %v3033_v36, %v2931_v31 }
 0x5ce   : > { %5272 = vtanh.f32 %v3125_v53  ;;  %v3127_v12 = vadd.f32 %v3126_v23, %v3024_v49  ;;  %v3182_v51 = vpack.c.bf16 %v7128_v44, %v7124_v6  ;;  %v3037_v38 = vpop.f32.mrf.mxu1  ;;  %v2941_v53 = vadd.f32 %v7057_v17, %v7041_v25 }
 0x5cf   : > { %5274 = vtanh.f32 %v3123_v3  ;;  %v3130_v22 = vpop.f32.mrf.mxu0  ;;  %v7136_v45 = vpop.eup %5262  ;;  %v3038_v2 = vadd.f32 %v3037_v38, %v2935_v29  ;;  %v3030_v1 = vadd.f32 %v3029_v59, %v2927_v47  ;;  %v5074_v47 = vld [vmem:[%s7426_s9 + $0x28] sm:$0xff]  }
 0x5d0   : > { %5276 = vtanh.f32 %v3127_v12  ;;  %v3131_v5 = vadd.f32 %v3130_v22, %v3028_v42  ;;  %v3039_v19 = vpop.f32.mrf.mxu1 }
 0x5d1   : > { %v3132_v55 = vpop.f32.mrf.mxu0  ;;  %v3040_v40 = vadd.f32 %v3039_v19, %v2937_v61  ;;  %v5069_v61 = vld [vmem:[%s7426_s9 + $0x78] sm:$0xff]  }
 0x5d2   : > { %5278 = vtanh.f32 %v3131_v5  ;;  %v3041_v57 = vpop.f32.mrf.mxu1  ;;  %v3133_v35 = vadd.f32 %v3132_v55, %v3030_v1 }
 0x5d3   : > { %v7138_v46 = vpop.eup %5264  ;;  %v3134_v13 = vpop.f32.mrf.mxu0  ;;  %v3042_v8 = vadd.f32 %v3041_v57, %v2939_v60  ;;  %v5072_v60 = vld [vmem:[%s7426_s9 + $0x30] sm:$0xff]  }
 0x5d4   : > { %v7140_v32 = vpop.eup %5266  ;;  %v3135_v7 = vadd.f32 %v3134_v13, %v3032_v30  ;;  %v3183_v10 = vpack.c.bf16 %v7138_v46, %v7136_v45  ;;  %v3043_v3 = vpop.f32.mrf.mxu1 }
 0x5d5   : > { %v5269_v4 = vpop.eup %5268  ;;  %v3136_v63 = vpop.f32.mrf.mxu0  ;;  %v3044_v38 = vadd.f32 %v3043_v3, %v2941_v53  ;;  %v5076_v3 = vld [vmem:[%s7426_s9 + $0x20] sm:$0xff]   ;;  %v5080_v53 = vld [vmem:[%s7426_s9 + $0x10] sm:$0xff]  }
 0x5d6   : > { %5280 = vtanh.f32 %v3135_v7  ;;  %v3184_v24 = vpack.c.bf16 %v5269_v4, %v7140_v32  ;;  %v3137_v41 = vadd.f32 %v3136_v63, %v3034_v37 }
 0x5d7   : > { %v3140_v34 = vpop.f32.mrf.mxu0  ;;  %v5271_v49 = vpop.eup %5270 }
 0x5d8   : > { %v3141_v50 = vadd.f32 %v3140_v34, %v3038_v2  ;;  %5282 = vtanh.f32 %v3137_v41  ;;  %v5070_v2 = vld [vmem:[%s7426_s9 + $0x38] sm:$0xff]   ;;  %v5071_v34 = vld [vmem:[%s7426_s9 + $0x70] sm:$0xff]   ;;  %v5073_v41 = vld [vmem:[%s7426_s9 + $0x68] sm:$0xff]  }
 0x5d9   : > { %v3142_v52 = vpop.f32.mrf.mxu0 }
 0x5da   : > { %v3143_v23 = vadd.f32 %v3142_v52, %v3040_v40  ;;  %5284 = vtanh.f32 %v3141_v50  ;;  %v5075_v40 = vld [vmem:[%s7426_s9 + $0x60] sm:$0xff]   ;;  %v5077_v50 = vld [vmem:[%s7426_s9 + $0x58] sm:$0xff]  }
 0x5db   : > { %v5273_v36 = vpop.eup %5272  ;;  %v3144_v12 = vpop.f32.mrf.mxu0  ;;  %v5078_v52 = vld [vmem:[%s7426_s9 + $0x18] sm:$0xff]  }
 0x5dc   : > { %v5275_v42 = vpop.eup %5274  ;;  %v3145_v48 = vadd.f32 %v3144_v12, %v3042_v8  ;;  %v3185_v27 = vpack.c.bf16 %v5273_v36, %v5271_v49  ;;  %v5079_v49 = vld [vmem:[%s7426_s9 + $0x50] sm:$0xff]   ;;  %v5081_v8 = vld [vmem:[%s7426_s9 + $0x48] sm:$0xff]  }
 0x5dd   : > { %v5277_v22 = vpop.eup %5276  ;;  %v3146_v16 = vpop.f32.mrf.mxu0  ;;  %v5082_v12 = vld [vmem:[%s7426_s9 + $0x8] sm:$0xff]  }
 0x5de   : > { %5286 = vtanh.f32 %v3145_v48  ;;  %v3147_v5 = vadd.f32 %v3146_v16, %v3044_v38  ;;  %v3186_v19 = vpack.c.bf16 %v5277_v22, %v5275_v42  ;;  %v5083_v48 = vld [vmem:[%s7426_s9 + $0x40] sm:$0xff]  }
 0x5df   : > { %5288 = vtanh.f32 %v3143_v23  ;;  %v5279_v25 = vpop.eup %5278 }
 0x5e0   : > { %5290 = vtanh.f32 %v3147_v5 }
 0x5e1   : > { %5292 = vtanh.f32 %v3133_v35 }
 0x5e3   : > { %v5281_v17 = vpop.eup %5280 }
 0x5e4   : > { %v3187_v59 = vpack.c.bf16 %v5281_v17, %v5279_v25 }
 0x5e5   : > { %v5283_v45 = vpop.eup %5282 }
 0x5e7   : > { %v5285_v30 = vpop.eup %5284 }
 0x5eb   : > { %v5287_v46 = vpop.eup %5286 }
 0x5ec   : > { %v5289_v13 = vpop.eup %5288  ;;  %v3189_v32 = vpack.c.bf16 %v5287_v46, %v5285_v30 }
 0x5ed   : > { %v5291_v31 = vpop.eup %5290 }
 0x5ee   : > { %v3190_v7 = vpack.c.bf16 %v5291_v31, %v5289_v13  ;;  %v5293_v4 = vpop.eup %5292  ;;  %v3220_v55 = vsel %vm1068_vm3, %v3189_v32, 0 }
 0x5ef   : > { %v3188_v29 = vpack.c.bf16 %v5283_v45, %v5293_v4 }
 0x5f0   : > { %4564 = vmatprep.subr.msk.bf16.mxu1 %vm1068_vm3, %v3190_v7 }
 0x5f1   : > { %3228 = vmatpush1.bf16.msra.mxu1 %v3220_v55 }
 0x5f2   : > { %3229 = vmatprep.subr.bf16.mxu1 %v3188_v29 }
 0x5f5   : > { %3230 = vmatpush1.bf16.msra.mxu1 %v3187_v59 }
 0x5f6   : > { %3231 = vmatprep.subr.bf16.mxu1 %v3186_v19 }
 0x5f9   : > { %3232 = vmatpush1.bf16.msra.mxu1 %v3185_v27  ;;  %v5084_v27 = vld [vmem:[%s7426_s9] sm:$0xff]  }
 0x5fa   : > { %3233 = vmatprep.subr.bf16.mxu1 %v3184_v24 }
 0x5fd   : > { %3234 = vmatpush1.bf16.msra.mxu1 %v3183_v10  ;;  %v5056_v10 = vld [vmem:[#allocation8] sm:$0xff]  }
 0x5fe   : > { %3235 = vmatprep.subr.bf16.mxu1 %v3182_v51 }
 0x601   : > { %3236 = vmatpush1.bf16.msra.mxu1 %v3181_v56 }
 0x602   : > { %3237 = vmatprep.subr.bf16.mxu1 %v3180_v26 }
 0x605   : > { %3238 = vmatpush1.bf16.msra.mxu1 %v3179_v20 }
 0x606   : > { %3239 = vmatprep.subr.bf16.mxu1 %v3178_v0 }
 0x609   : > { %3240 = vmatpush1.bf16.msra.mxu1 %v3177_v11 }
 0x60a   : > { %4635 = vmatprep.subr.bf16.mxu1 %v5069_v61 }
 0x60c   : > { %4565 = vmatmul.mubr.msk.bf16.vlgmr.msra.gmra.mxu1 %vm3209_vm11, %v5056_v10 }
 0x60d   : > { %3267 = vmatprep.mubr.bf16.mxu1 %v5670_v62  ;;  %4636 = vmatpush3.bf16.msra.mxu1 %v5070_v2 }
 0x60e   : > { %4637 = vmatprep.subr.bf16.mxu1 %v5071_v34 }
 0x611   : > { %4638 = vmatpush3.bf16.msra.mxu1 %v5072_v60 }
 0x612   : > { %4639 = vmatprep.subr.bf16.mxu1 %v5073_v41 }
 0x614   : > { %4566 = vmatmul.mubr.msk.bf16.gmra.mxu1 %vm3209_vm11, %v5057_v21 }
 0x615   : > { %3277 = vmatprep.mubr.bf16.mxu1 %v5670_v62  ;;  %4640 = vmatpush3.bf16.msra.mxu1 %v5074_v47 }
 0x616   : > { %4641 = vmatprep.subr.bf16.mxu1 %v5075_v40 }
 0x619   : > { %4642 = vmatpush3.bf16.msra.mxu1 %v5076_v3 }
 0x61a   : > { %4643 = vmatprep.subr.bf16.mxu1 %v5077_v50 }
 0x61c   : > { %4567 = vmatmul.mubr.msk.bf16.gmra.mxu1 %vm3209_vm11, %v5058_v28 }
 0x61d   : > { %4644 = vmatpush3.bf16.msra.mxu1 %v5078_v52  ;;  %v5085_v52 = vld [vmem:[%s7426_s9 + $0xb8] sm:$0xff]  }
 0x61e   : > { %4645 = vmatprep.subr.bf16.mxu1 %v5079_v49 }
 0x621   : > { %4646 = vmatpush3.bf16.msra.mxu1 %v5080_v53 }
 0x622   : > { %4647 = vmatprep.subr.bf16.mxu1 %v5081_v8 }
 0x625   : > { %4648 = vmatpush3.bf16.msra.mxu1 %v5082_v12 }
 0x626   : > { %4649 = vmatprep.subr.bf16.mxu1 %v5083_v48 }
 0x629   : > { %4650 = vmatpush3.bf16.msra.mxu1 %v5084_v27 }
 0x62a   : > { %3814 = vmatprep.subr.bf16.mxu1 %v5670_v62 }
 0x6cc   : > { %v3259_v18 = vpop.f32.mrf.mxu1 }
 0x6ce   : > { %v3261_v0 = vpop.f32.mrf.mxu1 }
 0x6d0   : > { %v3263_v14 = vpop.f32.mrf.mxu1 }
 0x6d1   : > { %v3306_v58 = vpack.c.bf16 %v3263_v14, %v3259_v18 }
 0x6d2   : > { %v3265_v43 = vpop.f32.mrf.mxu1 }
 0x6d3   : > { %v3307_v11 = vpack.c.bf16 %v3265_v43, %v3261_v0 }
 0x6d4   : > { %v3269_v20 = vpop.f32.mrf.mxu1 }
 0x6d5   : > { %4578 = vmatprep.mubr.msk.bf16.mxu0 %vm1100_vm4, %v3307_v11 }
 0x6d6   : > { %v3271_v54 = vpop.f32.mrf.mxu1  ;;  %3414 = vmatmul.mubr.bf16.vlgmr.msra.gmra.mxu0 %v3306_v58 }
 0x6d8   : > { %v3273_v26 = vpop.f32.mrf.mxu1 }
 0x6d9   : > { %v3308_v56 = vpack.c.bf16 %v3273_v26, %v3269_v20 }
 0x6da   : > { %v3275_v9 = vpop.f32.mrf.mxu1 }
 0x6db   : > { %v3309_v6 = vpack.c.bf16 %v3275_v9, %v3271_v54 }
 0x6dc   : > { %v3279_v44 = vpop.f32.mrf.mxu1 }
 0x6dd   : > { %4579 = vmatprep.mubr.msk.bf16.mxu0 %vm1100_vm4, %v3309_v6  ;;  %v3310_v37 = vpack.c.bf16 %v3279_v44, %v3279_v44 }
 0x6de   : > { %3422 = vmatmul.mubr.bf16.gmra.mxu0 %v3308_v56  ;;  %v3281_v51 = vpop.f32.mrf.mxu1 }
 0x6df   : > { %v3311_v57 = vpack.c.bf16 %v3281_v51, %v3281_v51 }
 0x6e0   : > { %v3283_v63 = vpop.f32.mrf.mxu1 }
 0x6e1   : > { %4580 = vmatprep.mubr.msk.bf16.mxu0 %vm1100_vm4, %v3311_v57 }
 0x6e2   : > { %v3284_v24 = vpop.f32.mrf.mxu1 }
 0x6e6   : > { %3430 = vmatmul.mubr.bf16.gmra.mxu0 %v3310_v37 }
 0x796   : > { %v3415_v36 = vpop.f32.mrf.mxu0 }
 0x798   : > { %v3417_v1 = vpop.f32.mrf.mxu0 }
 0x799   : > { %v5086_v1 = vld [vmem:[%s7426_s9 + $0xb0] sm:$0xff]  }
 0x79a   : > { %v3418_v23 = vpop.f32.mrf.mxu0 }
 0x79b   : > { %v7225_v42 = vpack.c.bf16 %v3418_v23, %v3415_v36 }
 0x79c   : > { %v3420_v38 = vpop.f32.mrf.mxu0 }
 0x79d   : > { %v3443_v16 = vshll.u32 %v7225_v42, 16  ;;  %v3441_v19 = vshrl.u32 %v7225_v42, 16  ;;  %v3472_v45 = vrot.slane %v7225_v42, 1  ;;  %v3500_v61 = vrot.slane %v7225_v42, 2 }
 0x79e   : > { %v3423_v22 = vpop.f32.mrf.mxu0 }
 0x79f   : > { %v3445_v25 = vrot.slane %v3443_v16, 1  ;;  %v3483_v7 = vrot.slane %v3441_v19, 1  ;;  %v3484_v4 = vrot.slane %v3443_v16, 2 }
 0x7a0   : > { %v3425_v35 = vpop.f32.mrf.mxu0 }
 0x7a1   : > { %v3446_v31 = vor.u32 %v3445_v25, %v3441_v19  ;;  %v3485_v11 = vor.u32 %v3484_v4, %v3483_v7  ;;  %v5088_v35 = vld [vmem:[%s7426_s9 + $0xa0] sm:$0xff]   ;;  %v5089_v19 = vld [vmem:[%s7426_s9 + $0x98] sm:$0xff]  }
 0x7a2   : > { %v3426_v5 = vpop.f32.mrf.mxu0 }
 0x7a3   : > { %v7236_v17 = vpack.c.bf16 %v3426_v5, %v3423_v22 }
 0x7a4   : > { %v3428_v59 = vpop.f32.mrf.mxu0 }
 0x7a5   : > { %v3473_v30 = vrot.slane %v7236_v17, 1  ;;  %v3448_v46 = vshll.u32 %v7236_v17, 16  ;;  %v3452_v13 = vshrl.u32 %v7236_v17, 16  ;;  %v3501_v24 = vrot.slane %v7236_v17, 2  ;;  %v5090_v59 = vld [vmem:[%s7426_s9 + $0x90] sm:$0xff]  }
 0x7a6   : > { %v3431_v32 = vpop.f32.mrf.mxu0 }
 0x7a7   : > { %v7242_v55 = vpack.c.bf16 %v3431_v32, %v3431_v32  ;;  %v3474_v29 = vsel %vm908_vm2, %v3472_v45, %v3473_v30  ;;  %v3450_v10 = vrot.slane %v3448_v46, 1  ;;  %v3486_v21 = vrot.slane %v3452_v13, 1  ;;  %v5091_v45 = vld [vmem:[%s7426_s9 + $0x88] sm:$0xff]  }
 0x7a8   : > { %3477 = vrot.lane.b32.xlu1 %v3474_v29, %s5667_s30  ;;  %v3487_v28 = vrot.slane %v3448_v46, 2  ;;  %v3433_v39 = vpop.f32.mrf.mxu0  ;;  %v3502_v2 = vsel %vm1068_vm3, %v3500_v61, %v3501_v24  ;;  %v5093_v46 = vld [vmem:[%s7426_s9 + $0xc0] sm:$0xff]  }
 0x7a9   : > { %v3451_v15 = vsel %vm732_vm0, %v3446_v31, %v3450_v10  ;;  %v3456_v18 = vshll.u32 %v7242_v55, 16  ;;  %v3460_v14 = vshrl.u32 %v7242_v55, 16  ;;  %v3454_v58 = vor.u32 %v3452_v13, %v3450_v10 }
 0x7aa   : > { %3463 = vrot.lane.b32.xlu0 %v3451_v15, %s5672_s20  ;;  %v3488_v0 = vor.u32 %v3487_v28, %v3486_v21  ;;  %v3434_v43 = vpop.f32.mrf.mxu0  ;;  %v3475_v44 = vrot.slane %v7242_v55, 1  ;;  %v3503_v34 = vrot.slane %v7242_v55, 2 }
 0x7ab   : > { %v3458_v20 = vrot.slane %v3456_v18, 1  ;;  %v3491_v54 = vrot.slane %v3456_v18, 2  ;;  %v3490_v26 = vrot.slane %v3460_v14, 1 }
 0x7ac   : > { %v3435_v9 = vpop.f32.mrf.mxu0  ;;  %v3489_v6 = vsel %vm972_vm1, %v3485_v11, %v3488_v0  ;;  %v3476_v57 = vsel %vm908_vm2, %v3473_v30, %v3475_v44  ;;  %v3504_v60 = vsel %vm1068_vm3, %v3501_v24, %v3503_v34  ;;  %v5092_v30 = vld [vmem:[%s7426_s9 + $0x80] sm:$0xff]  }
 0x7ad   : > { %v3459_v56 = vsel %vm732_vm0, %v3454_v58, %v3458_v20  ;;  %v3492_v51 = vor.u32 %v3491_v54, %v3490_v26  ;;  %v3462_v37 = vor.u32 %v3460_v14, %v3458_v20 }
 0x7ae   : > { %3494 = vrot.lane.b32.xlu0 %v3489_v6, %s5671_s27  ;;  %3465 = vrot.lane.b32.xlu1 %v3459_v56, %s5672_s20 }
 0x7af   : > { %v3493_v63 = vsel %vm972_vm1, %v3488_v0, %v3492_v51 }
 0x7b2   : > { %3479 = vrot.lane.b32.xlu0 %v3476_v57, %s5667_s30  ;;  %3496 = vrot.lane.b32.xlu1 %v3493_v63, %s5671_s27  ;;  %v4581_v63 = vld [vmem:[%s7427_s10] ss:$0 sm:$0xff] }
 0x7b6   : > { %3467 = vrot.lane.b32.xlu0 %v3462_v37, %s5672_s20  ;;  %3481 = vrot.lane.b32.xlu1 %v3475_v44, %s5667_s30 }
 0x7ba   : > { %3498 = vrot.lane.b32.xlu0 %v3492_v51, %s5671_s27  ;;  %3505 = vrot.lane.b32.xlu1 %v3502_v2, %s7481_s24 }
 0x7be   : > { %3507 = vrot.lane.b32.xlu0 %v3504_v60, %s7481_s24  ;;  %3509 = vrot.lane.b32.xlu1 %v3503_v34, %s7481_s24  ;;  %s7449_s24 = sshll.u32 %s5788_s28, 7 }
 0x7bf   : > { %s4185_s27 = scalar_lea.hbm %s7433_s16, %s7449_s24 }
 0x81a   : > { %v3478_v41 = vpop.permute.xlu1 %3477 }
 0x81c   : > { %v3464_v47 = vpop.permute.xlu0 %3463 }
 0x81d   : > { %v3521_v40 = vsel %vm1100_vm4, %v3464_v47, %v3478_v41  ;;  %v3512_v53 = vsel %vm2350_vm9, %v7225_v42, %v3464_v47  ;;  %v5087_v42 = vld [vmem:[%s7426_s9 + $0xa8] sm:$0xff]  }
 0x820   : > { %v3495_v3 = vpop.permute.xlu0 %3494  ;;  %v3466_v50 = vpop.permute.xlu1 %3465 }
 0x821   : > { %v3527_v49 = vsel %vm2307_vm8, %v3521_v40, %v3495_v3  ;;  %v3515_v27 = vsel %vm2350_vm9, %v7236_v17, %v3466_v50 }
 0x822   : > { %3790 = vmatprep.mubr.bf16.mxu1 %v3527_v49 }
 0x823   : > { %3791 = vmatmul.mubr.bf16.vlgmr.msra.gmra.mxu1 %v3512_v53 }
 0x824   : > { %3815 = vmatpush1.bf16.msra.mxu1 %v5085_v52  ;;  %v3480_v8 = vpop.permute.xlu0 %3479  ;;  %v3497_v36 = vpop.permute.xlu1 %3496 }
 0x825   : > { %v3523_v23 = vsel %vm1100_vm4, %v3466_v50, %v3480_v8  ;;  %3816 = vmatprep.subr.bf16.mxu1 %v5670_v62 }
 0x826   : > { %v3530_v12 = vsel %vm2307_vm8, %v3523_v23, %v3497_v36 }
 0x827   : > { %3798 = vmatprep.mubr.bf16.mxu1 %v3530_v12 }
 0x828   : > { %3817 = vmatpush1.bf16.msra.mxu1 %v5086_v1  ;;  %v3468_v38 = vpop.permute.xlu0 %3467  ;;  %v3482_v48 = vpop.permute.xlu1 %3481 }
 0x829   : > { %3818 = vmatprep.subr.bf16.mxu1 %v5670_v62  ;;  %v3525_v22 = vsel %vm1100_vm4, %v3468_v38, %v3482_v48  ;;  %v3518_v25 = vsel %vm2350_vm9, %v7242_v55, %v3468_v38  ;;  %v5673_v55 = vmov 0.0  }
 0x82a   : > { %4691 = vmatprep.subr.bf16.mxu0 %v5673_v55  ;;  %4697 = vmatprep.mubr.msk.bf16.mxu0 %vm5674_vm13, %v5673_v55 }
 0x82b   : > { %3799 = vmatmul.mubr.bf16.gmra.mxu1 %v3515_v27 }
 0x82c   : > { %3819 = vmatpush1.bf16.msra.mxu1 %v5087_v42  ;;  %v3499_v16 = vpop.permute.xlu0 %3498  ;;  %v3506_v17 = vpop.permute.xlu1 %3505 }
 0x82d   : > { %3820 = vmatprep.subr.bf16.mxu1 %v5670_v62  ;;  %v3533_v5 = vsel %vm2307_vm8, %v3525_v22, %v3499_v16  ;;  %v3536_v13 = vsel %vm1133_vm5, %v3495_v3, %v3506_v17 }
 0x82e   : > { %3806 = vmatprep.mubr.bf16.mxu1 %v3533_v5  ;;  %v3878_v5 = vld [vmem:[%s7428_s11] sm:$0xf] }
 0x830   : > { %3821 = vmatpush1.bf16.msra.mxu1 %v5088_v35  ;;  %v3508_v32 = vpop.permute.xlu0 %3507  ;;  %v3510_v7 = vpop.permute.xlu1 %3509 }
 0x831   : > { %3822 = vmatprep.subr.bf16.mxu1 %v5670_v62  ;;  %v3539_v31 = vsel %vm1133_vm5, %v3497_v36, %v3508_v32  ;;  %v3542_v4 = vsel %vm1133_vm5, %v3499_v16, %v3510_v7 }
 0x833   : > { %3807 = vmatmul.mubr.bf16.gmra.mxu1 %v3518_v25  ;;  %v5095_v25 = vld [vmem:[#allocation11 + $0x30] sm:$0xff]  }
 0x834   : > { %3823 = vmatpush1.bf16.msra.mxu1 %v5089_v19  ;;  %4607 = vmatprep.mubr.msk.bf16.mxu1 %vm3751_vm12, %v3506_v17  ;;  %v5094_v19 = vld [vmem:[#allocation11 + $0x38] sm:$0xff]   ;;  %v5096_v17 = vld [vmem:[#allocation11 + $0x28] sm:$0xff]  }
 0x835   : > { %3824 = vmatprep.subr.bf16.mxu1 %v5670_v62 }
 0x838   : > { %3825 = vmatpush1.bf16.msra.mxu1 %v5090_v59  ;;  %v5097_v59 = vld [vmem:[#allocation11 + $0x20] sm:$0xff]  }
 0x839   : > { %3826 = vmatprep.subr.bf16.mxu1 %v5670_v62 }
 0x83c   : > { %3827 = vmatpush1.bf16.msra.mxu1 %v5091_v45  ;;  %v5098_v45 = vld [vmem:[#allocation11 + $0x18] sm:$0xff]  }
 0x83d   : > { %3828 = vmatprep.subr.bf16.mxu1 %v5670_v62 }
 0x840   : > { %3829 = vmatpush1.bf16.msra.mxu1 %v5092_v30  ;;  %v5099_v30 = vld [vmem:[#allocation11 + $0x10] sm:$0xff]  }
 0x841   : > { %3844 = vmatprep.subr.bf16.mxu1 %v5670_v62 }
 0x844   : > { %3845 = vmatpush2.bf16.msra.mxu1 %v5093_v46  ;;  %v5100_v46 = vld [vmem:[#allocation11 + $0x8] sm:$0xff]  }
 0x845   : > { %4721 = vmatprep.subr.bf16.mxu1 %v5673_v55 }
 0x847   : > { %3847 = vmatmul.mubr.bf16.vlgmr.msra.gmra.mxu1 %v3536_v13  ;;  %v5101_v13 = vld [vmem:[#allocation11] sm:$0xff]  }
 0x848   : > { %4608 = vmatprep.mubr.msk.bf16.mxu1 %vm3751_vm12, %v3508_v32  ;;  %v5102_v32 = vld [vmem:[#allocation14 + $0x38] sm:$0xff]  }
 0x849   : > { %4722 = vmatpush3.bf16.msra.mxu1 %v5102_v32 }
 0x84a   : > { %4723 = vmatprep.subr.bf16.mxu1 %v5673_v55 }
 0x84f   : > { %3855 = vmatmul.mubr.bf16.gmra.mxu1 %v3539_v31  ;;  %v5103_v31 = vld [vmem:[#allocation14 + $0x30] sm:$0xff]  }
 0x850   : > { %4609 = vmatprep.mubr.msk.bf16.mxu1 %vm3751_vm12, %v3510_v7  ;;  %4724 = vmatpush3.bf16.msra.mxu1 %v5103_v31  ;;  %v5104_v7 = vld [vmem:[#allocation14 + $0x28] sm:$0xff]  }
 0x851   : > { %4725 = vmatprep.subr.bf16.mxu1 %v5673_v55 }
 0x854   : > { %4726 = vmatpush3.bf16.msra.mxu1 %v5104_v7 }
 0x855   : > { %4727 = vmatprep.subr.bf16.mxu1 %v5673_v55 }
 0x857   : > { %3863 = vmatmul.mubr.bf16.gmra.mxu1 %v3542_v4 }
 0x858   : > { %4737 = vmatprep.mubr.msk.bf16.mxu1 %vm5674_vm13, %v5673_v55 }
 0x8e3   : > { %v4651_v62 = vpop.f32.mrf.mxu1 }
 0x8e5   : > { %v4652_v29 = vpop.f32.mrf.mxu1 }
 0x8e6   : > { %v4653_v41 = vadd.f32 %v4652_v29, %v4651_v62 }
 0x8e7   : > { %v4654_v10 = vpop.f32.mrf.mxu1 }
 0x8e8   : > { %v3793_v53 = vadd.f32 %v4653_v41, %v4581_v63 }
 0x8e9   : > { %v4655_v21 = vpop.f32.mrf.mxu1 }
 0x8ea   : > { %v4656_v61 = vadd.f32 %v4655_v21, %v4654_v10 }
 0x8eb   : > { %v4657_v28 = vpop.f32.mrf.mxu1 }
 0x8ec   : > { %v3796_v50 = vadd.f32 %v4656_v61, %v4581_v63 }
 0x8ed   : > { %v4658_v39 = vpop.f32.mrf.mxu1 }
 0x8ee   : > { %v4659_v57 = vadd.f32 %v4658_v39, %v4657_v28  ;;  %v5105_v28 = vld [vmem:[#allocation14 + $0x20] sm:$0xff]   ;;  %v5106_v39 = vld [vmem:[#allocation14 + $0x18] sm:$0xff]  }
 0x8ef   : > { %v4660_v15 = vpop.f32.mrf.mxu1  ;;  %4728 = vmatpush3.bf16.msra.mxu1 %v5105_v28 }
 0x8f0   : > { %v3801_v47 = vadd.f32 %v4659_v57, %v4581_v63  ;;  %4729 = vmatprep.subr.bf16.mxu1 %v5673_v55 }
 0x8f1   : > { %v4661_v18 = vpop.f32.mrf.mxu1 }
 0x8f2   : > { %v4662_v44 = vadd.f32 %v4661_v18, %v4660_v15  ;;  %v5107_v15 = vld [vmem:[#allocation14 + $0x10] sm:$0xff]   ;;  %v5108_v18 = vld [vmem:[#allocation14 + $0x8] sm:$0xff]  }
 0x8f3   : > { %v4663_v0 = vpop.f32.mrf.mxu1  ;;  %4730 = vmatpush3.bf16.msra.mxu1 %v5106_v39 }
 0x8f4   : > { %v3804_v2 = vadd.f32 %v4662_v44, %v4581_v63  ;;  %4731 = vmatprep.subr.bf16.mxu1 %v5673_v55 }
 0x8f5   : > { %v4664_v14 = vpop.f32.mrf.mxu1 }
 0x8f6   : > { %v4665_v56 = vadd.f32 %v4664_v14, %v4663_v0  ;;  %v5109_v0 = vld [vmem:[#allocation14] sm:$0xff]   ;;  %v4611_v14 = vld [vmem:[#allocation13] ss:$0 sm:$0xff] }
 0x8f7   : > { %v4666_v43 = vpop.f32.mrf.mxu1  ;;  %4732 = vmatpush3.bf16.msra.mxu1 %v5107_v15 }
 0x8f8   : > { %v3809_v24 = vadd.f32 %v4665_v56, %v4581_v63  ;;  %4733 = vmatprep.subr.bf16.mxu1 %v5673_v55 }
 0x8f9   : > { %v4667_v11 = vpop.f32.mrf.mxu1 }
 0x8fb   : > { %4734 = vmatpush3.bf16.msra.mxu1 %v5108_v18 }
 0x8fc   : > { %4735 = vmatprep.subr.bf16.mxu1 %v5673_v55 }
 0x8ff   : > { %4736 = vmatpush3.bf16.msra.mxu1 %v5109_v0 }
 0x907   : > { %v3848_v58 = vpop.f32.mrf.mxu1 }
 0x908   : > { %v3849_v1 = vadd.f32 %v3848_v58, %v3793_v53 }
 0x909   : > { %v3850_v20 = vpop.f32.mrf.mxu1 }
 0x90b   : > { %v3851_v54 = vpop.f32.mrf.mxu1 }
 0x90c   : > { %v3852_v8 = vadd.f32 %v3851_v54, %v3796_v50 }
 0x90d   : > { %v3853_v26 = vpop.f32.mrf.mxu1 }
 0x90f   : > { %v3856_v9 = vpop.f32.mrf.mxu1 }
 0x910   : > { %v3857_v52 = vadd.f32 %v3856_v9, %v3801_v47 }
 0x911   : > { %v3858_v6 = vpop.f32.mrf.mxu1 }
 0x912   : > { %v4153_v6 = vand.u32 127, %v1237_v33 }
 0x913   : > { %v3859_v51 = vpop.f32.mrf.mxu1 }
 0x914   : > { %v3860_v40 = vadd.f32 %v3859_v51, %v3804_v2  ;;  %vm4154_vm0 = vcmp.lt.s32.totalorder %v4153_v6, 10 }
 0x915   : > { %v3861_v37 = vpop.f32.mrf.mxu1 }
 0x917   : > { %v3864_v34 = vpop.f32.mrf.mxu1 }
 0x918   : > { %v3865_v60 = vadd.f32 %v3864_v34, %v3809_v24 }
 0x919   : > { %v3866_v3 = vpop.f32.mrf.mxu1 }
 0x91a   : > { %5294 = vtanh.f32 %v3865_v60 }
 0x91b   : > { %v3867_v49 = vpop.f32.mrf.mxu1  ;;  %5296 = vtanh.f32 %v3860_v40 }
 0x91c   : > { %5298 = vtanh.f32 %v3857_v52 }
 0x91d   : > { %v3868_v36 = vpop.f32.mrf.mxu1  ;;  %5300 = vtanh.f32 %v3852_v8 }
 0x91e   : > { %5302 = vtanh.f32 %v3849_v1 }
 0x927   : > { %v5295_v23 = vpop.eup %5294 }
 0x928   : > { %v3877_v12 = vpack.c.bf16 %v5295_v23, %v5295_v23  ;;  %v5297_v38 = vpop.eup %5296 }
 0x929   : > { %v5299_v48 = vpop.eup %5298 }
 0x92a   : > { %v3885_v42 = vsel %vm3883_vm14, %v3877_v12, 0  ;;  %v3876_v27 = vpack.c.bf16 %v5297_v38, %v5299_v48  ;;  %v5301_v22 = vpop.eup %5300 }
 0x92b   : > { %4692 = vmatpush3.bf16.msra.mxu0 %v3885_v42  ;;  %v5303_v16 = vpop.eup %5302 }
 0x92c   : > { %4693 = vmatprep.subr.bf16.mxu0 %v5673_v55  ;;  %v3875_v35 = vpack.c.bf16 %v5301_v22, %v5303_v16 }
 0x92f   : > { %4694 = vmatpush3.bf16.msra.mxu0 %v3876_v27 }
 0x930   : > { %4695 = vmatprep.subr.bf16.mxu0 %v5673_v55 }
 0x933   : > { %4696 = vmatpush3.bf16.msra.mxu0 %v3875_v35 }
 0x934   : > { %4701 = vmatprep.subr.bf16.mxu0 %v5673_v55 }
 0x936   : > { %4698 = vmatmul.mubr.msk.bf16.vlgmr.msra.gmra.mxu0 %vm3879_vm15, %v3878_v5 }
 0x937   : > { %4702 = vmatpush3.bf16.msra.mxu0 %v5094_v19  ;;  %4717 = vmatprep.mubr.msk.bf16.mxu0 %vm5674_vm13, %v5673_v55 }
 0x938   : > { %4703 = vmatprep.subr.bf16.mxu0 %v5673_v55 }
 0x93b   : > { %4704 = vmatpush3.bf16.msra.mxu0 %v5095_v25 }
 0x93c   : > { %4705 = vmatprep.subr.bf16.mxu0 %v5673_v55 }
 0x93f   : > { %4706 = vmatpush3.bf16.msra.mxu0 %v5096_v17 }
 0x940   : > { %4707 = vmatprep.subr.bf16.mxu0 %v5673_v55 }
 0x943   : > { %4708 = vmatpush3.bf16.msra.mxu0 %v5097_v59 }
 0x944   : > { %4709 = vmatprep.subr.bf16.mxu0 %v5673_v55 }
 0x947   : > { %4710 = vmatpush3.bf16.msra.mxu0 %v5098_v45 }
 0x948   : > { %4711 = vmatprep.subr.bf16.mxu0 %v5673_v55 }
 0x94b   : > { %4712 = vmatpush3.bf16.msra.mxu0 %v5099_v30 }
 0x94c   : > { %4713 = vmatprep.subr.bf16.mxu0 %v5673_v55 }
 0x94f   : > { %4714 = vmatpush3.bf16.msra.mxu0 %v5100_v46 }
 0x950   : > { %4715 = vmatprep.subr.bf16.mxu0 %v5673_v55  ;;  %v4620_v55 = vld [vmem:[#allocation16] ss:$0 sm:$0xff] }
 0x953   : > { %4716 = vmatpush3.bf16.msra.mxu0 %v5101_v13 }
 0x9f6   : > { %v3921_v4 = vpop.f32.mrf.mxu0 }
 0x9f7   : > { %v3943_v62 = vpack.c.bf16 %v3921_v4, %v3921_v4 }
 0x9f8   : > { %v4699_v29 = vpop.f32.mrf.mxu0 }
 0x9f9   : > { %4718 = vmatmul.mubr.bf16.vlgmr.msra.gmra.mxu0 %v3943_v62 }
 0x9fa   : > { %v3924_v10 = vpop.f32.mrf.mxu0 }
 0x9fc   : > { %v4700_v21 = vpop.f32.mrf.mxu0 }
 0xab9   : > { %v4033_v43 = vpop.f32.mrf.mxu0 }
 0xaba   : > { %v4034_v11 = vadd.f32 %v4611_v14, %v4033_v43 }
 0xabb   : > { %v4719_v58 = vpop.f32.mrf.mxu0 }
 0xabc   : > { %5304 = vtanh.f32 %v4034_v11 }
 0xabd   : > { %v4036_v20 = vpop.f32.mrf.mxu0 }
 0xabf   : > { %v4720_v54 = vpop.f32.mrf.mxu0 }
 0xac9   : > { %v5305_v26 = vpop.eup %5304 }
 0xaca   : > { %v4056_v9 = vpack.c.bf16 %v5305_v26, %v5305_v26 }
 0xacc   : > { %4738 = vmatmul.mubr.bf16.vlgmr.msra.gmra.mxu1 %v4056_v9 }
 0xb8c   : > { %v4146_v56 = vpop.f32.mrf.mxu1 }
 0xb8d   : > { %v4147_v44 = vadd.f32 %v4620_v55, %v4146_v56 }
 0xb8e   : > { %v4739_v51 = vpop.f32.mrf.mxu1 }
 0xb8f   : > { %4166 = vst [vmem:[%s669_s18] sm:$0xff] %v4147_v44  ;;  %v4155_v57 = vsel %vm4154_vm0, %v4147_v44, -inf }
 0xb90   : > { %4156 = vmax.xlane.f32.xlu0 %v4155_v57  ;;  %v4149_v63 = vpop.f32.mrf.mxu1 }
 0xb92   : > { %v4740_v37 = vpop.f32.mrf.mxu1 }
 0xc19   : > { %v4157_v24 = vpop.xlane.xlu0 %4156 }
 0xc1a   : > { %v4158_v61 = vsub.f32 %v4155_v57, %v4157_v24 }
 0xc1c   : > { %v4159_v33 = vmul.f32 1.442695, %v4158_v61 }
 0xc1e   : > { %5306 = vpow2.f32 %v4159_v33 }
 0xc2b   : > { %v5307_v2 = vpop.eup %5306 }
 0xc2c   : > { %v4161_v34 = vsel %vm4154_vm0, %v5307_v2, 0.0 }
 0xc2d   : > { %4162 = vadd.xlane.f32.xlu1 %v4161_v34 }
 0xc2e   : > { %5557 = shalt.err (!%p5554_p9)
}
 0xc2f   : > { %s5558_s29 = scalar_lea.hbm %s4185_s27, 128  ;;  %s5562_s20 = scalar_lea.hbm %s7433_s16, 256 }
 0xc30   : > { %p5559_p12 = scmp.ne.s32.totalorder %s4185_s27, %s5558_s29  ;;  %p5563_p11 = scmp.lt.s32.totalorder %s4185_s27, %s7433_s16 }
 0xc31   : > { %p5564_p0 = scmp.lt.s32.totalorder %s5562_s20, %s5558_s29 }
 0xc32   : > { %p5560_p8 = pnand %p5559_p12, %p7482_p5 }
 0xc33   : > { %p5565_p3 = por %p5564_p0, %p5563_p11 }
 0xc34   : > { %p5561_p7 = pneg %p5560_p8 }
 0xc36   : > { %p5566_p1 = pnand %p5565_p3, %p5561_p7 }
 0xc38   : > { %5569 = shalt.err (!%p5566_p1)
}
 0xc39   : > { %4777 = dma.vmem_to_hbm [thread:$0]  (%p7482_p5), %s4188_s22, 128, %s4185_s27, %s4169_s19  }
 0xc3a   : > { %s7483_s26 = sshll.u32 %s7355_s21, 3  ;;  %s7484_s2 = sshll.u32 %s5788_s28, 7 }
 0xc3b   : > { %s676_s23 = scalar_lea.vmem [#allocation18], %s7483_s26  ;;  %s7485_s4 = sld [smem:[#allocation37_spill]] }
 0xc3c   : > { %s4200_s0 = sshll.u32 %s676_s23, 4  ;;  %s4174_s30 = scalar_lea.sflag [#allocation19], %s7355_s21  ;;  %s4201_s0 = int_to_ptr.vmem [resolvable:$true] %s4200_s0 }
 0xc3d   : > { %s5570_s20 = scalar_lea.vmem %s4201_s0, 128  ;;  %s5676_s27 = smov [#allocation18]  }
 0xc3e   : > { %p5571_p6 = scmp.ne.s32.totalorder %s4201_s0, %s5570_s20  ;;  %s5574_s22 = sshll.u32 %s5676_s27, 4  ;;  %s5575_s22 = int_to_ptr.vmem [resolvable:$false] %s5574_s22 }
 0xc3f   : > { %s5576_s19 = scalar_lea.vmem %s5575_s22, 256  ;;  %p5577_p2 = scmp.lt.s32.totalorder %s4201_s0, %s5575_s22 }
 0xc40   : > { %p5572_p10 = pnand %p5571_p6, %p7482_p5  ;;  %p5578_p4 = scmp.lt.s32.totalorder %s5576_s19, %s5570_s20 }
 0xc41   : > { %s4198_s18 = scalar_lea.hbm %s7485_s4, %s7484_s2 }
 0xc42   : > { %p5573_p13 = pneg %p5572_p10  ;;  %p5579_p9 = por %p5578_p4, %p5577_p2 }
 0xc44   : > { %p5580_p12 = pnand %p5579_p9, %p5573_p13 }
 0xcb6   : > { %v4163_v60 = vpop.xlane.xlu1 %4162 }
 0xcb7   : > { %5308 = vrcp.f32 %v4163_v60 }
 0xcc4   : > { %v5309_v41 = vpop.eup %5308 }
 0xcc5   : > { %v4165_v47 = vmul.f32 %v5309_v41, %v4161_v34 }
 0xcc7   : > { %4167 = vst [vmem:[%s676_s23] sm:$0xff] %v4165_v47 }
 0xcc8   : > { %5583 = shalt.err (!%p5580_p12)
}
 0xcc9   : > { %s5584_s28 = scalar_lea.hbm %s4198_s18, 128  ;;  %s5588_s23 = scalar_lea.hbm %s7485_s4, 256 }
 0xcca   : > { %p5585_p8 = scmp.ne.s32.totalorder %s4198_s18, %s5584_s28  ;;  %p5589_p0 = scmp.lt.s32.totalorder %s4198_s18, %s7485_s4 }
 0xccb   : > { %p5590_p3 = scmp.lt.s32.totalorder %s5588_s23, %s5584_s28 }
 0xccc   : > { %p5586_p7 = pnand %p5585_p8, %p7482_p5 }
 0xccd   : > { %p5591_p1 = por %p5590_p3, %p5589_p0 }
 0xcce   : > { %p5587_p11 = pneg %p5586_p7 }
 0xcd0   : > { %p5592_p6 = pnand %p5591_p1, %p5587_p11 }
 0xcd2   : > { %5595 = shalt.err (!%p5592_p6)
}
 0xcd3   : > { %4778 = dma.vmem_to_hbm [thread:$0]  (%p7482_p5), %s4201_s0, 128, %s4198_s18, %s4174_s30  }
 0xcd4 PF: > { %s7486_s29 = sld [smem:[#allocation29_spill]] }
 0xcd5   : > { %s7487_s20 = sld [smem:[#allocation27_spill]] }
 0xcd6   : > { %s7488_s27 = sld [smem:[#allocation32_spill]] }
 0xcda   : > { %p4834_p10 = scmp.ge.s32.totalorder %s7486_s29, 2 }
 0xcdb   : > { %s4212_s22 = sand.u32 1, %s7487_s20  }
 0xcdc   : > { %p7489_p13 = scmp.ne.s32.totalorder %s7488_s27, 0  ;;  %s4213_s19 = scalar_lea.sflag [#allocation4], %s4212_s22 }
 0xcde   : > { %p4810_p2 = pnand %p4834_p10, %p7489_p13 }
 0xce0   : > { %p4811_p4 = pneg %p4810_p2 }
 0xce2   : > { %5633 = dma.done.wait (%p4811_p4), %s4213_s19, 128  }
 0xce3   : > { %5635 = vsyncadd (%p4811_p4), %s4213_s19, 4294967168  ;;  %s4222_s21 = scalar_lea.sflag [#allocation19], %s4212_s22 }
 0xce4   : > { %5637 = dma.done.wait (%p4811_p4), %s4222_s21, 128  }
 0xce5   : > { %5639 = vsyncadd (%p4811_p4), %s4222_s21, 4294967168  ;;  %s7490_s27 = sld [smem:[#allocation30_spill]]  ;;  %s7493_s24 = smov %s5646_s25 }
 0xce6   : > { %s7491_s28 = sld [smem:[#allocation28_spill]] }
 0xce7   : > { %s7492_s26 = sld [smem:[#allocation31_spill]] }
 0xceb   : > { %p36_p5 = scmp.ge.s32.totalorder %s7490_s27, 4  }
 0xcec   : > { %s7494_s25 = smov %s7491_s28 }
 0xced   :  { %38 = sbr.rel (!%p36_p5) target bundleno = 16 (0x10), region = 173 }
 0xcf2   :  { %4227 = vsyncpa [#allocation3], 1 }
 0xcf3   :  { %4229 = vsyncpa [#allocation3 + $0x1], 1 }
 0xcf4   :  { %4230 = vsyncpa [#allocation6], 1 }
 0xcf5   :  { %4231 = vsyncpa [#allocation9], 1 }
 0xcf6   :  { %4232 = vsyncpa [#allocation12], 1 }
 0xcf7   :  { %4233 = vsyncpa [#allocation15], 1 }
 0xcf8   :  { %4234 = vsyncpa [#allocation4], 1 }
 0xcf9   :  { %4236 = vsyncpa [#allocation4 + $0x1], 1 }
 0xcfa   :  { %4237 = vsyncpa [#allocation19], 1 }
 0xcfb   :  { %4239 = vsyncpa [#allocation19 + $0x1], 1 }

</bundles_post_ra>
